<compile_context>
chip_gen: v5e
topology: v5e:2x2
jax: 0.10.0
libtpu: 0.0.40
codegen_flags: <defaults>
</compile_context>

<pallas_src>
import jax
import jax.numpy as jnp
from jax import lax
from jax.experimental import pallas as pl
from jax.experimental.pallas import tpu as pltpu

_EPS = 1e-5   # nn.BatchNorm2d default eps
_LANE = 128


def _round_up(x, m):
    return (x + m - 1) // m * m


def _bn_relu_conv_kernel(x_ref, scale_ref, shift_ref, w_ref, b_ref, out_ref,
                         pad_ref, slab_ref):
    """Fused (pre-reduced) BatchNorm -> ReLU -> 3x3 conv (pad=1), one image.

    x_ref:     (H, W, Cin)        f32   one batch element (grid over N)
    scale_ref: (1, Cin)           f32   gamma * rsqrt(var + eps)
    shift_ref: (1, Cin)           f32   beta - mean * scale
    w_ref:     (9*Cin, Cout_pad)  bf16  taps flattened into K, lane-dense out
    b_ref:     (1, Cout_pad)      f32
    out_ref:   (H, W, Cout_pad)   f32
    pad_ref:   (H+2, W+2, Cin)    f32   VMEM scratch (zero halo + activations)
    slab_ref:  (H*W, 9*Cin)       f32   VMEM scratch (im2col slab)
    """
    H, W, Cin = x_ref.shape

    # ---- BN folded to scale/shift (one FMA) + ReLU ----
    x2 = x_ref[...].reshape(H * W, Cin)
    y = jnp.maximum(x2 * scale_ref[...] + shift_ref[...], 0.0)

    # ---- zero only the 1-pixel halo, write the interior directly ----
    zero_row = jnp.zeros((1, W + 2, Cin), pad_ref.dtype)
    pad_ref[0:1, :, :] = zero_row
    pad_ref[H + 1:H + 2, :, :] = zero_row
    zero_col = jnp.zeros((H, 1, Cin), pad_ref.dtype)
    pad_ref[1:H + 1, 0:1, :] = zero_col
    pad_ref[1:H + 1, W + 1:W + 2, :] = zero_col
    pad_ref[1:H + 1, 1:W + 1, :] = y.reshape(H, W, Cin)

    # ---- im2col: build (H*W, 9*Cin) slab, single fused-K MXU contraction ----
    for t in range(9):                       # static, unrolled taps
        dy, dx = t // 3, t % 3
        patch = pad_ref[dy:dy + H, dx:dx + W, :].reshape(H * W, Cin)
        slab_ref[:, t * Cin:(t + 1) * Cin] = patch

    acc = jnp.dot(slab_ref[...].astype(jnp.bfloat16), w_ref[...],
                  preferred_element_type=jnp.float32)       # (H*W, Cout_pad)
    acc = acc + b_ref[...]
    out_ref[...] = acc.reshape(out_ref.shape).astype(out_ref.dtype)


def _bn_fold(x_nhwc, gamma, beta):
    """Training-mode batch statistics folded to per-channel scale/shift."""
    mean = jnp.mean(x_nhwc, axis=(0, 1, 2))
    var = jnp.var(x_nhwc, axis=(0, 1, 2))       # biased variance (BN train mode)
    scale = gamma * lax.rsqrt(var + _EPS)
    shift = beta - mean * scale
    return scale, shift


def conv_block_apply(x_nhwc, gamma, beta, w_hwio, bias):
    """One BN+ReLU+Conv3x3 block: stats in XLA, normalize+conv in Pallas."""
    N, H, W, Cin = x_nhwc.shape
    Cout = w_hwio.shape[-1]
    Cp = _round_up(Cout, _LANE)                 # lane-dense output channels

    scale, shift = _bn_fold(x_nhwc, gamma, beta)
    scale = scale.reshape(1, Cin).astype(jnp.float32)
    shift = shift.reshape(1, Cin).astype(jnp.float32)

    # Weights: (3,3,Cin,Cout) -> (9*Cin, Cout_pad) bf16, taps row-major in K.
    w9 = w_hwio.reshape(9 * Cin, Cout)
    w_pad = jnp.pad(w9.astype(jnp.bfloat16), ((0, 0), (0, Cp - Cout)))
    b_pad = jnp.pad(bias.reshape(1, Cout).astype(jnp.float32),
                    ((0, 0), (0, Cp - Cout)))

    out = pl.pallas_call(
        _bn_relu_conv_kernel,
        out_shape=jax.ShapeDtypeStruct((N, H, W, Cp), jnp.float32),
        grid=(N,),
        in_specs=[
            pl.BlockSpec((None, H, W, Cin), lambda n: (n, 0, 0, 0)),
            pl.BlockSpec((1, Cin), lambda n: (0, 0)),
            pl.BlockSpec((1, Cin), lambda n: (0, 0)),
            pl.BlockSpec((9 * Cin, Cp), lambda n: (0, 0)),
            pl.BlockSpec((1, Cp), lambda n: (0, 0)),
        ],
        out_specs=pl.BlockSpec((None, H, W, Cp), lambda n: (n, 0, 0, 0)),
        scratch_shapes=[
            pltpu.VMEM((H + 2, W + 2, Cin), jnp.float32),   # padded activations
            pltpu.VMEM((H * W, 9 * Cin), jnp.float32),      # im2col slab
        ],
        compiler_params=pltpu.CompilerParams(
            dimension_semantics=("parallel",),
            vmem_limit_bytes=32 * 1024 * 1024,
        ),
    )(x_nhwc, scale, shift, w_pad, b_pad)

    return out[:, :, :, :Cout]


def init_dense_block_params(key, nums_conv, input_channels, output_channels):
    """Deterministic synthetic init matching the PyTorch module's parameter shapes."""
    params = []
    for i in range(nums_conv):
        cin = input_channels + output_channels * i
        key, kw, kb = jax.random.split(key, 3)
        fan_in = cin * 3 * 3
        bound = 1.0 / (fan_in ** 0.5)
        # conv weight stored HWIO: (3, 3, Cin, Cout)
        w = jax.random.uniform(kw, (3, 3, cin, output_channels), jnp.float32, -bound, bound)
        b = jax.random.uniform(kb, (output_channels,), jnp.float32, -bound, bound)
        gamma = jnp.ones((cin,), jnp.float32)   # BatchNorm2d default weight
        beta = jnp.zeros((cin,), jnp.float32)   # BatchNorm2d default bias
        params.append((gamma, beta, w, b))
    return params


def dense_block_forward(x_nchw, params):
    """DenseBlock.forward: each block's output is concatenated onto its input."""
    x = jnp.transpose(x_nchw, (0, 2, 3, 1))          # NCHW -> NHWC
    # TODO(synk): fuse the dense concat into one aliased (N,H,W,C_total) output
    # buffer (input_output_aliases) to avoid O(L^2) re-copy across layers.
    for gamma, beta, w, b in params:
        out = conv_block_apply(x, gamma, beta, w, b)
        x = jnp.concatenate([x, out], axis=-1)       # torch.cat(dim=1) in NHWC
    return jnp.transpose(x, (0, 3, 1, 2))            # NHWC -> NCHW


def _reference_forward(x_nchw, params):
    """Pure-JAX reference with the same math and mixed-precision policy
    (bf16 MXU operands, f32 accumulation) for validation."""
    x = jnp.transpose(x_nchw, (0, 2, 3, 1))
    for gamma, beta, w, b in params:
        scale, shift = _bn_fold(x, gamma, beta)
        xn = jnp.maximum(x * scale + shift, 0.0)
        out = lax.conv_general_dilated(
            xn.astype(jnp.bfloat16), w.astype(jnp.bfloat16),
            window_strides=(1, 1), padding="SAME",
            dimension_numbers=("NHWC", "HWIO", "NHWC"),
            preferred_element_type=jnp.float32) + b
        x = jnp.concatenate([x, out], axis=-1)
    return jnp.transpose(x, (0, 3, 1, 2))


if __name__ == "__main__":
    key = jax.random.PRNGKey(0)
    k_x, k_p = jax.random.split(key)

    # DenseBlock(nums_conv=2, input_channels=4, output_channels=4)
    nums_conv, input_channels, output_channels = 2, 4, 4
    N, H, W = 2, 16, 16

    x = jax.random.normal(k_x, (N, input_channels, H, W), jnp.float32)  # NCHW
    params = init_dense_block_params(k_p, nums_conv, input_channels, output_channels)

    y = jax.block_until_ready(jax.jit(dense_block_forward)(x, params))

    expected_channels = input_channels + nums_conv * output_channels
    assert y.shape == (N, expected_channels, H, W), y.shape

    y_ref = jax.block_until_ready(_reference_forward(x, params))
    max_err = float(jnp.max(jnp.abs(y - y_ref)))
    assert jnp.allclose(y, y_ref, atol=2e-2, rtol=2e-2), max_err

    print("KERNEL_OK")
</pallas_src>

<mosaic_0001>
module attributes {stable_mosaic.version = 11 : i64} {
  func.func @_bn_relu_conv_kernel(%arg0: i32, %arg1: memref<1x16x16x4xf32, #tpu.memory_space<vmem>>, %arg2: memref<1x4xf32, #tpu.memory_space<vmem>>, %arg3: memref<1x4xf32, #tpu.memory_space<vmem>>, %arg4: memref<36x128xbf16, #tpu.memory_space<vmem>>, %arg5: memref<1x128xf32, #tpu.memory_space<vmem>>, %arg6: memref<1x16x16x128xf32, #tpu.memory_space<vmem>>, %arg7: memref<18x18x4xf32, #tpu.memory_space<vmem>>, %arg8: memref<256x36xf32, #tpu.memory_space<vmem>>) attributes {dimension_semantics = [#tpu.dimension_semantics<parallel>], iteration_bounds = array<i64: 2>, scalar_prefetch = 0 : i64, scratch_operands = 2 : i64, tpu.core_type = #tpu.core_type<tc>, window_params = [{transform_indices = @transform_0, window_bounds = array<i64: 1, 16, 16, 4>}, {pipeline_mode = #tpu.pipeline_mode<synchronous>, transform_indices = @transform_1, window_bounds = array<i64: 1, 4>}, {pipeline_mode = #tpu.pipeline_mode<synchronous>, transform_indices = @transform_2, window_bounds = array<i64: 1, 4>}, {pipeline_mode = #tpu.pipeline_mode<synchronous>, transform_indices = @transform_3, window_bounds = array<i64: 36, 128>}, {pipeline_mode = #tpu.pipeline_mode<synchronous>, transform_indices = @transform_4, window_bounds = array<i64: 1, 128>}, {transform_indices = @transform_5, window_bounds = array<i64: 1, 16, 16, 128>}]} {
    %c0 = arith.constant 0 : index
    %c0_0 = arith.constant 0 : index
    %c0_1 = arith.constant 0 : index
    %c0_2 = arith.constant 0 : index
    %0 = vector.load %arg1[%c0, %c0_0, %c0_1, %c0_2] : memref<1x16x16x4xf32, #tpu.memory_space<vmem>>, vector<1x16x16x4xf32>
    %1 = vector.shape_cast %0 : vector<1x16x16x4xf32> to vector<16x16x4xf32>
    %2 = vector.shape_cast %1 : vector<16x16x4xf32> to vector<256x4xf32>
    %c0_3 = arith.constant 0 : index
    %c0_4 = arith.constant 0 : index
    %3 = vector.load %arg2[%c0_3, %c0_4] : memref<1x4xf32, #tpu.memory_space<vmem>>, vector<1x4xf32>
    %4 = vector.broadcast %3 : vector<1x4xf32> to vector<256x4xf32>
    %5 = arith.mulf %2, %4 : vector<256x4xf32>
    %c0_5 = arith.constant 0 : index
    %c0_6 = arith.constant 0 : index
    %6 = vector.load %arg3[%c0_5, %c0_6] : memref<1x4xf32, #tpu.memory_space<vmem>>, vector<1x4xf32>
    %7 = vector.broadcast %6 : vector<1x4xf32> to vector<256x4xf32>
    %8 = arith.addf %5, %7 : vector<256x4xf32>
    %cst = arith.constant 0.000000e+00 : f32
    %9 = vector.broadcast %cst : f32 to vector<256x4xf32>
    %10 = arith.maximumf %8, %9 : vector<256x4xf32>
    %cst_7 = arith.constant 0.000000e+00 : f32
    %11 = vector.broadcast %cst_7 : f32 to vector<1x18x4xf32>
    %c0_8 = arith.constant 0 : index
    %c0_9 = arith.constant 0 : index
    %c0_10 = arith.constant 0 : index
    %12 = vector.load %arg7[%c0_8, %c0_9, %c0_10] : memref<18x18x4xf32, #tpu.memory_space<vmem>>, vector<1x18x4xf32>
    tpu.vector_store %arg7[%c0_8, %c0_9, %c0_10], %11 {strides = array<i32>} : memref<18x18x4xf32, #tpu.memory_space<vmem>>, vector<1x18x4xf32>,
    %c17 = arith.constant 17 : index
    %c0_11 = arith.constant 0 : index
    %c0_12 = arith.constant 0 : index
    %13 = vector.load %arg7[%c17, %c0_11, %c0_12] : memref<18x18x4xf32, #tpu.memory_space<vmem>>, vector<1x18x4xf32>
    tpu.vector_store %arg7[%c17, %c0_11, %c0_12], %11 {strides = array<i32>} : memref<18x18x4xf32, #tpu.memory_space<vmem>>, vector<1x18x4xf32>,
    %cst_13 = arith.constant 0.000000e+00 : f32
    %14 = vector.broadcast %cst_13 : f32 to vector<16x1x4xf32>
    %c1 = arith.constant 1 : index
    %c0_14 = arith.constant 0 : index
    %c0_15 = arith.constant 0 : index
    %15 = vector.load %arg7[%c1, %c0_14, %c0_15] : memref<18x18x4xf32, #tpu.memory_space<vmem>>, vector<16x1x4xf32>
    tpu.vector_store %arg7[%c1, %c0_14, %c0_15], %14 {strides = array<i32>} : memref<18x18x4xf32, #tpu.memory_space<vmem>>, vector<16x1x4xf32>,
    %c1_16 = arith.constant 1 : index
    %c17_17 = arith.constant 17 : index
    %c0_18 = arith.constant 0 : index
    %16 = vector.load %arg7[%c1_16, %c17_17, %c0_18] : memref<18x18x4xf32, #tpu.memory_space<vmem>>, vector<16x1x4xf32>
    tpu.vector_store %arg7[%c1_16, %c17_17, %c0_18], %14 {strides = array<i32>} : memref<18x18x4xf32, #tpu.memory_space<vmem>>, vector<16x1x4xf32>,
    %17 = vector.shape_cast %10 : vector<256x4xf32> to vector<16x16x4xf32>
    %c1_19 = arith.constant 1 : index
    %c1_20 = arith.constant 1 : index
    %c0_21 = arith.constant 0 : index
    %18 = vector.load %arg7[%c1_19, %c1_20, %c0_21] : memref<18x18x4xf32, #tpu.memory_space<vmem>>, vector<16x16x4xf32>
    tpu.vector_store %arg7[%c1_19, %c1_20, %c0_21], %17 {strides = array<i32>} : memref<18x18x4xf32, #tpu.memory_space<vmem>>, vector<16x16x4xf32>,
    %c0_22 = arith.constant 0 : index
    %c0_23 = arith.constant 0 : index
    %c0_24 = arith.constant 0 : index
    %19 = vector.load %arg7[%c0_22, %c0_23, %c0_24] : memref<18x18x4xf32, #tpu.memory_space<vmem>>, vector<16x16x4xf32>
    %20 = vector.shape_cast %19 : vector<16x16x4xf32> to vector<256x4xf32>
    %c0_25 = arith.constant 0 : index
    %c0_26 = arith.constant 0 : index
    %21 = vector.load %arg8[%c0_25, %c0_26] : memref<256x36xf32, #tpu.memory_space<vmem>>, vector<256x4xf32>
    tpu.vector_store %arg8[%c0_25, %c0_26], %20 {strides = array<i32>} : memref<256x36xf32, #tpu.memory_space<vmem>>, vector<256x4xf32>,
    %c0_27 = arith.constant 0 : index
    %c1_28 = arith.constant 1 : index
    %c0_29 = arith.constant 0 : index
    %22 = vector.load %arg7[%c0_27, %c1_28, %c0_29] : memref<18x18x4xf32, #tpu.memory_space<vmem>>, vector<16x16x4xf32>
    %23 = vector.shape_cast %22 : vector<16x16x4xf32> to vector<256x4xf32>
    %c0_30 = arith.constant 0 : index
    %c4 = arith.constant 4 : index
    %24 = vector.load %arg8[%c0_30, %c4] : memref<256x36xf32, #tpu.memory_space<vmem>>, vector<256x4xf32>
    tpu.vector_store %arg8[%c0_30, %c4], %23 {strides = array<i32>} : memref<256x36xf32, #tpu.memory_space<vmem>>, vector<256x4xf32>,
    %c0_31 = arith.constant 0 : index
    %c2 = arith.constant 2 : index
    %c0_32 = arith.constant 0 : index
    %25 = vector.load %arg7[%c0_31, %c2, %c0_32] : memref<18x18x4xf32, #tpu.memory_space<vmem>>, vector<16x16x4xf32>
    %26 = vector.shape_cast %25 : vector<16x16x4xf32> to vector<256x4xf32>
    %c0_33 = arith.constant 0 : index
    %c8 = arith.constant 8 : index
    %27 = vector.load %arg8[%c0_33, %c8] : memref<256x36xf32, #tpu.memory_space<vmem>>, vector<256x4xf32>
    tpu.vector_store %arg8[%c0_33, %c8], %26 {strides = array<i32>} : memref<256x36xf32, #tpu.memory_space<vmem>>, vector<256x4xf32>,
    %c1_34 = arith.constant 1 : index
    %c0_35 = arith.constant 0 : index
    %c0_36 = arith.constant 0 : index
    %28 = vector.load %arg7[%c1_34, %c0_35, %c0_36] : memref<18x18x4xf32, #tpu.memory_space<vmem>>, vector<16x16x4xf32>
    %29 = vector.shape_cast %28 : vector<16x16x4xf32> to vector<256x4xf32>
    %c0_37 = arith.constant 0 : index
    %c12 = arith.constant 12 : index
    %30 = vector.load %arg8[%c0_37, %c12] : memref<256x36xf32, #tpu.memory_space<vmem>>, vector<256x4xf32>
    tpu.vector_store %arg8[%c0_37, %c12], %29 {strides = array<i32>} : memref<256x36xf32, #tpu.memory_space<vmem>>, vector<256x4xf32>,
    %c1_38 = arith.constant 1 : index
    %c1_39 = arith.constant 1 : index
    %c0_40 = arith.constant 0 : index
    %31 = vector.load %arg7[%c1_38, %c1_39, %c0_40] : memref<18x18x4xf32, #tpu.memory_space<vmem>>, vector<16x16x4xf32>
    %32 = vector.shape_cast %31 : vector<16x16x4xf32> to vector<256x4xf32>
    %c0_41 = arith.constant 0 : index
    %c16 = arith.constant 16 : index
    %33 = vector.load %arg8[%c0_41, %c16] : memref<256x36xf32, #tpu.memory_space<vmem>>, vector<256x4xf32>
    tpu.vector_store %arg8[%c0_41, %c16], %32 {strides = array<i32>} : memref<256x36xf32, #tpu.memory_space<vmem>>, vector<256x4xf32>,
    %c1_42 = arith.constant 1 : index
    %c2_43 = arith.constant 2 : index
    %c0_44 = arith.constant 0 : index
    %34 = vector.load %arg7[%c1_42, %c2_43, %c0_44] : memref<18x18x4xf32, #tpu.memory_space<vmem>>, vector<16x16x4xf32>
    %35 = vector.shape_cast %34 : vector<16x16x4xf32> to vector<256x4xf32>
    %c0_45 = arith.constant 0 : index
    %c20 = arith.constant 20 : index
    %36 = vector.load %arg8[%c0_45, %c20] : memref<256x36xf32, #tpu.memory_space<vmem>>, vector<256x4xf32>
    tpu.vector_store %arg8[%c0_45, %c20], %35 {strides = array<i32>} : memref<256x36xf32, #tpu.memory_space<vmem>>, vector<256x4xf32>,
    %c2_46 = arith.constant 2 : index
    %c0_47 = arith.constant 0 : index
    %c0_48 = arith.constant 0 : index
    %37 = vector.load %arg7[%c2_46, %c0_47, %c0_48] : memref<18x18x4xf32, #tpu.memory_space<vmem>>, vector<16x16x4xf32>
    %38 = vector.shape_cast %37 : vector<16x16x4xf32> to vector<256x4xf32>
    %c0_49 = arith.constant 0 : index
    %c24 = arith.constant 24 : index
    %39 = vector.load %arg8[%c0_49, %c24] : memref<256x36xf32, #tpu.memory_space<vmem>>, vector<256x4xf32>
    tpu.vector_store %arg8[%c0_49, %c24], %38 {strides = array<i32>} : memref<256x36xf32, #tpu.memory_space<vmem>>, vector<256x4xf32>,
    %c2_50 = arith.constant 2 : index
    %c1_51 = arith.constant 1 : index
    %c0_52 = arith.constant 0 : index
    %40 = vector.load %arg7[%c2_50, %c1_51, %c0_52] : memref<18x18x4xf32, #tpu.memory_space<vmem>>, vector<16x16x4xf32>
    %41 = vector.shape_cast %40 : vector<16x16x4xf32> to vector<256x4xf32>
    %c0_53 = arith.constant 0 : index
    %c28 = arith.constant 28 : index
    %42 = vector.load %arg8[%c0_53, %c28] : memref<256x36xf32, #tpu.memory_space<vmem>>, vector<256x4xf32>
    tpu.vector_store %arg8[%c0_53, %c28], %41 {strides = array<i32>} : memref<256x36xf32, #tpu.memory_space<vmem>>, vector<256x4xf32>,
    %c2_54 = arith.constant 2 : index
    %c2_55 = arith.constant 2 : index
    %c0_56 = arith.constant 0 : index
    %43 = vector.load %arg7[%c2_54, %c2_55, %c0_56] : memref<18x18x4xf32, #tpu.memory_space<vmem>>, vector<16x16x4xf32>
    %44 = vector.shape_cast %43 : vector<16x16x4xf32> to vector<256x4xf32>
    %c0_57 = arith.constant 0 : index
    %c32 = arith.constant 32 : index
    %45 = vector.load %arg8[%c0_57, %c32] : memref<256x36xf32, #tpu.memory_space<vmem>>, vector<256x4xf32>
    tpu.vector_store %arg8[%c0_57, %c32], %44 {strides = array<i32>} : memref<256x36xf32, #tpu.memory_space<vmem>>, vector<256x4xf32>,
    %c0_58 = arith.constant 0 : index
    %c0_59 = arith.constant 0 : index
    %46 = vector.load %arg8[%c0_58, %c0_59] : memref<256x36xf32, #tpu.memory_space<vmem>>, vector<256x36xf32>
    %47 = arith.truncf %46 : vector<256x36xf32> to vector<256x36xbf16>
    %c0_60 = arith.constant 0 : index
    %c0_61 = arith.constant 0 : index
    %48 = vector.load %arg4[%c0_60, %c0_61] : memref<36x128xbf16, #tpu.memory_space<vmem>>, vector<36x128xbf16>
    %cst_62 = arith.constant dense<0.000000e+00> : vector<256x128xf32>
    %49 = tpu.matmul %47, %48, %cst_62 {dimension_numbers = #tpu.dot_dimension_numbers<[1], [0], [0], [1], [0, 0, 1, 1], [], []>} : vector<256x36xbf16>, vector<36x128xbf16>, vector<256x128xf32> -> vector<256x128xf32>
    %c0_63 = arith.constant 0 : index
    %c0_64 = arith.constant 0 : index
    %50 = vector.load %arg5[%c0_63, %c0_64] : memref<1x128xf32, #tpu.memory_space<vmem>>, vector<1x128xf32>
    %51 = vector.broadcast %50 : vector<1x128xf32> to vector<256x128xf32>
    %52 = arith.addf %49, %51 : vector<256x128xf32>
    %53 = vector.shape_cast %52 : vector<256x128xf32> to vector<16x16x128xf32>
    %c0_65 = arith.constant 0 : index
    %c0_66 = arith.constant 0 : index
    %c0_67 = arith.constant 0 : index
    %c0_68 = arith.constant 0 : index
    %54 = vector.load %arg6[%c0_65, %c0_66, %c0_67, %c0_68] : memref<1x16x16x128xf32, #tpu.memory_space<vmem>>, vector<1x16x16x128xf32>
    %55 = vector.shape_cast %54 : vector<1x16x16x128xf32> to vector<16x16x128xf32>
    %56 = vector.shape_cast %53 : vector<16x16x128xf32> to vector<1x16x16x128xf32>
    tpu.vector_store %arg6[%c0_65, %c0_66, %c0_67, %c0_68], %56 {strides = array<i32>} : memref<1x16x16x128xf32, #tpu.memory_space<vmem>>, vector<1x16x16x128xf32>,
    return
  }
  func.func @transform_0(%arg0: i32) -> (i32, i32, i32, i32) {
    %c0_i32 = arith.constant 0 : i32
    %c0_i32_0 = arith.constant 0 : i32
    %c0_i32_1 = arith.constant 0 : i32
    %c0_i32_2 = arith.constant 0 : i32
    return %arg0, %c0_i32, %c0_i32_0, %c0_i32_1 : i32, i32, i32, i32
  }
  func.func @transform_1(%arg0: i32) -> (i32, i32) {
    %c0_i32 = arith.constant 0 : i32
    %c0_i32_0 = arith.constant 0 : i32
    %c0_i32_1 = arith.constant 0 : i32
    return %c0_i32, %c0_i32_0 : i32, i32
  }
  func.func @transform_2(%arg0: i32) -> (i32, i32) {
    %c0_i32 = arith.constant 0 : i32
    %c0_i32_0 = arith.constant 0 : i32
    %c0_i32_1 = arith.constant 0 : i32
    return %c0_i32, %c0_i32_0 : i32, i32
  }
  func.func @transform_3(%arg0: i32) -> (i32, i32) {
    %c0_i32 = arith.constant 0 : i32
    %c0_i32_0 = arith.constant 0 : i32
    %c0_i32_1 = arith.constant 0 : i32
    return %c0_i32, %c0_i32_0 : i32, i32
  }
  func.func @transform_4(%arg0: i32) -> (i32, i32) {
    %c0_i32 = arith.constant 0 : i32
    %c0_i32_0 = arith.constant 0 : i32
    %c0_i32_1 = arith.constant 0 : i32
    return %c0_i32, %c0_i32_0 : i32, i32
  }
  func.func @transform_5(%arg0: i32) -> (i32, i32, i32, i32) {
    %c0_i32 = arith.constant 0 : i32
    %c0_i32_0 = arith.constant 0 : i32
    %c0_i32_1 = arith.constant 0 : i32
    %c0_i32_2 = arith.constant 0 : i32
    return %arg0, %c0_i32, %c0_i32_0, %c0_i32_1 : i32, i32, i32, i32
  }
}

module attributes {stable_mosaic.version = 11 : i64} {
  func.func @_bn_relu_conv_kernel(%arg0: i32, %arg1: memref<1x16x16x8xf32, #tpu.memory_space<vmem>>, %arg2: memref<1x8xf32, #tpu.memory_space<vmem>>, %arg3: memref<1x8xf32, #tpu.memory_space<vmem>>, %arg4: memref<72x128xbf16, #tpu.memory_space<vmem>>, %arg5: memref<1x128xf32, #tpu.memory_space<vmem>>, %arg6: memref<1x16x16x128xf32, #tpu.memory_space<vmem>>, %arg7: memref<18x18x8xf32, #tpu.memory_space<vmem>>, %arg8: memref<256x72xf32, #tpu.memory_space<vmem>>) attributes {dimension_semantics = [#tpu.dimension_semantics<parallel>], iteration_bounds = array<i64: 2>, scalar_prefetch = 0 : i64, scratch_operands = 2 : i64, tpu.core_type = #tpu.core_type<tc>, window_params = [{transform_indices = @transform_0, window_bounds = array<i64: 1, 16, 16, 8>}, {pipeline_mode = #tpu.pipeline_mode<synchronous>, transform_indices = @transform_1, window_bounds = array<i64: 1, 8>}, {pipeline_mode = #tpu.pipeline_mode<synchronous>, transform_indices = @transform_2, window_bounds = array<i64: 1, 8>}, {pipeline_mode = #tpu.pipeline_mode<synchronous>, transform_indices = @transform_3, window_bounds = array<i64: 72, 128>}, {pipeline_mode = #tpu.pipeline_mode<synchronous>, transform_indices = @transform_4, window_bounds = array<i64: 1, 128>}, {transform_indices = @transform_5, window_bounds = array<i64: 1, 16, 16, 128>}]} {
    %c0 = arith.constant 0 : index
    %c0_0 = arith.constant 0 : index
    %c0_1 = arith.constant 0 : index
    %c0_2 = arith.constant 0 : index
    %0 = vector.load %arg1[%c0, %c0_0, %c0_1, %c0_2] : memref<1x16x16x8xf32, #tpu.memory_space<vmem>>, vector<1x16x16x8xf32>
    %1 = vector.shape_cast %0 : vector<1x16x16x8xf32> to vector<16x16x8xf32>
    %2 = vector.shape_cast %1 : vector<16x16x8xf32> to vector<256x8xf32>
    %c0_3 = arith.constant 0 : index
    %c0_4 = arith.constant 0 : index
    %3 = vector.load %arg2[%c0_3, %c0_4] : memref<1x8xf32, #tpu.memory_space<vmem>>, vector<1x8xf32>
    %4 = vector.broadcast %3 : vector<1x8xf32> to vector<256x8xf32>
    %5 = arith.mulf %2, %4 : vector<256x8xf32>
    %c0_5 = arith.constant 0 : index
    %c0_6 = arith.constant 0 : index
    %6 = vector.load %arg3[%c0_5, %c0_6] : memref<1x8xf32, #tpu.memory_space<vmem>>, vector<1x8xf32>
    %7 = vector.broadcast %6 : vector<1x8xf32> to vector<256x8xf32>
    %8 = arith.addf %5, %7 : vector<256x8xf32>
    %cst = arith.constant 0.000000e+00 : f32
    %9 = vector.broadcast %cst : f32 to vector<256x8xf32>
    %10 = arith.maximumf %8, %9 : vector<256x8xf32>
    %cst_7 = arith.constant 0.000000e+00 : f32
    %11 = vector.broadcast %cst_7 : f32 to vector<1x18x8xf32>
    %c0_8 = arith.constant 0 : index
    %c0_9 = arith.constant 0 : index
    %c0_10 = arith.constant 0 : index
    %12 = vector.load %arg7[%c0_8, %c0_9, %c0_10] : memref<18x18x8xf32, #tpu.memory_space<vmem>>, vector<1x18x8xf32>
    tpu.vector_store %arg7[%c0_8, %c0_9, %c0_10], %11 {strides = array<i32>} : memref<18x18x8xf32, #tpu.memory_space<vmem>>, vector<1x18x8xf32>,
    %c17 = arith.constant 17 : index
    %c0_11 = arith.constant 0 : index
    %c0_12 = arith.constant 0 : index
    %13 = vector.load %arg7[%c17, %c0_11, %c0_12] : memref<18x18x8xf32, #tpu.memory_space<vmem>>, vector<1x18x8xf32>
    tpu.vector_store %arg7[%c17, %c0_11, %c0_12], %11 {strides = array<i32>} : memref<18x18x8xf32, #tpu.memory_space<vmem>>, vector<1x18x8xf32>,
    %cst_13 = arith.constant 0.000000e+00 : f32
    %14 = vector.broadcast %cst_13 : f32 to vector<16x1x8xf32>
    %c1 = arith.constant 1 : index
    %c0_14 = arith.constant 0 : index
    %c0_15 = arith.constant 0 : index
    %15 = vector.load %arg7[%c1, %c0_14, %c0_15] : memref<18x18x8xf32, #tpu.memory_space<vmem>>, vector<16x1x8xf32>
    tpu.vector_store %arg7[%c1, %c0_14, %c0_15], %14 {strides = array<i32>} : memref<18x18x8xf32, #tpu.memory_space<vmem>>, vector<16x1x8xf32>,
    %c1_16 = arith.constant 1 : index
    %c17_17 = arith.constant 17 : index
    %c0_18 = arith.constant 0 : index
    %16 = vector.load %arg7[%c1_16, %c17_17, %c0_18] : memref<18x18x8xf32, #tpu.memory_space<vmem>>, vector<16x1x8xf32>
    tpu.vector_store %arg7[%c1_16, %c17_17, %c0_18], %14 {strides = array<i32>} : memref<18x18x8xf32, #tpu.memory_space<vmem>>, vector<16x1x8xf32>,
    %17 = vector.shape_cast %10 : vector<256x8xf32> to vector<16x16x8xf32>
    %c1_19 = arith.constant 1 : index
    %c1_20 = arith.constant 1 : index
    %c0_21 = arith.constant 0 : index
    %18 = vector.load %arg7[%c1_19, %c1_20, %c0_21] : memref<18x18x8xf32, #tpu.memory_space<vmem>>, vector<16x16x8xf32>
    tpu.vector_store %arg7[%c1_19, %c1_20, %c0_21], %17 {strides = array<i32>} : memref<18x18x8xf32, #tpu.memory_space<vmem>>, vector<16x16x8xf32>,
    %c0_22 = arith.constant 0 : index
    %c0_23 = arith.constant 0 : index
    %c0_24 = arith.constant 0 : index
    %19 = vector.load %arg7[%c0_22, %c0_23, %c0_24] : memref<18x18x8xf32, #tpu.memory_space<vmem>>, vector<16x16x8xf32>
    %20 = vector.shape_cast %19 : vector<16x16x8xf32> to vector<256x8xf32>
    %c0_25 = arith.constant 0 : index
    %c0_26 = arith.constant 0 : index
    %21 = vector.load %arg8[%c0_25, %c0_26] : memref<256x72xf32, #tpu.memory_space<vmem>>, vector<256x8xf32>
    tpu.vector_store %arg8[%c0_25, %c0_26], %20 {strides = array<i32>} : memref<256x72xf32, #tpu.memory_space<vmem>>, vector<256x8xf32>,
    %c0_27 = arith.constant 0 : index
    %c1_28 = arith.constant 1 : index
    %c0_29 = arith.constant 0 : index
    %22 = vector.load %arg7[%c0_27, %c1_28, %c0_29] : memref<18x18x8xf32, #tpu.memory_space<vmem>>, vector<16x16x8xf32>
    %23 = vector.shape_cast %22 : vector<16x16x8xf32> to vector<256x8xf32>
    %c0_30 = arith.constant 0 : index
    %c8 = arith.constant 8 : index
    %24 = vector.load %arg8[%c0_30, %c8] : memref<256x72xf32, #tpu.memory_space<vmem>>, vector<256x8xf32>
    tpu.vector_store %arg8[%c0_30, %c8], %23 {strides = array<i32>} : memref<256x72xf32, #tpu.memory_space<vmem>>, vector<256x8xf32>,
    %c0_31 = arith.constant 0 : index
    %c2 = arith.constant 2 : index
    %c0_32 = arith.constant 0 : index
    %25 = vector.load %arg7[%c0_31, %c2, %c0_32] : memref<18x18x8xf32, #tpu.memory_space<vmem>>, vector<16x16x8xf32>
    %26 = vector.shape_cast %25 : vector<16x16x8xf32> to vector<256x8xf32>
    %c0_33 = arith.constant 0 : index
    %c16 = arith.constant 16 : index
    %27 = vector.load %arg8[%c0_33, %c16] : memref<256x72xf32, #tpu.memory_space<vmem>>, vector<256x8xf32>
    tpu.vector_store %arg8[%c0_33, %c16], %26 {strides = array<i32>} : memref<256x72xf32, #tpu.memory_space<vmem>>, vector<256x8xf32>,
    %c1_34 = arith.constant 1 : index
    %c0_35 = arith.constant 0 : index
    %c0_36 = arith.constant 0 : index
    %28 = vector.load %arg7[%c1_34, %c0_35, %c0_36] : memref<18x18x8xf32, #tpu.memory_space<vmem>>, vector<16x16x8xf32>
    %29 = vector.shape_cast %28 : vector<16x16x8xf32> to vector<256x8xf32>
    %c0_37 = arith.constant 0 : index
    %c24 = arith.constant 24 : index
    %30 = vector.load %arg8[%c0_37, %c24] : memref<256x72xf32, #tpu.memory_space<vmem>>, vector<256x8xf32>
    tpu.vector_store %arg8[%c0_37, %c24], %29 {strides = array<i32>} : memref<256x72xf32, #tpu.memory_space<vmem>>, vector<256x8xf32>,
    %c1_38 = arith.constant 1 : index
    %c1_39 = arith.constant 1 : index
    %c0_40 = arith.constant 0 : index
    %31 = vector.load %arg7[%c1_38, %c1_39, %c0_40] : memref<18x18x8xf32, #tpu.memory_space<vmem>>, vector<16x16x8xf32>
    %32 = vector.shape_cast %31 : vector<16x16x8xf32> to vector<256x8xf32>
    %c0_41 = arith.constant 0 : index
    %c32 = arith.constant 32 : index
    %33 = vector.load %arg8[%c0_41, %c32] : memref<256x72xf32, #tpu.memory_space<vmem>>, vector<256x8xf32>
    tpu.vector_store %arg8[%c0_41, %c32], %32 {strides = array<i32>} : memref<256x72xf32, #tpu.memory_space<vmem>>, vector<256x8xf32>,
    %c1_42 = arith.constant 1 : index
    %c2_43 = arith.constant 2 : index
    %c0_44 = arith.constant 0 : index
    %34 = vector.load %arg7[%c1_42, %c2_43, %c0_44] : memref<18x18x8xf32, #tpu.memory_space<vmem>>, vector<16x16x8xf32>
    %35 = vector.shape_cast %34 : vector<16x16x8xf32> to vector<256x8xf32>
    %c0_45 = arith.constant 0 : index
    %c40 = arith.constant 40 : index
    %36 = vector.load %arg8[%c0_45, %c40] : memref<256x72xf32, #tpu.memory_space<vmem>>, vector<256x8xf32>
    tpu.vector_store %arg8[%c0_45, %c40], %35 {strides = array<i32>} : memref<256x72xf32, #tpu.memory_space<vmem>>, vector<256x8xf32>,
    %c2_46 = arith.constant 2 : index
    %c0_47 = arith.constant 0 : index
    %c0_48 = arith.constant 0 : index
    %37 = vector.load %arg7[%c2_46, %c0_47, %c0_48] : memref<18x18x8xf32, #tpu.memory_space<vmem>>, vector<16x16x8xf32>
    %38 = vector.shape_cast %37 : vector<16x16x8xf32> to vector<256x8xf32>
    %c0_49 = arith.constant 0 : index
    %c48 = arith.constant 48 : index
    %39 = vector.load %arg8[%c0_49, %c48] : memref<256x72xf32, #tpu.memory_space<vmem>>, vector<256x8xf32>
    tpu.vector_store %arg8[%c0_49, %c48], %38 {strides = array<i32>} : memref<256x72xf32, #tpu.memory_space<vmem>>, vector<256x8xf32>,
    %c2_50 = arith.constant 2 : index
    %c1_51 = arith.constant 1 : index
    %c0_52 = arith.constant 0 : index
    %40 = vector.load %arg7[%c2_50, %c1_51, %c0_52] : memref<18x18x8xf32, #tpu.memory_space<vmem>>, vector<16x16x8xf32>
    %41 = vector.shape_cast %40 : vector<16x16x8xf32> to vector<256x8xf32>
    %c0_53 = arith.constant 0 : index
    %c56 = arith.constant 56 : index
    %42 = vector.load %arg8[%c0_53, %c56] : memref<256x72xf32, #tpu.memory_space<vmem>>, vector<256x8xf32>
    tpu.vector_store %arg8[%c0_53, %c56], %41 {strides = array<i32>} : memref<256x72xf32, #tpu.memory_space<vmem>>, vector<256x8xf32>,
    %c2_54 = arith.constant 2 : index
    %c2_55 = arith.constant 2 : index
    %c0_56 = arith.constant 0 : index
    %43 = vector.load %arg7[%c2_54, %c2_55, %c0_56] : memref<18x18x8xf32, #tpu.memory_space<vmem>>, vector<16x16x8xf32>
    %44 = vector.shape_cast %43 : vector<16x16x8xf32> to vector<256x8xf32>
    %c0_57 = arith.constant 0 : index
    %c64 = arith.constant 64 : index
    %45 = vector.load %arg8[%c0_57, %c64] : memref<256x72xf32, #tpu.memory_space<vmem>>, vector<256x8xf32>
    tpu.vector_store %arg8[%c0_57, %c64], %44 {strides = array<i32>} : memref<256x72xf32, #tpu.memory_space<vmem>>, vector<256x8xf32>,
    %c0_58 = arith.constant 0 : index
    %c0_59 = arith.constant 0 : index
    %46 = vector.load %arg8[%c0_58, %c0_59] : memref<256x72xf32, #tpu.memory_space<vmem>>, vector<256x72xf32>
    %47 = arith.truncf %46 : vector<256x72xf32> to vector<256x72xbf16>
    %c0_60 = arith.constant 0 : index
    %c0_61 = arith.constant 0 : index
    %48 = vector.load %arg4[%c0_60, %c0_61] : memref<72x128xbf16, #tpu.memory_space<vmem>>, vector<72x128xbf16>
    %cst_62 = arith.constant dense<0.000000e+00> : vector<256x128xf32>
    %49 = tpu.matmul %47, %48, %cst_62 {dimension_numbers = #tpu.dot_dimension_numbers<[1], [0], [0], [1], [0, 0, 1, 1], [], []>} : vector<256x72xbf16>, vector<72x128xbf16>, vector<256x128xf32> -> vector<256x128xf32>
    %c0_63 = arith.constant 0 : index
    %c0_64 = arith.constant 0 : index
    %50 = vector.load %arg5[%c0_63, %c0_64] : memref<1x128xf32, #tpu.memory_space<vmem>>, vector<1x128xf32>
    %51 = vector.broadcast %50 : vector<1x128xf32> to vector<256x128xf32>
    %52 = arith.addf %49, %51 : vector<256x128xf32>
    %53 = vector.shape_cast %52 : vector<256x128xf32> to vector<16x16x128xf32>
    %c0_65 = arith.constant 0 : index
    %c0_66 = arith.constant 0 : index
    %c0_67 = arith.constant 0 : index
    %c0_68 = arith.constant 0 : index
    %54 = vector.load %arg6[%c0_65, %c0_66, %c0_67, %c0_68] : memref<1x16x16x128xf32, #tpu.memory_space<vmem>>, vector<1x16x16x128xf32>
    %55 = vector.shape_cast %54 : vector<1x16x16x128xf32> to vector<16x16x128xf32>
    %56 = vector.shape_cast %53 : vector<16x16x128xf32> to vector<1x16x16x128xf32>
    tpu.vector_store %arg6[%c0_65, %c0_66, %c0_67, %c0_68], %56 {strides = array<i32>} : memref<1x16x16x128xf32, #tpu.memory_space<vmem>>, vector<1x16x16x128xf32>,
    return
  }
  func.func @transform_0(%arg0: i32) -> (i32, i32, i32, i32) {
    %c0_i32 = arith.constant 0 : i32
    %c0_i32_0 = arith.constant 0 : i32
    %c0_i32_1 = arith.constant 0 : i32
    %c0_i32_2 = arith.constant 0 : i32
    return %arg0, %c0_i32, %c0_i32_0, %c0_i32_1 : i32, i32, i32, i32
  }
  func.func @transform_1(%arg0: i32) -> (i32, i32) {
    %c0_i32 = arith.constant 0 : i32
    %c0_i32_0 = arith.constant 0 : i32
    %c0_i32_1 = arith.constant 0 : i32
    return %c0_i32, %c0_i32_0 : i32, i32
  }
  func.func @transform_2(%arg0: i32) -> (i32, i32) {
    %c0_i32 = arith.constant 0 : i32
    %c0_i32_0 = arith.constant 0 : i32
    %c0_i32_1 = arith.constant 0 : i32
    return %c0_i32, %c0_i32_0 : i32, i32
  }
  func.func @transform_3(%arg0: i32) -> (i32, i32) {
    %c0_i32 = arith.constant 0 : i32
    %c0_i32_0 = arith.constant 0 : i32
    %c0_i32_1 = arith.constant 0 : i32
    return %c0_i32, %c0_i32_0 : i32, i32
  }
  func.func @transform_4(%arg0: i32) -> (i32, i32) {
    %c0_i32 = arith.constant 0 : i32
    %c0_i32_0 = arith.constant 0 : i32
    %c0_i32_1 = arith.constant 0 : i32
    return %c0_i32, %c0_i32_0 : i32, i32
  }
  func.func @transform_5(%arg0: i32) -> (i32, i32, i32, i32) {
    %c0_i32 = arith.constant 0 : i32
    %c0_i32_0 = arith.constant 0 : i32
    %c0_i32_1 = arith.constant 0 : i32
    %c0_i32_2 = arith.constant 0 : i32
    return %arg0, %c0_i32, %c0_i32_0, %c0_i32_1 : i32, i32, i32, i32
  }
}

</mosaic_0001>

<bundles_post_ra>
// kernel: dense_block_forward.2
= control target key start
LH: loop header
LB: loop body
LE: loop exit
PB: predicated region body
PF: predicated region fallthrough
CT: control target
= control target key end

     0   :  { %s2462_s18 = smov 0   ;;  %s3697_s0 = inlined_call_operand.vmem [shape: f32[2,16,16,4], index: 0, kind: input, shape index: {}]   ;;  %s3698_s1 = inlined_call_operand.vmem [shape: f32[1,4], index: 1, kind: input, shape index: {}]   ;;  %s3699_s2 = inlined_call_operand.vmem [shape: f32[1,4], index: 2, kind: input, shape index: {}]   ;;  %s3700_s3 = inlined_call_operand.vmem [shape: bf16[36,128], index: 3, kind: input, shape index: {}]   ;;  %s3701_s4 = inlined_call_operand.vmem [shape: f32[1,128], index: 4, kind: input, shape index: {}]   ;;  %s3702_s5 = inlined_call_operand.vmem [shape: f32[2,16,16,128], index: 5, kind: output, shape index: {}]  }
   0x1 LB: > { %s2347_s19 = sadd.s32 4294967295, %s2421_s18   ;;  %p2351_p0 = scmp.ge.s32.totalorder %s2421_s18, 1  ;;  %s2421_s18 = sphi %s2462_s18, %s15_s18  }
   0x2   : > { %p187_p1 = scmp.lt.s32.totalorder %s2421_s18, 3 }
   0x4   : > { %p188_p2 = pnand %p2351_p0, %p187_p1 }
   0x6   : > { %191 = sbr.rel (%p188_p2) target bundleno = 965 (0x3c5), region = 40 }
   0xb   : > { %vm362_vm0 = vcmask 31744   ;;  %p215_p3 = scmp.lt.s32.totalorder %s2347_s19, 1  ;;  %v2423_v0 = vmov 0.0   ;;  %vm365_vm1 = vcmask 25600   ;;  %v2481_v1 = vld [vmem:[%s3698_s1] ss:$0 sm:$0xff] }
   0xc   : > { %363 = vst.msk [vmem:[#allocation2] sm:$0xff] %vm362_vm0, %v2423_v0  ;;  %v2497_v2 = vld [vmem:[%s3699_s2] ss:$0 sm:$0xff]  ;;  %s2424_s28 = smov 4   ;;  %vm372_vm2 = vcmask 24576   ;;  %s2425_s29 = smov 8  }
   0xd   : > { %364 = vst.msk [vmem:[#allocation2 + $0x8] sm:$0xff] %vm362_vm0, %v2423_v0  ;;  %s3740_s19 = smov (!%p215_p3, %s2347_s19), 1  ;;  %vm661_vm3 = vcmask 64544   ;;  %s2426_s30 = smov 12   ;;  %vm854_vm4 = vcmask 97344   ;;  %vm1047_vm5 = vcmask 130144  }
   0xe   : > { %368 = vst.msk [vmem:[#allocation2 + $0x198] sm:$0xff] %vm362_vm0, %v2423_v0  ;;  %s2382_s22 = sshll.u32 %s3740_s19, 8  ;;  %s2427_s6 = smov 16   ;;  %vm1240_vm6 = vcmask 162944   ;;  %vm1433_vm7 = vcmask 195744   ;;  %vm1627_vm8 = vcmask 228544  }
   0xf   : > { %369 = vst.msk [vmem:[#allocation2 + $0x1a0] sm:$0xff] %vm362_vm0, %v2423_v0  ;;  %s2492_s25 = scalar_lea.vmem %s3697_s0, %s2382_s22  ;;  %s2428_s7 = smov 20   ;;  %vm2167_vm9 = vcmask 1041408   ;;  %vm1820_vm10 = vcmask 261344   ;;  %vm2013_vm11 = vcmask 294144   ;;  %vm2118_vm12 = vcmask 293888  }
  0x10   : > { %366 = vst.msk [vmem:[#allocation2 + $0x10] sm:$0x3] %vm365_vm1, %v2423_v0  ;;  %v226_v3 = vld [vmem:[%s2492_s25] sm:$0xff]  ;;  %v227_v5 = vld [vmem:[%s2492_s25 + $0x8] sm:$0xff]  ;;  %v233_v9 = vld [vmem:[%s2492_s25 + $0x38] sm:$0xff]  ;;  %s2429_s8 = smov 24   ;;  %s3607_s24 = scalar_lea.vmem %s3702_s5, %s2382_s22 }
  0x11   : > { %370 = vst.msk [vmem:[#allocation2 + $0x1a8] sm:$0x3] %vm365_vm1, %v2423_v0  ;;  %v230_v4 = vld [vmem:[%s2492_s25 + $0x20] sm:$0xff]  ;;  %v262_v6 = vmul.f32 %v2481_v1, %v226_v3  ;;  %v263_v8 = vmul.f32 %v2481_v1, %v227_v5  ;;  %v231_v10 = vld [vmem:[%s2492_s25 + $0x28] sm:$0xff]  ;;  %v236_v11 = vld [vmem:[%s2492_s25 + $0x50] sm:$0xff]  ;;  %v269_v12 = vmul.f32 %v2481_v1, %v233_v9  ;;  %s2430_s9 = smov 28  }
  0x12   : > { %v266_v7 = vmul.f32 %v2481_v1, %v230_v4  ;;  %v267_v13 = vmul.f32 %v2481_v1, %v231_v10  ;;  %v272_v14 = vmul.f32 %v2481_v1, %v236_v11  ;;  %v228_v15 = vld [vmem:[%s2492_s25 + $0x10] sm:$0xff]  ;;  %v234_v16 = vld [vmem:[%s2492_s25 + $0x40] sm:$0xff]  ;;  %v239_v26 = vld [vmem:[%s2492_s25 + $0x68] sm:$0xff]  ;;  %391 = vst.msk [vmem:[#allocation2 + $0x59] sm:$0x1] %vm372_vm2, %v2423_v0  ;;  %s2431_s10 = smov 32  }
  0x13   : > { %v298_v18 = vadd.f32 %v2497_v2, %v262_v6  ;;  %v299_v20 = vadd.f32 %v2497_v2, %v263_v8  ;;  %v264_v21 = vmul.f32 %v2481_v1, %v228_v15  ;;  %v305_v22 = vadd.f32 %v2497_v2, %v269_v12  ;;  %v229_v27 = vld [vmem:[%s2492_s25 + $0x18] sm:$0xff]  ;;  %v242_v33 = vld [vmem:[%s2492_s25 + $0x80] sm:$0xff]  ;;  %v232_v34 = vld [vmem:[%s2492_s25 + $0x30] sm:$0xff]  ;;  %373 = vst.msk [vmem:[#allocation2 + $0x18] sm:$0x1] %vm372_vm2, %v2423_v0 }
  0x14   : > { %v501_v17 = vld [vmem:[#allocation2 + $0x1] sm:$0xff]  ;;  %v302_v19 = vadd.f32 %v2497_v2, %v266_v7  ;;  %v303_v23 = vadd.f32 %v2497_v2, %v267_v13  ;;  %v308_v24 = vadd.f32 %v2497_v2, %v272_v14  ;;  %v270_v25 = vmul.f32 %v2481_v1, %v234_v16  ;;  %v237_v28 = vld [vmem:[%s2492_s25 + $0x58] sm:$0xff]  ;;  %v240_v49 = vld [vmem:[%s2492_s25 + $0x70] sm:$0xff]  ;;  %374 = vst.msk [vmem:[#allocation2 + $0x30] sm:$0x1] %vm372_vm2, %v2423_v0 }
  0x15   : > { %565 = vrot.lane.b32.xlu0 %v501_v17, %s2424_s28  ;;  %v330_v29 = vmax.f32 %v298_v18, 0.0  ;;  %v331_v31 = vmax.f32 %v299_v20, 0.0  ;;  %v300_v32 = vadd.f32 %v2497_v2, %v264_v21  ;;  %v337_v35 = vmax.f32 %v305_v22, 0.0  ;;  %v245_v58 = vld [vmem:[%s2492_s25 + $0x98] sm:$0xff]  ;;  %v235_v59 = vld [vmem:[%s2492_s25 + $0x48] sm:$0xff]  ;;  %v248_v15 = vld [vmem:[%s2492_s25 + $0xb0] sm:$0xff] }
  0x16   : > { %v334_v30 = vmax.f32 %v302_v19, 0.0  ;;  %v306_v36 = vadd.f32 %v2497_v2, %v270_v25  ;;  %v335_v37 = vmax.f32 %v303_v23, 0.0  ;;  %v275_v38 = vmul.f32 %v2481_v1, %v239_v26  ;;  %v243_v8 = vld [vmem:[%s2492_s25 + $0x88] sm:$0xff]  ;;  %v238_v16 = vld [vmem:[%s2492_s25 + $0x60] sm:$0xff]  ;;  %375 = vst.msk [vmem:[#allocation2 + $0x48] sm:$0x1] %vm372_vm2, %v2423_v0 }
  0x17   : > { %405 = vst.msk [vmem:[#allocation2 + $0x19] sm:$0xff] %vm362_vm0, %v330_v29  ;;  %v265_v39 = vmul.f32 %v2481_v1, %v229_v27  ;;  %v273_v40 = vmul.f32 %v2481_v1, %v237_v28  ;;  %v340_v41 = vmax.f32 %v308_v24, 0.0  ;;  %v278_v42 = vmul.f32 %v2481_v1, %v242_v33  ;;  %v502_v44 = vld [vmem:[#allocation2 + $0x9] sm:$0xff]  ;;  %v246_v23 = vld [vmem:[%s2492_s25 + $0xa0] sm:$0xff] }
  0x18   : > { %409 = vst.msk [vmem:[#allocation2 + $0x49] sm:$0xff] %vm362_vm0, %v334_v30  ;;  %v268_v43 = vmul.f32 %v2481_v1, %v232_v34  ;;  %v332_v45 = vmax.f32 %v300_v32, 0.0  ;;  %v311_v46 = vadd.f32 %v2497_v2, %v275_v38  ;;  %v338_v50 = vmax.f32 %v306_v36, 0.0  ;;  %v251_v30 = vld [vmem:[%s2492_s25 + $0xc8] sm:$0xff]  ;;  %v249_v38 = vld [vmem:[%s2492_s25 + $0xb8] sm:$0xff] }
  0x19   : > { %406 = vst.msk [vmem:[#allocation2 + $0x21] sm:$0xff] %vm362_vm0, %v331_v31  ;;  %v301_v47 = vadd.f32 %v2497_v2, %v265_v39  ;;  %v309_v48 = vadd.f32 %v2497_v2, %v273_v40  ;;  %v314_v51 = vadd.f32 %v2497_v2, %v278_v42  ;;  %v276_v52 = vmul.f32 %v2481_v1, %v240_v49  ;;  %v241_v31 = vld [vmem:[%s2492_s25 + $0x78] sm:$0xff] }
  0x1a   : > { %412 = vst.msk [vmem:[#allocation2 + $0x69] sm:$0xff] %vm362_vm0, %v337_v35  ;;  %v343_v53 = vmax.f32 %v311_v46, 0.0  ;;  %v304_v54 = vadd.f32 %v2497_v2, %v268_v43  ;;  %v281_v62 = vmul.f32 %v2481_v1, %v245_v58  ;;  %v271_v63 = vmul.f32 %v2481_v1, %v235_v59  ;;  %v244_v46 = vld [vmem:[%s2492_s25 + $0x90] sm:$0xff] }
  0x1b   : > { %410 = vst.msk [vmem:[#allocation2 + $0x51] sm:$0xff] %vm362_vm0, %v335_v37  ;;  %v333_v55 = vmax.f32 %v301_v47, 0.0  ;;  %v312_v56 = vadd.f32 %v2497_v2, %v276_v52  ;;  %v341_v57 = vmax.f32 %v309_v48, 0.0  ;;  %v346_v61 = vmax.f32 %v314_v51, 0.0 }
  0x1c   : > { %415 = vst.msk [vmem:[#allocation2 + $0x91] sm:$0xff] %vm362_vm0, %v340_v41  ;;  %v336_v3 = vmax.f32 %v304_v54, 0.0  ;;  %v317_v5 = vadd.f32 %v2497_v2, %v281_v62  ;;  %v307_v6 = vadd.f32 %v2497_v2, %v271_v63  ;;  %v279_v11 = vmul.f32 %v2481_v1, %v243_v8 }
  0x1d   : > { %567 = vrot.lane.b32.xlu0 %v502_v44, %s2424_s28  ;;  %407 = vst.msk [vmem:[#allocation2 + $0x31] sm:$0xff] %vm362_vm0, %v332_v45  ;;  %v344_v4 = vmax.f32 %v312_v56, 0.0  ;;  %v284_v18 = vmul.f32 %v2481_v1, %v248_v15  ;;  %v274_v19 = vmul.f32 %v2481_v1, %v238_v16  ;;  %v282_v27 = vmul.f32 %v2481_v1, %v246_v23  ;;  %v254_v45 = vld [vmem:[%s2492_s25 + $0xe0] sm:$0xff] }
  0x1e   : > { %v503_v60 = vld [vmem:[#allocation2 + $0x19] sm:$0xff]  ;;  %413 = vst.msk [vmem:[#allocation2 + $0x79] sm:$0xff] %vm362_vm0, %v338_v50  ;;  %v349_v9 = vmax.f32 %v317_v5, 0.0  ;;  %v339_v10 = vmax.f32 %v307_v6, 0.0  ;;  %v315_v14 = vadd.f32 %v2497_v2, %v279_v11  ;;  %v287_v33 = vmul.f32 %v2481_v1, %v251_v30  ;;  %v695_v30 = vld [vmem:[#allocation2 + $0xa] sm:$0xff] }
  0x1f   : > { %569 = vrot.lane.b32.xlu1 %v503_v60, %s2424_s28  ;;  %418 = vst.msk [vmem:[#allocation2 + $0xb1] sm:$0xff] %vm362_vm0, %v343_v53  ;;  %v507_v7 = vld [vmem:[#allocation2 + $0x49] sm:$0xff]  ;;  %v320_v20 = vadd.f32 %v2497_v2, %v284_v18  ;;  %v310_v21 = vadd.f32 %v2497_v2, %v274_v19  ;;  %v318_v29 = vadd.f32 %v2497_v2, %v282_v27 }
  0x20   : > { %408 = vst.msk [vmem:[#allocation2 + $0x39] sm:$0xff] %vm362_vm0, %v333_v55  ;;  %v504_v12 = vld [vmem:[#allocation2 + $0x21] sm:$0xff]  ;;  %v347_v17 = vmax.f32 %v315_v14, 0.0  ;;  %v277_v34 = vmul.f32 %v2481_v1, %v241_v31  ;;  %v323_v35 = vadd.f32 %v2497_v2, %v287_v33  ;;  %v285_v42 = vmul.f32 %v2481_v1, %v249_v38  ;;  %v252_v53 = vld [vmem:[%s2492_s25 + $0xd0] sm:$0xff] }
  0x21   : > { %416 = vst.msk [vmem:[#allocation2 + $0x99] sm:$0xff] %vm362_vm0, %v341_v57  ;;  %v510_v22 = vld [vmem:[#allocation2 + $0x69] sm:$0xff]  ;;  %v352_v25 = vmax.f32 %v320_v20, 0.0  ;;  %v342_v26 = vmax.f32 %v310_v21, 0.0  ;;  %v350_v32 = vmax.f32 %v318_v29, 0.0  ;;  %v290_v48 = vmul.f32 %v2481_v1, %v254_v45 }
  0x22   : > { %421 = vst.msk [vmem:[#allocation2 + $0xd9] sm:$0xff] %vm362_vm0, %v346_v61  ;;  %v508_v28 = vld [vmem:[#allocation2 + $0x51] sm:$0xff]  ;;  %v313_v36 = vadd.f32 %v2497_v2, %v277_v34  ;;  %v355_v40 = vmax.f32 %v323_v35, 0.0  ;;  %v321_v44 = vadd.f32 %v2497_v2, %v285_v42  ;;  %v280_v49 = vmul.f32 %v2481_v1, %v244_v46  ;;  %v247_v60 = vld [vmem:[%s2492_s25 + $0xa8] sm:$0xff]  ;;  %v437_v35 = vld [vmem:[#allocation2] sm:$0xff] }
  0x23   : > { %411 = vst.msk [vmem:[#allocation2 + $0x61] sm:$0xff] %vm362_vm0, %v336_v3  ;;  %v513_v37 = vld [vmem:[#allocation2 + $0x91] sm:$0xff]  ;;  %v326_v50 = vadd.f32 %v2497_v2, %v290_v48  ;;  %v288_v57 = vmul.f32 %v2481_v1, %v252_v53  ;;  %v283_v62 = vmul.f32 %v2481_v1, %v247_v60 }
  0x24   : > { %v505_v13 = vld [vmem:[#allocation2 + $0x31] sm:$0xff]  ;;  %419 = vst.msk [vmem:[#allocation2 + $0xc1] sm:$0xff] %vm362_vm0, %v344_v4  ;;  %v345_v41 = vmax.f32 %v313_v36, 0.0  ;;  %v353_v47 = vmax.f32 %v321_v44, 0.0  ;;  %v316_v51 = vadd.f32 %v2497_v2, %v280_v49  ;;  %v255_v4 = vld [vmem:[%s2492_s25 + $0xe8] sm:$0xff] }
  0x25   : > { %577 = vrot.lane.b32.xlu0 %v507_v7, %s2424_s28  ;;  %573 = vrot.lane.b32.xlu2 %v505_v13, %s2424_s28  ;;  %424 = vst.msk [vmem:[#allocation2 + $0xf9] sm:$0xff] %vm362_vm0, %v349_v9  ;;  %v511_v43 = vld [vmem:[#allocation2 + $0x79] sm:$0xff]  ;;  %v358_v55 = vmax.f32 %v326_v50, 0.0  ;;  %v324_v59 = vadd.f32 %v2497_v2, %v288_v57  ;;  %v319_v63 = vadd.f32 %v2497_v2, %v283_v62  ;;  %v438_v36 = vld [vmem:[#allocation2 + $0x8] sm:$0xff]  ;;  %v2755_v38 = vld [vmem:[#allocation2 + $0x30] sm:$0xff] }
  0x26   : > { %414 = vst.msk [vmem:[#allocation2 + $0x81] sm:$0xff] %vm362_vm0, %v339_v10  ;;  %v516_v52 = vld [vmem:[#allocation2 + $0xb1] sm:$0xff]  ;;  %v348_v56 = vmax.f32 %v316_v51, 0.0  ;;  %v291_v7 = vmul.f32 %v2481_v1, %v255_v4  ;;  %v250_v10 = vld [vmem:[%s2492_s25 + $0xc0] sm:$0xff] }
  0x27   : > { %571 = vrot.lane.b32.xlu1 %v504_v12, %s2424_s28  ;;  %422 = vst.msk [vmem:[#allocation2 + $0xe1] sm:$0xff] %vm362_vm0, %v347_v17  ;;  %v2581_v24 = vld [vmem:[#allocation2 + $0x39] sm:$0xff]  ;;  %v356_v61 = vmax.f32 %v324_v59, 0.0  ;;  %v351_v6 = vmax.f32 %v319_v63, 0.0  ;;  %v286_v12 = vmul.f32 %v2481_v1, %v250_v10  ;;  %v2797_v49 = vld [vmem:[#allocation2 + $0x50] sm:$0xff]  ;;  %v694_v51 = vld [vmem:[#allocation2 + $0x2] sm:$0xff] }
  0x28   : > { %427 = vst.msk [vmem:[#allocation2 + $0x121] sm:$0xff] %vm362_vm0, %v352_v25  ;;  %v514_v58 = vld [vmem:[#allocation2 + $0x99] sm:$0xff]  ;;  %v327_v9 = vadd.f32 %v2497_v2, %v291_v7 }
  0x29   : > { %417 = vst.msk [vmem:[#allocation2 + $0xa9] sm:$0xff] %vm362_vm0, %v342_v26  ;;  %v519_v3 = vld [vmem:[#allocation2 + $0xd9] sm:$0xff]  ;;  %v322_v13 = vadd.f32 %v2497_v2, %v286_v12 }
  0x2a   : > { %425 = vst.msk [vmem:[#allocation2 + $0x109] sm:$0xff] %vm362_vm0, %v350_v32  ;;  %v2599_v39 = vld [vmem:[#allocation2 + $0x61] sm:$0xff]  ;;  %v359_v11 = vmax.f32 %v327_v9, 0.0  ;;  %v2742_v34 = vld [vmem:[#allocation2 + $0x32] sm:$0xff]  ;;  %v2851_v9 = vld [vmem:[#allocation2 + $0x4a] sm:$0xff] }
  0x2b   : > { %430 = vst.msk [vmem:[#allocation2 + $0x141] sm:$0xff] %vm362_vm0, %v355_v40  ;;  %v517_v8 = vld [vmem:[#allocation2 + $0xc1] sm:$0xff]  ;;  %v354_v16 = vmax.f32 %v322_v13, 0.0  ;;  %v2758_v40 = vld [vmem:[#allocation2 + $0x18] sm:$0xff] }
  0x2c   : > { %420 = vst.msk [vmem:[#allocation2 + $0xc9] sm:$0xff] %vm362_vm0, %v345_v41  ;;  %v522_v14 = vld [vmem:[#allocation2 + $0xf9] sm:$0xff]  ;;  %v2761_v41 = vld [vmem:[#allocation2 + $0x48] sm:$0xff] }
  0x2d   : > { %583 = vrot.lane.b32.xlu0 %v510_v22, %s2424_s28  ;;  %575 = vrot.lane.b32.xlu2 %v2581_v24, %s2424_s28  ;;  %428 = vst.msk [vmem:[#allocation2 + $0x129] sm:$0xff] %vm362_vm0, %v353_v47  ;;  %v2617_v54 = vld [vmem:[#allocation2 + $0x81] sm:$0xff]  ;;  %v2771_v42 = vld [vmem:[#allocation2 + $0x52] sm:$0xff] }
  0x2e   : > { %433 = vst.msk [vmem:[#allocation2 + $0x169] sm:$0xff] %vm362_vm0, %v358_v55  ;;  %v520_v17 = vld [vmem:[#allocation2 + $0xe1] sm:$0xff] }
  0x2f   : > { %579 = vrot.lane.b32.xlu1 %v508_v28, %s2424_s28  ;;  %423 = vst.msk [vmem:[#allocation2 + $0xf1] sm:$0xff] %vm362_vm0, %v348_v56  ;;  %v525_v18 = vld [vmem:[#allocation2 + $0x121] sm:$0xff]  ;;  %v253_v28 = vld [vmem:[%s2492_s25 + $0xd8] sm:$0xff] }
  0x30   : > { %431 = vst.msk [vmem:[#allocation2 + $0x151] sm:$0xff] %vm362_vm0, %v356_v61  ;;  %v2632_v5 = vld [vmem:[#allocation2 + $0xa9] sm:$0xff]  ;;  %v289_v29 = vmul.f32 %v2481_v1, %v253_v28  ;;  %v2800_v50 = vld [vmem:[#allocation2 + $0x7a] sm:$0xff] }
  0x31   : > { %426 = vst.msk [vmem:[#allocation2 + $0x111] sm:$0xff] %vm362_vm0, %v351_v6  ;;  %v523_v20 = vld [vmem:[#allocation2 + $0x109] sm:$0xff]  ;;  %v2818_v57 = vld [vmem:[#allocation2 + $0x80] sm:$0xff]  ;;  %v2847_v6 = vld [vmem:[#allocation2 + $0x98] sm:$0xff] }
  0x32   : > { %434 = vst.msk [vmem:[#allocation2 + $0x171] sm:$0xff] %vm362_vm0, %v359_v11  ;;  %v528_v21 = vld [vmem:[#allocation2 + $0x141] sm:$0xff]  ;;  %v325_v32 = vadd.f32 %v2497_v2, %v289_v29  ;;  %v2837_v62 = vld [vmem:[#allocation2 + $0xb0] sm:$0xff] }
  0x33   : > { %v2645_v15 = vld [vmem:[#allocation2 + $0xc9] sm:$0xff]  ;;  %429 = vst.msk [vmem:[#allocation2 + $0x139] sm:$0xff] %vm362_vm0, %v354_v16 }
  0x34   : > { %376 = vst.msk [vmem:[#allocation2 + $0x60] sm:$0x1] %vm372_vm2, %v2423_v0  ;;  %v526_v23 = vld [vmem:[#allocation2 + $0x129] sm:$0xff]  ;;  %v357_v33 = vmax.f32 %v325_v32, 0.0  ;;  %v2901_v32 = vld [vmem:[#allocation2 + $0xe0] sm:$0xff] }
  0x35   : > { %589 = vrot.lane.b32.xlu0 %v513_v37, %s2424_s28  ;;  %581 = vrot.lane.b32.xlu2 %v2599_v39, %s2424_s28  ;;  %377 = vst.msk [vmem:[#allocation2 + $0x78] sm:$0x1] %vm372_vm2, %v2423_v0  ;;  %v2690_v25 = vld [vmem:[#allocation2 + $0x169] sm:$0xff]  ;;  %v2752_v37 = vld [vmem:[#allocation2 + $0x1a] sm:$0xff] }
  0x36   : > { %v2652_v19 = vld [vmem:[#allocation2 + $0xf1] sm:$0xff]  ;;  %378 = vst.msk [vmem:[#allocation2 + $0x90] sm:$0x1] %vm372_vm2, %v2423_v0  ;;  %v2789_v46 = vld [vmem:[#allocation2 + $0x68] sm:$0xff] }
  0x37   : > { %585 = vrot.lane.b32.xlu1 %v511_v43, %s2424_s28  ;;  %379 = vst.msk [vmem:[#allocation2 + $0xa8] sm:$0x1] %vm372_vm2, %v2423_v0  ;;  %v2702_v27 = vld [vmem:[#allocation2 + $0x151] sm:$0xff]  ;;  %v2775_v43 = vld [vmem:[#allocation2 + $0x20] sm:$0xff] }
  0x38   : > { %v2670_v22 = vld [vmem:[#allocation2 + $0x111] sm:$0xff]  ;;  %380 = vst.msk [vmem:[#allocation2 + $0xc0] sm:$0x1] %vm372_vm2, %v2423_v0 }
  0x39   : > { %381 = vst.msk [vmem:[#allocation2 + $0xd8] sm:$0x1] %vm372_vm2, %v2423_v0  ;;  %v2727_v31 = vld [vmem:[#allocation2 + $0x171] sm:$0xff] }
  0x3a   : > { %382 = vst.msk [vmem:[#allocation2 + $0xf0] sm:$0x1] %vm372_vm2, %v2423_v0  ;;  %v2694_v26 = vld [vmem:[#allocation2 + $0x139] sm:$0xff]  ;;  %v2862_v10 = vld [vmem:[#allocation2 + $0xaa] sm:$0xff] }
  0x3b   : > { %383 = vst.msk [vmem:[#allocation2 + $0x108] sm:$0x1] %vm372_vm2, %v2423_v0  ;;  %v2795_v48 = vld [vmem:[#allocation2 + $0x60] sm:$0xff] }
  0x3c   : > { %384 = vst.msk [vmem:[#allocation2 + $0x120] sm:$0x1] %vm372_vm2, %v2423_v0 }
  0x3d   : > { %595 = vrot.lane.b32.xlu0 %v516_v52, %s2424_s28  ;;  %587 = vrot.lane.b32.xlu2 %v2617_v54, %s2424_s28  ;;  %385 = vst.msk [vmem:[#allocation2 + $0x138] sm:$0x1] %vm372_vm2, %v2423_v0  ;;  %v2809_v52 = vld [vmem:[#allocation2 + $0x62] sm:$0xff]  ;;  %v2811_v53 = vld [vmem:[#allocation2 + $0x90] sm:$0xff] }
  0x3e   : > { %386 = vst.msk [vmem:[#allocation2 + $0x150] sm:$0x1] %vm372_vm2, %v2423_v0  ;;  %v2844_v4 = vld [vmem:[#allocation2 + $0xa8] sm:$0xff] }
  0x3f   : > { %591 = vrot.lane.b32.xlu1 %v514_v58, %s2424_s28  ;;  %387 = vst.msk [vmem:[#allocation2 + $0x168] sm:$0x1] %vm372_vm2, %v2423_v0  ;;  %v2820_v58 = vld [vmem:[#allocation2 + $0x78] sm:$0xff]  ;;  %v2874_v16 = vld [vmem:[#allocation2 + $0xc0] sm:$0xff] }
  0x40   : > { %388 = vst.msk [vmem:[#allocation2 + $0x180] sm:$0x1] %vm372_vm2, %v2423_v0  ;;  %v2864_v11 = vld [vmem:[#allocation2 + $0xd8] sm:$0xff] }
  0x41   : > { %389 = vst.msk [vmem:[#allocation2 + $0x29] sm:$0x1] %vm372_vm2, %v2423_v0 }
  0x42   : > { %390 = vst.msk [vmem:[#allocation2 + $0x41] sm:$0x1] %vm372_vm2, %v2423_v0 }
  0x43   : > { %392 = vst.msk [vmem:[#allocation2 + $0x71] sm:$0x1] %vm372_vm2, %v2423_v0 }
  0x44   : > { %393 = vst.msk [vmem:[#allocation2 + $0x89] sm:$0x1] %vm372_vm2, %v2423_v0 }
  0x45   : > { %601 = vrot.lane.b32.xlu0 %v519_v3, %s2424_s28  ;;  %593 = vrot.lane.b32.xlu2 %v2632_v5, %s2424_s28  ;;  %394 = vst.msk [vmem:[#allocation2 + $0xa1] sm:$0x1] %vm372_vm2, %v2423_v0 }
  0x46   : > { %395 = vst.msk [vmem:[#allocation2 + $0xb9] sm:$0x1] %vm372_vm2, %v2423_v0 }
  0x47   : > { %597 = vrot.lane.b32.xlu1 %v517_v8, %s2424_s28  ;;  %396 = vst.msk [vmem:[#allocation2 + $0xd1] sm:$0x1] %vm372_vm2, %v2423_v0  ;;  %v2849_v8 = vld [vmem:[#allocation2 + $0xc2] sm:$0xff] }
  0x48   : > { %397 = vst.msk [vmem:[#allocation2 + $0xe9] sm:$0x1] %vm372_vm2, %v2423_v0  ;;  %v2825_v60 = vld [vmem:[#allocation2 + $0x22] sm:$0xff] }
  0x49   : > { %398 = vst.msk [vmem:[#allocation2 + $0x101] sm:$0x1] %vm372_vm2, %v2423_v0  ;;  %v2787_v45 = vld [vmem:[#allocation2 + $0x3a] sm:$0xff] }
  0x4a   : > { %399 = vst.msk [vmem:[#allocation2 + $0x119] sm:$0x1] %vm372_vm2, %v2423_v0 }
  0x4b   : > { %400 = vst.msk [vmem:[#allocation2 + $0x131] sm:$0x1] %vm372_vm2, %v2423_v0  ;;  %v2835_v61 = vld [vmem:[#allocation2 + $0x82] sm:$0xff] }
  0x4c   : > { %401 = vst.msk [vmem:[#allocation2 + $0x149] sm:$0x1] %vm372_vm2, %v2423_v0  ;;  %v2823_v59 = vld [vmem:[#allocation2 + $0x9a] sm:$0xff] }
  0x4d   : > { %607 = vrot.lane.b32.xlu0 %v522_v14, %s2424_s28  ;;  %599 = vrot.lane.b32.xlu2 %v2645_v15, %s2424_s28  ;;  %402 = vst.msk [vmem:[#allocation2 + $0x161] sm:$0x1] %vm372_vm2, %v2423_v0  ;;  %v2871_v14 = vld [vmem:[#allocation2 + $0xc8] sm:$0xff] }
  0x4e   : > { %403 = vst.msk [vmem:[#allocation2 + $0x179] sm:$0x1] %vm372_vm2, %v2423_v0 }
  0x4f   : > { %603 = vrot.lane.b32.xlu1 %v520_v17, %s2424_s28  ;;  %404 = vst.msk [vmem:[#allocation2 + $0x191] sm:$0x1] %vm372_vm2, %v2423_v0  ;;  %v2767_v0 = vld [vmem:[#allocation2 + $0x38] sm:$0xff] }
  0x50   : > { %432 = vst.msk [vmem:[#allocation2 + $0x159] sm:$0xff] %vm362_vm0, %v357_v33 }
  0x51   : > { %469 = vst.msk [vmem:[#allocation3] sm:$0xff] %vm362_vm0, %v437_v35  ;;  %v2903_v35 = vld [vmem:[#allocation2 + $0x10a] sm:$0xff] }
  0x52   : > { %470 = vst.msk [vmem:[#allocation3 + $0x8] sm:$0xff] %vm362_vm0, %v438_v36  ;;  %v2905_v36 = vld [vmem:[#allocation2 + $0x92] sm:$0xff] }
  0x53   : > { %473 = vst.msk [vmem:[#allocation3 + $0x20] sm:$0xff] %vm362_vm0, %v2755_v38 }
  0x54   : > { %471 = vst.msk [vmem:[#allocation3 + $0x10] sm:$0xff] %vm362_vm0, %v2758_v40 }
  0x55   : > { %613 = vrot.lane.b32.xlu0 %v525_v18, %s2424_s28  ;;  %605 = vrot.lane.b32.xlu2 %v2652_v19, %s2424_s28  ;;  %475 = vst.msk [vmem:[#allocation3 + $0x30] sm:$0xff] %vm362_vm0, %v2761_v41  ;;  %v2876_v18 = vld [vmem:[#allocation2 + $0xe2] sm:$0xff] }
  0x56   : > { %474 = vst.msk [vmem:[#allocation3 + $0x28] sm:$0xff] %vm362_vm0, %v2767_v0 }
  0x57   : > { %609 = vrot.lane.b32.xlu1 %v523_v20, %s2424_s28  ;;  %v2779_v44 = vld [vmem:[#allocation2 + $0x159] sm:$0xff]  ;;  %472 = vst.msk [vmem:[#allocation3 + $0x18] sm:$0xff] %vm362_vm0, %v2775_v43  ;;  %v2878_v20 = vld [vmem:[#allocation2 + $0x6a] sm:$0xff] }
  0x58   : > { %478 = vst.msk [vmem:[#allocation3 + $0x48] sm:$0xff] %vm362_vm0, %v2789_v46 }
  0x59   : > { %477 = vst.msk [vmem:[#allocation3 + $0x40] sm:$0xff] %vm362_vm0, %v2795_v48 }
  0x5a   : > { %476 = vst.msk [vmem:[#allocation3 + $0x38] sm:$0xff] %vm362_vm0, %v2797_v49 }
  0x5b   : > { %481 = vst.msk [vmem:[#allocation3 + $0x60] sm:$0xff] %vm362_vm0, %v2811_v53 }
  0x5c   : > { %480 = vst.msk [vmem:[#allocation3 + $0x58] sm:$0xff] %vm362_vm0, %v2818_v57 }
  0x5d   : > { %619 = vrot.lane.b32.xlu0 %v528_v21, %s2424_s28  ;;  %611 = vrot.lane.b32.xlu2 %v2670_v22, %s2424_s28  ;;  %479 = vst.msk [vmem:[#allocation3 + $0x50] sm:$0xff] %vm362_vm0, %v2820_v58  ;;  %v2889_v21 = vld [vmem:[#allocation2 + $0xca] sm:$0xff] }
  0x5e   : > { %3715 = vst [vmem:[#allocation4_spill] sm:$0xff] %v2835_v61 }
  0x5f   : > { %615 = vrot.lane.b32.xlu1 %v526_v23, %s2424_s28  ;;  %484 = vst.msk [vmem:[#allocation3 + $0x78] sm:$0xff] %vm362_vm0, %v2837_v62  ;;  %v2891_v23 = vld [vmem:[#allocation2 + $0xf8] sm:$0xff] }
  0x60   : > { %3716 = vst [vmem:[#allocation5_spill] sm:$0xff] %v2849_v8 }
  0x61   : > { %483 = vst.msk [vmem:[#allocation3 + $0x70] sm:$0xff] %vm362_vm0, %v2844_v4 }
  0x62   : > { %482 = vst.msk [vmem:[#allocation3 + $0x68] sm:$0xff] %vm362_vm0, %v2847_v6 }
  0x63   : > { %3717 = vst [vmem:[#allocation6_spill] sm:$0xff] %v2862_v10 }
  0x64   : > { %487 = vst.msk [vmem:[#allocation3 + $0x90] sm:$0xff] %vm362_vm0, %v2864_v11 }
  0x65   : > { %625 = vrot.lane.b32.xlu0 %v2690_v25, %s2424_s28  ;;  %617 = vrot.lane.b32.xlu2 %v2694_v26, %s2424_s28  ;;  %3718 = vst [vmem:[#allocation7_spill] sm:$0xff] %v2876_v18 }
  0x66   : > { %486 = vst.msk [vmem:[#allocation3 + $0x88] sm:$0xff] %vm362_vm0, %v2871_v14 }
  0x67   : > { %621 = vrot.lane.b32.xlu1 %v2702_v27, %s2424_s28  ;;  %485 = vst.msk [vmem:[#allocation3 + $0x80] sm:$0xff] %vm362_vm0, %v2874_v16 }
  0x68   : > { %3719 = vst [vmem:[#allocation8_spill] sm:$0xff] %v2889_v21 }
  0x69   : > { %490 = vst.msk [vmem:[#allocation3 + $0xa8] sm:$0xff] %vm362_vm0, %v2891_v23 }
  0x6a   : > { %3720 = vst [vmem:[#allocation9_spill] sm:$0xff] %v2903_v35 }
  0x6b   : > { %488 = vst.msk [vmem:[#allocation3 + $0x98] sm:$0xff] %vm362_vm0, %v2901_v32 }
  0x6d   : > { %760 = vrot.lane.b32.xlu0 %v695_v30, %s2425_s29  ;;  %623 = vrot.lane.b32.xlu2 %v2779_v44, %s2424_s28  ;;  %v2898_v30 = vld [vmem:[#allocation2 + $0xf0] sm:$0xff] }
  0x6e   : > { %489 = vst.msk [vmem:[#allocation3 + $0xa0] sm:$0xff] %vm362_vm0, %v2898_v30 }
  0x6f   : > { %627 = vrot.lane.b32.xlu1 %v2727_v31, %s2424_s28 }
  0x75   : > { %766 = vrot.lane.b32.xlu0 %v2742_v34, %s2425_s29  ;;  %758 = vrot.lane.b32.xlu2 %v694_v51, %s2425_s29  ;;  %v2918_v51 = vld [vmem:[#allocation2 + $0x120] sm:$0xff] }
  0x76   : > { %493 = vst.msk [vmem:[#allocation3 + $0xc0] sm:$0xff] %vm362_vm0, %v2918_v51 }
  0x77   : > { %762 = vrot.lane.b32.xlu1 %v2752_v37, %s2425_s29 }
  0x7d   : > { %772 = vrot.lane.b32.xlu0 %v2771_v42, %s2425_s29  ;;  %764 = vrot.lane.b32.xlu2 %v2825_v60, %s2425_s29 }
  0x7f   : > { %768 = vrot.lane.b32.xlu1 %v2787_v45, %s2425_s29  ;;  %v574_v47 = vpop.permute.xlu2 %573 }
  0x80   : > { %666 = vst.msk [vmem:[#allocation3 + $0x20] sm:$0xff] %vm661_vm3, %v574_v47  ;;  %v2916_v47 = vld [vmem:[#allocation2 + $0xf2] sm:$0xff] }
  0x81   : > { %3721 = vst [vmem:[#allocation10_spill] sm:$0xff] %v2916_v47 }
  0x85   : > { %778 = vrot.lane.b32.xlu0 %v2800_v50, %s2425_s29  ;;  %770 = vrot.lane.b32.xlu2 %v2851_v9, %s2425_s29 }
  0x87   : > { %v566_v55 = vpop.permute.xlu0 %565  ;;  %774 = vrot.lane.b32.xlu1 %v2809_v52, %s2425_s29  ;;  %v576_v56 = vpop.permute.xlu2 %575 }
  0x88   : > { %662 = vst.msk [vmem:[#allocation3] sm:$0xff] %vm661_vm3, %v566_v55 }
  0x89   : > { %667 = vst.msk [vmem:[#allocation3 + $0x28] sm:$0xff] %vm661_vm3, %v576_v56 }
  0x8d   : > { %784 = vrot.lane.b32.xlu0 %v2823_v59, %s2425_s29  ;;  %776 = vrot.lane.b32.xlu2 %v2878_v20, %s2425_s29 }
  0x8f   : > { %v568_v63 = vpop.permute.xlu0 %567  ;;  %780 = vrot.lane.b32.xlu1 %v2835_v61, %s2425_s29  ;;  %v582_v3 = vpop.permute.xlu2 %581 }
  0x90   : > { %663 = vst.msk [vmem:[#allocation3 + $0x8] sm:$0xff] %vm661_vm3, %v568_v63  ;;  %v2925_v63 = vld [vmem:[#allocation2 + $0x110] sm:$0xff] }
  0x91   : > { %670 = vst.msk [vmem:[#allocation3 + $0x40] sm:$0xff] %vm661_vm3, %v582_v3  ;;  %v570_v7 = vpop.permute.xlu1 %569  ;;  %v2928_v3 = vld [vmem:[#allocation2 + $0x108] sm:$0xff] }
  0x92   : > { %664 = vst.msk [vmem:[#allocation3 + $0x10] sm:$0xff] %vm661_vm3, %v570_v7 }
  0x93   : > { %492 = vst.msk [vmem:[#allocation3 + $0xb8] sm:$0xff] %vm362_vm0, %v2925_v63 }
  0x94   : > { %491 = vst.msk [vmem:[#allocation3 + $0xb0] sm:$0xff] %vm362_vm0, %v2928_v3 }
  0x95   : > { %790 = vrot.lane.b32.xlu0 %v2849_v8, %s2425_s29  ;;  %782 = vrot.lane.b32.xlu2 %v2905_v36, %s2425_s29  ;;  %v3005_v8 = vld [vmem:[#allocation2 + $0x122] sm:$0xff] }
  0x97   : > { %v578_v12 = vpop.permute.xlu0 %577  ;;  %786 = vrot.lane.b32.xlu1 %v2862_v10, %s2425_s29  ;;  %v588_v13 = vpop.permute.xlu2 %587  ;;  %v2984_v10 = vld [vmem:[#allocation2 + $0x172] sm:$0xff] }
  0x98   : > { %668 = vst.msk [vmem:[#allocation3 + $0x30] sm:$0xff] %vm661_vm3, %v578_v12  ;;  %v2930_v12 = vld [vmem:[#allocation2 + $0x12a] sm:$0xff] }
  0x99   : > { %673 = vst.msk [vmem:[#allocation3 + $0x58] sm:$0xff] %vm661_vm3, %v588_v13  ;;  %v572_v17 = vpop.permute.xlu1 %571  ;;  %v2932_v13 = vld [vmem:[#allocation2 + $0xb2] sm:$0xff] }
  0x9a   : > { %665 = vst.msk [vmem:[#allocation3 + $0x18] sm:$0xff] %vm661_vm3, %v572_v17  ;;  %v2943_v17 = vld [vmem:[#allocation2 + $0x112] sm:$0xff] }
  0x9b   : > { %3722 = vst [vmem:[#allocation11_spill] sm:$0xff] %v2930_v12 }
  0x9c   : > { %3723 = vst [vmem:[#allocation12_spill] sm:$0xff] %v2943_v17 }
  0x9d   : > { %796 = vrot.lane.b32.xlu0 %v2876_v18, %s2425_s29  ;;  %788 = vrot.lane.b32.xlu2 %v2932_v13, %s2425_s29  ;;  %v2986_v18 = vld [vmem:[#allocation2 + $0xfa] sm:$0xff] }
  0x9f   : > { %v584_v28 = vpop.permute.xlu0 %583  ;;  %792 = vrot.lane.b32.xlu1 %v2889_v21, %s2425_s29  ;;  %v594_v29 = vpop.permute.xlu2 %593  ;;  %v2979_v21 = vld [vmem:[#allocation2 + $0x158] sm:$0xff] }
  0xa0   : > { %671 = vst.msk [vmem:[#allocation3 + $0x48] sm:$0xff] %vm661_vm3, %v584_v28  ;;  %v2945_v28 = vld [vmem:[#allocation2 + $0x140] sm:$0xff] }
  0xa1   : > { %676 = vst.msk [vmem:[#allocation3 + $0x70] sm:$0xff] %vm661_vm3, %v594_v29  ;;  %v580_v33 = vpop.permute.xlu1 %579 }
  0xa2   : > { %669 = vst.msk [vmem:[#allocation3 + $0x38] sm:$0xff] %vm661_vm3, %v580_v33 }
  0xa3   : > { %496 = vst.msk [vmem:[#allocation3 + $0xd8] sm:$0xff] %vm362_vm0, %v2945_v28 }
  0xa4   : > { %498 = vst.msk [vmem:[#allocation3 + $0xe8] sm:$0xff] %vm362_vm0, %v2979_v21 }
  0xa5   : > { %802 = vrot.lane.b32.xlu0 %v2903_v35, %s2425_s29 }
  0xa7   : > { %v590_v55 = vpop.permute.xlu0 %589  ;;  %798 = vrot.lane.b32.xlu1 %v2916_v47, %s2425_s29  ;;  %v600_v56 = vpop.permute.xlu2 %599  ;;  %v2957_v47 = vld [vmem:[#allocation2 + $0x152] sm:$0xff] }
  0xa8   : > { %674 = vst.msk [vmem:[#allocation3 + $0x60] sm:$0xff] %vm661_vm3, %v590_v55  ;;  %v2952_v55 = vld [vmem:[#allocation2 + $0x138] sm:$0xff] }
  0xa9   : > { %679 = vst.msk [vmem:[#allocation3 + $0x88] sm:$0xff] %vm661_vm3, %v600_v56  ;;  %v586_v7 = vpop.permute.xlu1 %585  ;;  %v2955_v56 = vld [vmem:[#allocation2 + $0x128] sm:$0xff] }
  0xaa   : > { %672 = vst.msk [vmem:[#allocation3 + $0x50] sm:$0xff] %vm661_vm3, %v586_v7 }
  0xab   : > { %3724 = vst [vmem:[#allocation13_spill] sm:$0xff] %v2957_v47 }
  0xac   : > { %495 = vst.msk [vmem:[#allocation3 + $0xd0] sm:$0xff] %vm362_vm0, %v2952_v55 }
  0xad   : > { %808 = vrot.lane.b32.xlu0 %v2930_v12, %s2425_s29  ;;  %v2959_v12 = vld [vmem:[#allocation2 + $0xda] sm:$0xff]  ;;  %494 = vst.msk [vmem:[#allocation3 + $0xc8] sm:$0xff] %vm362_vm0, %v2955_v56 }
  0xae   : > { %794 = vrot.lane.b32.xlu2 %v2959_v12, %s2425_s29 }
  0xaf   : > { %v596_v29 = vpop.permute.xlu0 %595  ;;  %804 = vrot.lane.b32.xlu1 %v2943_v17, %s2425_s29  ;;  %v606_v33 = vpop.permute.xlu2 %605 }
  0xb0   : > { %677 = vst.msk [vmem:[#allocation3 + $0x78] sm:$0xff] %vm661_vm3, %v596_v29  ;;  %v2970_v29 = vld [vmem:[#allocation2 + $0x13a] sm:$0xff] }
  0xb1   : > { %682 = vst.msk [vmem:[#allocation3 + $0xa0] sm:$0xff] %vm661_vm3, %v606_v33  ;;  %v592_v7 = vpop.permute.xlu1 %591  ;;  %v2972_v33 = vld [vmem:[#allocation2 + $0x168] sm:$0xff] }
  0xb2   : > { %675 = vst.msk [vmem:[#allocation3 + $0x68] sm:$0xff] %vm661_vm3, %v592_v7 }
  0xb3   : > { %3725 = vst [vmem:[#allocation14_spill] sm:$0xff] %v2970_v29 }
  0xb4   : > { %499 = vst.msk [vmem:[#allocation3 + $0xf0] sm:$0xff] %vm362_vm0, %v2972_v33 }
  0xb5   : > { %814 = vrot.lane.b32.xlu0 %v2957_v47, %s2425_s29  ;;  %v2982_v47 = vld [vmem:[#allocation2 + $0x150] sm:$0xff] }
  0xb6   : > { %497 = vst.msk [vmem:[#allocation3 + $0xe0] sm:$0xff] %vm362_vm0, %v2982_v47  ;;  %800 = vrot.lane.b32.xlu2 %v2986_v18, %s2425_s29 }
  0xb7   : > { %v602_v17 = vpop.permute.xlu0 %601  ;;  %810 = vrot.lane.b32.xlu1 %v2970_v29, %s2425_s29  ;;  %v612_v7 = vpop.permute.xlu2 %611 }
  0xb8   : > { %680 = vst.msk [vmem:[#allocation3 + $0x90] sm:$0xff] %vm661_vm3, %v602_v17  ;;  %v2997_v17 = vld [vmem:[#allocation2 + $0x15a] sm:$0xff] }
  0xb9   : > { %685 = vst.msk [vmem:[#allocation3 + $0xb8] sm:$0xff] %vm661_vm3, %v612_v7  ;;  %v598_v35 = vpop.permute.xlu1 %597 }
  0xba   : > { %678 = vst.msk [vmem:[#allocation3 + $0x80] sm:$0xff] %vm661_vm3, %v598_v35  ;;  %v3003_v35 = vld [vmem:[#allocation2 + $0x170] sm:$0xff] }
  0xbb   : > { %3726 = vst [vmem:[#allocation15_spill] sm:$0xff] %v2997_v17 }
  0xbc   : > { %500 = vst.msk [vmem:[#allocation3 + $0xf8] sm:$0xff] %vm362_vm0, %v3003_v35 }
  0xbd   : > { %820 = vrot.lane.b32.xlu0 %v2984_v10, %s2425_s29 }
  0xbe   : > { %806 = vrot.lane.b32.xlu2 %v3005_v8, %s2425_s29 }
  0xbf   : > { %v608_v7 = vpop.permute.xlu0 %607  ;;  %816 = vrot.lane.b32.xlu1 %v2997_v17, %s2425_s29  ;;  %v618_v29 = vpop.permute.xlu2 %617  ;;  %v3017_v17 = vld [vmem:[#allocation2 + $0x142] sm:$0xff] }
  0xc0   : > { %683 = vst.msk [vmem:[#allocation3 + $0xa8] sm:$0xff] %vm661_vm3, %v608_v7 }
  0xc1   : > { %688 = vst.msk [vmem:[#allocation3 + $0xd0] sm:$0xff] %vm661_vm3, %v618_v29  ;;  %v604_v61 = vpop.permute.xlu1 %603 }
  0xc2   : > { %681 = vst.msk [vmem:[#allocation3 + $0x98] sm:$0xff] %vm661_vm3, %v604_v61 }
  0xc5   : > { %955 = vrot.lane.b32.xlu0 %v2755_v38, %s2426_s30 }
  0xc6   : > { %812 = vrot.lane.b32.xlu2 %v3017_v17, %s2425_s29 }
  0xc7   : > { %v614_v7 = vpop.permute.xlu0 %613  ;;  %951 = vrot.lane.b32.xlu1 %v2758_v40, %s2426_s30 }
  0xc8   : > { %686 = vst.msk [vmem:[#allocation3 + $0xc0] sm:$0xff] %vm661_vm3, %v614_v7  ;;  %v3027_v7 = vld [vmem:[#allocation2 + $0x16a] sm:$0xff] }
  0xc9   : > { %v610_v29 = vpop.permute.xlu1 %609 }
  0xca   : > { %684 = vst.msk [vmem:[#allocation3 + $0xb0] sm:$0xff] %vm661_vm3, %v610_v29 }
  0xcd   : > { %961 = vrot.lane.b32.xlu0 %v2797_v49, %s2426_s30  ;;  %v624_v49 = vpop.permute.xlu2 %623 }
  0xce   : > { %818 = vrot.lane.b32.xlu2 %v3027_v7, %s2425_s29  ;;  %691 = vst.msk [vmem:[#allocation3 + $0xe8] sm:$0xff] %vm661_vm3, %v624_v49 }
  0xcf   : > { %v620_v38 = vpop.permute.xlu0 %619  ;;  %957 = vrot.lane.b32.xlu1 %v2767_v0, %s2426_s30 }
  0xd0   : > { %689 = vst.msk [vmem:[#allocation3 + $0xd8] sm:$0xff] %vm661_vm3, %v620_v38 }
  0xd1   : > { %v616_v61 = vpop.permute.xlu1 %615 }
  0xd2   : > { %687 = vst.msk [vmem:[#allocation3 + $0xc8] sm:$0xff] %vm661_vm3, %v616_v61 }
  0xd5   : > { %967 = vrot.lane.b32.xlu0 %v2820_v58, %s2426_s30  ;;  %v759_v38 = vpop.permute.xlu2 %758 }
  0xd6   : > { %953 = vrot.lane.b32.xlu2 %v2775_v43, %s2426_s30  ;;  %855 = vst.msk [vmem:[#allocation3] sm:$0xff] %vm854_vm4, %v759_v38 }
  0xd7   : > { %v626_v40 = vpop.permute.xlu0 %625  ;;  %963 = vrot.lane.b32.xlu1 %v2795_v48, %s2426_s30 }
  0xd8   : > { %692 = vst.msk [vmem:[#allocation3 + $0xf0] sm:$0xff] %vm661_vm3, %v626_v40  ;;  %v256_v40 = vld [vmem:[%s2492_s25 + $0xf0] sm:$0xff] }
  0xd9   : > { %v622_v0 = vpop.permute.xlu1 %621  ;;  %v292_v49 = vmul.f32 %v2481_v1, %v256_v40 }
  0xda   : > { %690 = vst.msk [vmem:[#allocation3 + $0xe0] sm:$0xff] %vm661_vm3, %v622_v0 }
  0xdd   : > { %973 = vrot.lane.b32.xlu0 %v2847_v6, %s2426_s30  ;;  %v765_v61 = vpop.permute.xlu2 %764 }
  0xde   : > { %959 = vrot.lane.b32.xlu2 %v2761_v41, %s2426_s30  ;;  %858 = vst.msk [vmem:[#allocation3 + $0x18] sm:$0xff] %vm854_vm4, %v765_v61  ;;  %v328_v41 = vadd.f32 %v2497_v2, %v292_v49 }
  0xdf   : > { %v761_v29 = vpop.permute.xlu0 %760  ;;  %969 = vrot.lane.b32.xlu1 %v2818_v57, %s2426_s30 }
  0xe0   : > { %856 = vst.msk [vmem:[#allocation3 + $0x8] sm:$0xff] %vm854_vm4, %v761_v29  ;;  %v360_v38 = vmax.f32 %v328_v41, 0.0  ;;  %v1080_v41 = vld [vmem:[#allocation2 + $0x19] sm:$0xff] }
  0xe1   : > { %v628_v48 = vpop.permute.xlu1 %627 }
  0xe2   : > { %693 = vst.msk [vmem:[#allocation3 + $0xf8] sm:$0xff] %vm661_vm3, %v628_v48 }
  0xe3   : > { %435 = vst.msk [vmem:[#allocation2 + $0x181] sm:$0xff] %vm362_vm0, %v360_v38 }
  0xe5   : > { %979 = vrot.lane.b32.xlu0 %v2874_v16, %s2426_s30  ;;  %v771_v29 = vpop.permute.xlu2 %770 }
  0xe6   : > { %965 = vrot.lane.b32.xlu2 %v2789_v46, %s2426_s30  ;;  %861 = vst.msk [vmem:[#allocation3 + $0x30] sm:$0xff] %vm854_vm4, %v771_v29 }
  0xe7   : > { %v767_v43 = vpop.permute.xlu0 %766  ;;  %975 = vrot.lane.b32.xlu1 %v2844_v4, %s2426_s30 }
  0xe8   : > { %859 = vst.msk [vmem:[#allocation3 + $0x20] sm:$0xff] %vm854_vm4, %v767_v43 }
  0xe9   : > { %v763_v57 = vpop.permute.xlu1 %762 }
  0xea   : > { %857 = vst.msk [vmem:[#allocation3 + $0x10] sm:$0xff] %vm854_vm4, %v763_v57 }
  0xed   : > { %985 = vrot.lane.b32.xlu0 %v2901_v32, %s2426_s30  ;;  %v777_v48 = vpop.permute.xlu2 %776 }
  0xee   : > { %971 = vrot.lane.b32.xlu2 %v2811_v53, %s2426_s30  ;;  %864 = vst.msk [vmem:[#allocation3 + $0x48] sm:$0xff] %vm854_vm4, %v777_v48 }
  0xef   : > { %v773_v0 = vpop.permute.xlu0 %772  ;;  %981 = vrot.lane.b32.xlu1 %v2871_v14, %s2426_s30 }
  0xf0   : > { %862 = vst.msk [vmem:[#allocation3 + $0x38] sm:$0xff] %vm854_vm4, %v773_v0 }
  0xf1   : > { %v769_v4 = vpop.permute.xlu1 %768 }
  0xf2   : > { %860 = vst.msk [vmem:[#allocation3 + $0x28] sm:$0xff] %vm854_vm4, %v769_v4  ;;  %v1081_v4 = vld [vmem:[#allocation2 + $0x21] sm:$0xff] }
  0xf5   : > { %991 = vrot.lane.b32.xlu0 %v2928_v3, %s2426_s30  ;;  %v257_v3 = vld [vmem:[%s2492_s25 + $0xf8] sm:$0xff]  ;;  %v783_v43 = vpop.permute.xlu2 %782 }
  0xf6   : > { %977 = vrot.lane.b32.xlu2 %v2837_v62, %s2426_s30  ;;  %v293_v61 = vmul.f32 %v2481_v1, %v257_v3  ;;  %867 = vst.msk [vmem:[#allocation3 + $0x60] sm:$0xff] %vm854_vm4, %v783_v43 }
  0xf7   : > { %v779_v46 = vpop.permute.xlu0 %778  ;;  %987 = vrot.lane.b32.xlu1 %v2898_v30, %s2426_s30 }
  0xf8   : > { %865 = vst.msk [vmem:[#allocation3 + $0x50] sm:$0xff] %vm854_vm4, %v779_v46  ;;  %v329_v30 = vadd.f32 %v2497_v2, %v293_v61 }
  0xf9   : > { %v775_v14 = vpop.permute.xlu1 %774 }
  0xfa   : > { %863 = vst.msk [vmem:[#allocation3 + $0x40] sm:$0xff] %vm854_vm4, %v775_v14 }
  0xfd   : > { %997 = vrot.lane.b32.xlu0 %v2955_v56, %s2426_s30  ;;  %v361_v56 = vmax.f32 %v329_v30, 0.0  ;;  %v789_v40 = vpop.permute.xlu2 %788  ;;  %v3145_v30 = vld [vmem:[#allocation2 + $0x31] sm:$0xff] }
  0xfe   : > { %983 = vrot.lane.b32.xlu2 %v2864_v11, %s2426_s30  ;;  %870 = vst.msk [vmem:[#allocation3 + $0x78] sm:$0xff] %vm854_vm4, %v789_v40  ;;  %v3158_v40 = vld [vmem:[#allocation2 + $0x51] sm:$0xff] }
  0xff   : > { %v785_v53 = vpop.permute.xlu0 %784  ;;  %993 = vrot.lane.b32.xlu1 %v2925_v63, %s2426_s30  ;;  %436 = vst.msk [vmem:[#allocation2 + $0x189] sm:$0xff] %vm362_vm0, %v361_v56 }
 0x100   : > { %868 = vst.msk [vmem:[#allocation3 + $0x68] sm:$0xff] %vm854_vm4, %v785_v53 }
 0x101   : > { %v781_v57 = vpop.permute.xlu1 %780 }
 0x102   : > { %866 = vst.msk [vmem:[#allocation3 + $0x58] sm:$0xff] %vm854_vm4, %v781_v57 }
 0x105   : > { %1003 = vrot.lane.b32.xlu0 %v2982_v47, %s2426_s30 }
 0x106   : > { %989 = vrot.lane.b32.xlu2 %v2891_v23, %s2426_s30  ;;  %v3135_v53 = vld [vmem:[#allocation2 + $0x188] sm:$0xff] }
 0x107   : > { %v791_v1 = vpop.permute.xlu0 %790  ;;  %999 = vrot.lane.b32.xlu1 %v2952_v55, %s2426_s30 }
 0x108   : > { %871 = vst.msk [vmem:[#allocation3 + $0x80] sm:$0xff] %vm854_vm4, %v791_v1  ;;  %v795_v49 = vpop.permute.xlu2 %794 }
 0x109   : > { %v787_v2 = vpop.permute.xlu1 %786  ;;  %873 = vst.msk [vmem:[#allocation3 + $0x90] sm:$0xff] %vm854_vm4, %v795_v49 }
 0x10a   : > { %869 = vst.msk [vmem:[#allocation3 + $0x70] sm:$0xff] %vm854_vm4, %v787_v2 }
 0x10d   : > { %1009 = vrot.lane.b32.xlu0 %v3003_v35, %s2426_s30  ;;  %v917_v35 = vld [vmem:[#allocation2 + $0x180] sm:$0xff] }
 0x10e   : > { %995 = vrot.lane.b32.xlu2 %v2918_v51, %s2426_s30 }
 0x10f   : > { %v797_v63 = vpop.permute.xlu0 %796  ;;  %1005 = vrot.lane.b32.xlu1 %v2979_v21, %s2426_s30 }
 0x110   : > { %874 = vst.msk [vmem:[#allocation3 + $0x98] sm:$0xff] %vm854_vm4, %v797_v63  ;;  %v801_v29 = vpop.permute.xlu2 %800 }
 0x111   : > { %v793_v55 = vpop.permute.xlu1 %792  ;;  %876 = vst.msk [vmem:[#allocation3 + $0xa8] sm:$0xff] %vm854_vm4, %v801_v29  ;;  %v3178_v29 = vld [vmem:[#allocation2 + $0x99] sm:$0xff] }
 0x112   : > { %872 = vst.msk [vmem:[#allocation3 + $0x88] sm:$0xff] %vm854_vm4, %v793_v55  ;;  %v1088_v55 = vld [vmem:[#allocation2 + $0x79] sm:$0xff] }
 0x115   : > { %1144 = vrot.lane.b32.xlu0 %v1080_v41, %s2427_s6 }
 0x116   : > { %1001 = vrot.lane.b32.xlu2 %v2945_v28, %s2426_s30 }
 0x117   : > { %v803_v0 = vpop.permute.xlu0 %802  ;;  %1011 = vrot.lane.b32.xlu1 %v917_v35, %s2426_s30 }
 0x118   : > { %877 = vst.msk [vmem:[#allocation3 + $0xb0] sm:$0xff] %vm854_vm4, %v803_v0  ;;  %v807_v46 = vpop.permute.xlu2 %806 }
 0x119   : > { %v799_v38 = vpop.permute.xlu1 %798  ;;  %879 = vst.msk [vmem:[#allocation3 + $0xc0] sm:$0xff] %vm854_vm4, %v807_v46  ;;  %v1094_v46 = vld [vmem:[#allocation2 + $0xc1] sm:$0xff] }
 0x11a   : > { %875 = vst.msk [vmem:[#allocation3 + $0xa0] sm:$0xff] %vm854_vm4, %v799_v38 }
 0x11d   : > { %1150 = vrot.lane.b32.xlu0 %v2581_v24, %s2427_s6  ;;  %v3129_v24 = vld [vmem:[#allocation2 + $0x49] sm:$0xff] }
 0x11e   : > { %1007 = vrot.lane.b32.xlu2 %v2972_v33, %s2426_s30 }
 0x11f   : > { %v809_v51 = vpop.permute.xlu0 %808  ;;  %1146 = vrot.lane.b32.xlu1 %v1081_v4, %s2427_s6 }
 0x120   : > { %880 = vst.msk [vmem:[#allocation3 + $0xc8] sm:$0xff] %vm854_vm4, %v809_v51  ;;  %v813_v14 = vpop.permute.xlu2 %812 }
 0x121   : > { %v805_v48 = vpop.permute.xlu1 %804  ;;  %882 = vst.msk [vmem:[#allocation3 + $0xd8] sm:$0xff] %vm854_vm4, %v813_v14 }
 0x122   : > { %878 = vst.msk [vmem:[#allocation3 + $0xb8] sm:$0xff] %vm854_vm4, %v805_v48 }
 0x125   : > { %1156 = vrot.lane.b32.xlu0 %v2599_v39, %s2427_s6  ;;  %v1087_v39 = vld [vmem:[#allocation2 + $0x69] sm:$0xff] }
 0x126   : > { %1013 = vrot.lane.b32.xlu2 %v3135_v53, %s2426_s30 }
 0x127   : > { %v815_v28 = vpop.permute.xlu0 %814  ;;  %1152 = vrot.lane.b32.xlu1 %v3129_v24, %s2427_s6 }
 0x128   : > { %883 = vst.msk [vmem:[#allocation3 + $0xe0] sm:$0xff] %vm854_vm4, %v815_v28  ;;  %v819_v43 = vpop.permute.xlu2 %818 }
 0x129   : > { %v811_v3 = vpop.permute.xlu1 %810  ;;  %885 = vst.msk [vmem:[#allocation3 + $0xf0] sm:$0xff] %vm854_vm4, %v819_v43 }
 0x12a   : > { %881 = vst.msk [vmem:[#allocation3 + $0xd0] sm:$0xff] %vm854_vm4, %v811_v3  ;;  %v1097_v3 = vld [vmem:[#allocation2 + $0xe1] sm:$0xff] }
 0x12d   : > { %1162 = vrot.lane.b32.xlu0 %v2617_v54, %s2427_s6  ;;  %v3152_v54 = vld [vmem:[#allocation2 + $0x91] sm:$0xff] }
 0x12e   : > { %1148 = vrot.lane.b32.xlu2 %v3145_v30, %s2427_s6 }
 0x12f   : > { %v821_v33 = vpop.permute.xlu0 %820  ;;  %1158 = vrot.lane.b32.xlu1 %v1087_v39, %s2427_s6 }
 0x130   : > { %886 = vst.msk [vmem:[#allocation3 + $0xf8] sm:$0xff] %vm854_vm4, %v821_v33  ;;  %v954_v56 = vpop.permute.xlu2 %953 }
 0x131   : > { %v817_v61 = vpop.permute.xlu1 %816  ;;  %1049 = vst.msk [vmem:[#allocation3 + $0x8] sm:$0xff] %vm1047_vm5, %v954_v56 }
 0x132   : > { %884 = vst.msk [vmem:[#allocation3 + $0xe8] sm:$0xff] %vm854_vm4, %v817_v61  ;;  %v3208_v61 = vld [vmem:[#allocation2 + $0x181] sm:$0xff] }
 0x135   : > { %1168 = vrot.lane.b32.xlu0 %v2632_v5, %s2427_s6  ;;  %v3165_v5 = vld [vmem:[#allocation2 + $0xb1] sm:$0xff] }
 0x136   : > { %1154 = vrot.lane.b32.xlu2 %v3158_v40, %s2427_s6 }
 0x137   : > { %v956_v57 = vpop.permute.xlu0 %955  ;;  %1164 = vrot.lane.b32.xlu1 %v3152_v54, %s2427_s6 }
 0x138   : > { %1050 = vst.msk [vmem:[#allocation3 + $0x10] sm:$0xff] %vm1047_vm5, %v956_v57  ;;  %v960_v63 = vpop.permute.xlu2 %959  ;;  %v3210_v57 = vld [vmem:[#allocation2 + $0x109] sm:$0xff] }
 0x139   : > { %v952_v1 = vpop.permute.xlu1 %951  ;;  %1052 = vst.msk [vmem:[#allocation3 + $0x20] sm:$0xff] %vm1047_vm5, %v960_v63  ;;  %v3228_v63 = vld [vmem:[#allocation2 + $0x189] sm:$0xff] }
 0x13a   : > { %1048 = vst.msk [vmem:[#allocation3] sm:$0xff] %vm1047_vm5, %v952_v1 }
 0x13d   : > { %1174 = vrot.lane.b32.xlu0 %v2645_v15, %s2427_s6  ;;  %v1096_v15 = vld [vmem:[#allocation2 + $0xd9] sm:$0xff] }
 0x13e   : > { %1160 = vrot.lane.b32.xlu2 %v1088_v55, %s2427_s6 }
 0x13f   : > { %v962_v2 = vpop.permute.xlu0 %961  ;;  %1170 = vrot.lane.b32.xlu1 %v3165_v5, %s2427_s6 }
 0x140   : > { %1053 = vst.msk [vmem:[#allocation3 + $0x28] sm:$0xff] %vm1047_vm5, %v962_v2  ;;  %v966_v35 = vpop.permute.xlu2 %965  ;;  %v3221_v2 = vld [vmem:[#allocation2 + $0x129] sm:$0xff] }
 0x141   : > { %v958_v49 = vpop.permute.xlu1 %957  ;;  %1055 = vst.msk [vmem:[#allocation3 + $0x38] sm:$0xff] %vm1047_vm5, %v966_v35  ;;  %v3727_v35 = vld [vmem:[#allocation5_spill] sm:$0xff] }
 0x142   : > { %1051 = vst.msk [vmem:[#allocation3 + $0x18] sm:$0xff] %vm1047_vm5, %v958_v49 }
 0x145   : > { %1180 = vrot.lane.b32.xlu0 %v2652_v19, %s2427_s6  ;;  %v3185_v19 = vld [vmem:[#allocation2 + $0xf9] sm:$0xff] }
 0x146   : > { %1166 = vrot.lane.b32.xlu2 %v3178_v29, %s2427_s6 }
 0x147   : > { %v968_v41 = vpop.permute.xlu0 %967  ;;  %1176 = vrot.lane.b32.xlu1 %v1096_v15, %s2427_s6 }
 0x148   : > { %1056 = vst.msk [vmem:[#allocation3 + $0x40] sm:$0xff] %vm1047_vm5, %v968_v41  ;;  %v972_v4 = vpop.permute.xlu2 %971 }
 0x149   : > { %v964_v0 = vpop.permute.xlu1 %963  ;;  %1058 = vst.msk [vmem:[#allocation3 + $0x50] sm:$0xff] %vm1047_vm5, %v972_v4 }
 0x14a   : > { %1054 = vst.msk [vmem:[#allocation3 + $0x30] sm:$0xff] %vm1047_vm5, %v964_v0 }
 0x14d   : > { %1186 = vrot.lane.b32.xlu0 %v2670_v22, %s2427_s6  ;;  %v3195_v22 = vld [vmem:[#allocation2 + $0x121] sm:$0xff] }
 0x14e   : > { %1172 = vrot.lane.b32.xlu2 %v1094_v46, %s2427_s6 }
 0x14f   : > { %v974_v38 = vpop.permute.xlu0 %973  ;;  %1182 = vrot.lane.b32.xlu1 %v3185_v19, %s2427_s6 }
 0x150   : > { %1059 = vst.msk [vmem:[#allocation3 + $0x58] sm:$0xff] %vm1047_vm5, %v974_v38  ;;  %v978_v28 = vpop.permute.xlu2 %977  ;;  %v3729_v38 = vld [vmem:[#allocation7_spill] sm:$0xff] }
 0x151   : > { %v970_v51 = vpop.permute.xlu1 %969  ;;  %1061 = vst.msk [vmem:[#allocation3 + $0x68] sm:$0xff] %vm1047_vm5, %v978_v28 }
 0x152   : > { %1057 = vst.msk [vmem:[#allocation3 + $0x48] sm:$0xff] %vm1047_vm5, %v970_v51 }
 0x155   : > { %1192 = vrot.lane.b32.xlu0 %v2694_v26, %s2427_s6  ;;  %v1105_v26 = vld [vmem:[#allocation2 + $0x141] sm:$0xff] }
 0x156   : > { %1178 = vrot.lane.b32.xlu2 %v1097_v3, %s2427_s6 }
 0x157   : > { %v980_v48 = vpop.permute.xlu0 %979  ;;  %1188 = vrot.lane.b32.xlu1 %v3195_v22, %s2427_s6 }
 0x158   : > { %1062 = vst.msk [vmem:[#allocation3 + $0x70] sm:$0xff] %vm1047_vm5, %v980_v48  ;;  %v984_v33 = vpop.permute.xlu2 %983  ;;  %v3731_v48 = vld [vmem:[#allocation9_spill] sm:$0xff] }
 0x159   : > { %v976_v14 = vpop.permute.xlu1 %975  ;;  %1064 = vst.msk [vmem:[#allocation3 + $0x80] sm:$0xff] %vm1047_vm5, %v984_v33 }
 0x15a   : > { %1060 = vst.msk [vmem:[#allocation3 + $0x60] sm:$0xff] %vm1047_vm5, %v976_v14 }
 0x15d   : > { %1198 = vrot.lane.b32.xlu0 %v2779_v44, %s2427_s6 }
 0x15e   : > { %1184 = vrot.lane.b32.xlu2 %v3210_v57, %s2427_s6 }
 0x15f   : > { %v986_v39 = vpop.permute.xlu0 %985  ;;  %1194 = vrot.lane.b32.xlu1 %v1105_v26, %s2427_s6  ;;  %v3733_v26 = vld [vmem:[#allocation11_spill] sm:$0xff] }
 0x160   : > { %1065 = vst.msk [vmem:[#allocation3 + $0x88] sm:$0xff] %vm1047_vm5, %v986_v39  ;;  %v990_v56 = vpop.permute.xlu2 %989 }
 0x161   : > { %v982_v43 = vpop.permute.xlu1 %981  ;;  %1067 = vst.msk [vmem:[#allocation3 + $0x98] sm:$0xff] %vm1047_vm5, %v990_v56 }
 0x162   : > { %1063 = vst.msk [vmem:[#allocation3 + $0x78] sm:$0xff] %vm1047_vm5, %v982_v43 }
 0x165   : > { %1204 = vrot.lane.b32.xlu0 %v3208_v61, %s2427_s6 }
 0x166   : > { %1190 = vrot.lane.b32.xlu2 %v3221_v2, %s2427_s6 }
 0x167   : > { %v992_v44 = vpop.permute.xlu0 %991  ;;  %1200 = vrot.lane.b32.xlu1 %v2690_v25, %s2427_s6 }
 0x168   : > { %1068 = vst.msk [vmem:[#allocation3 + $0xa0] sm:$0xff] %vm1047_vm5, %v992_v44  ;;  %v996_v55 = vpop.permute.xlu2 %995  ;;  %v3735_v44 = vld [vmem:[#allocation13_spill] sm:$0xff] }
 0x169   : > { %v988_v1 = vpop.permute.xlu1 %987  ;;  %1070 = vst.msk [vmem:[#allocation3 + $0xb0] sm:$0xff] %vm1047_vm5, %v996_v55 }
 0x16a   : > { %1066 = vst.msk [vmem:[#allocation3 + $0x90] sm:$0xff] %vm1047_vm5, %v988_v1  ;;  %v3315_v1 = vld [vmem:[#allocation2 + $0x18a] sm:$0xff] }
 0x16d   : > { %1339 = vrot.lane.b32.xlu0 %v2825_v60, %s2428_s7 }
 0x16e   : > { %1196 = vrot.lane.b32.xlu2 %v2702_v27, %s2427_s6 }
 0x16f   : > { %v998_v49 = vpop.permute.xlu0 %997  ;;  %1206 = vrot.lane.b32.xlu1 %v3228_v63, %s2427_s6 }
 0x170   : > { %1071 = vst.msk [vmem:[#allocation3 + $0xb8] sm:$0xff] %vm1047_vm5, %v998_v49  ;;  %v1002_v15 = vpop.permute.xlu2 %1001 }
 0x171   : > { %v994_v25 = vpop.permute.xlu1 %993  ;;  %1073 = vst.msk [vmem:[#allocation3 + $0xc8] sm:$0xff] %vm1047_vm5, %v1002_v15  ;;  %v3737_v15 = vld [vmem:[#allocation14_spill] sm:$0xff] }
 0x172   : > { %1069 = vst.msk [vmem:[#allocation3 + $0xa8] sm:$0xff] %vm1047_vm5, %v994_v25 }
 0x175   : > { %1345 = vrot.lane.b32.xlu0 %v2851_v9, %s2428_s7 }
 0x176   : > { %1202 = vrot.lane.b32.xlu2 %v2727_v31, %s2427_s6 }
 0x177   : > { %v1004_v60 = vpop.permute.xlu0 %1003  ;;  %1341 = vrot.lane.b32.xlu1 %v2742_v34, %s2428_s7 }
 0x178   : > { %1074 = vst.msk [vmem:[#allocation3 + $0xd0] sm:$0xff] %vm1047_vm5, %v1004_v60  ;;  %v1008_v27 = vpop.permute.xlu2 %1007  ;;  %v1469_v60 = vld [vmem:[#allocation2 + $0x48] sm:$0xff] }
 0x179   : > { %v1000_v41 = vpop.permute.xlu1 %999  ;;  %1076 = vst.msk [vmem:[#allocation3 + $0xe0] sm:$0xff] %vm1047_vm5, %v1008_v27 }
 0x17a   : > { %1072 = vst.msk [vmem:[#allocation3 + $0xc0] sm:$0xff] %vm1047_vm5, %v1000_v41  ;;  %v1467_v41 = vld [vmem:[#allocation2 + $0x30] sm:$0xff] }
 0x17d   : > { %1351 = vrot.lane.b32.xlu0 %v2878_v20, %s2428_s7 }
 0x17e   : > { %1337 = vrot.lane.b32.xlu2 %v2752_v37, %s2428_s7 }
 0x17f   : > { %v1010_v9 = vpop.permute.xlu0 %1009  ;;  %1347 = vrot.lane.b32.xlu1 %v2771_v42, %s2428_s7 }
 0x180   : > { %1077 = vst.msk [vmem:[#allocation3 + $0xe8] sm:$0xff] %vm1047_vm5, %v1010_v9  ;;  %v1014_v20 = vpop.permute.xlu2 %1013 }
 0x181   : > { %v1006_v34 = vpop.permute.xlu1 %1005  ;;  %1079 = vst.msk [vmem:[#allocation3 + $0xf8] sm:$0xff] %vm1047_vm5, %v1014_v20  ;;  %v1470_v20 = vld [vmem:[#allocation2 + $0x50] sm:$0xff] }
 0x182   : > { %1075 = vst.msk [vmem:[#allocation3 + $0xd8] sm:$0xff] %vm1047_vm5, %v1006_v34  ;;  %v1472_v34 = vld [vmem:[#allocation2 + $0x68] sm:$0xff] }
 0x185   : > { %1357 = vrot.lane.b32.xlu0 %v2905_v36, %s2428_s7 }
 0x186   : > { %1343 = vrot.lane.b32.xlu2 %v2787_v45, %s2428_s7 }
 0x187   : > { %v1145_v31 = vpop.permute.xlu0 %1144  ;;  %1353 = vrot.lane.b32.xlu1 %v2800_v50, %s2428_s7 }
 0x188   : > { %1241 = vst.msk [vmem:[#allocation3] sm:$0xff] %vm1240_vm6, %v1145_v31  ;;  %v1149_v36 = vpop.permute.xlu2 %1148  ;;  %v3738_v31 = vld [vmem:[#allocation15_spill] sm:$0xff] }
 0x189   : > { %v1012_v42 = vpop.permute.xlu1 %1011  ;;  %1243 = vst.msk [vmem:[#allocation3 + $0x10] sm:$0xff] %vm1240_vm6, %v1149_v36 }
 0x18a   : > { %1078 = vst.msk [vmem:[#allocation3 + $0xf0] sm:$0xff] %vm1047_vm5, %v1012_v42 }
 0x18d   : > { %1363 = vrot.lane.b32.xlu0 %v2932_v13, %s2428_s7 }
 0x18e   : > { %1349 = vrot.lane.b32.xlu2 %v2809_v52, %s2428_s7 }
 0x18f   : > { %v1151_v37 = vpop.permute.xlu0 %1150  ;;  %1359 = vrot.lane.b32.xlu1 %v2823_v59, %s2428_s7 }
 0x190   : > { %1244 = vst.msk [vmem:[#allocation3 + $0x18] sm:$0xff] %vm1240_vm6, %v1151_v37  ;;  %v1155_v45 = vpop.permute.xlu2 %1154 }
 0x191   : > { %v1147_v50 = vpop.permute.xlu1 %1146  ;;  %1246 = vst.msk [vmem:[#allocation3 + $0x28] sm:$0xff] %vm1240_vm6, %v1155_v45 }
 0x192   : > { %1242 = vst.msk [vmem:[#allocation3 + $0x8] sm:$0xff] %vm1240_vm6, %v1147_v50  ;;  %v1475_v50 = vld [vmem:[#allocation2 + $0x90] sm:$0xff] }
 0x195   : > { %1369 = vrot.lane.b32.xlu0 %v2959_v12, %s2428_s7  ;;  %v3728_v12 = vld [vmem:[#allocation4_spill] sm:$0xff] }
 0x196   : > { %1355 = vrot.lane.b32.xlu2 %v3728_v12, %s2428_s7  ;;  %v1468_v12 = vld [vmem:[#allocation2 + $0x38] sm:$0xff] }
 0x197   : > { %v1157_v13 = vpop.permute.xlu0 %1156  ;;  %1365 = vrot.lane.b32.xlu1 %v3727_v35, %s2428_s7 }
 0x198   : > { %1247 = vst.msk [vmem:[#allocation3 + $0x30] sm:$0xff] %vm1240_vm6, %v1157_v13  ;;  %v1161_v52 = vpop.permute.xlu2 %1160  ;;  %v3340_v13 = vld [vmem:[#allocation2 + $0x182] sm:$0xff] }
 0x199   : > { %v1153_v59 = vpop.permute.xlu1 %1152  ;;  %1249 = vst.msk [vmem:[#allocation3 + $0x40] sm:$0xff] %vm1240_vm6, %v1161_v52 }
 0x19a   : > { %1245 = vst.msk [vmem:[#allocation3 + $0x20] sm:$0xff] %vm1240_vm6, %v1153_v59 }
 0x19d   : > { %1375 = vrot.lane.b32.xlu0 %v2986_v18, %s2428_s7  ;;  %v3730_v18 = vld [vmem:[#allocation6_spill] sm:$0xff] }
 0x19e   : > { %1361 = vrot.lane.b32.xlu2 %v3730_v18, %s2428_s7  ;;  %v1474_v18 = vld [vmem:[#allocation2 + $0x80] sm:$0xff] }
 0x19f   : > { %v1163_v0 = vpop.permute.xlu0 %1162  ;;  %1371 = vrot.lane.b32.xlu1 %v3729_v38, %s2428_s7  ;;  %v1471_v38 = vld [vmem:[#allocation2 + $0x60] sm:$0xff] }
 0x1a0   : > { %1250 = vst.msk [vmem:[#allocation3 + $0x48] sm:$0xff] %vm1240_vm6, %v1163_v0  ;;  %v1167_v46 = vpop.permute.xlu2 %1166 }
 0x1a1   : > { %v1159_v4 = vpop.permute.xlu1 %1158  ;;  %1252 = vst.msk [vmem:[#allocation3 + $0x58] sm:$0xff] %vm1240_vm6, %v1167_v46  ;;  %v1676_v46 = vld [vmem:[#allocation2 + $0xf1] sm:$0xff] }
 0x1a2   : > { %1248 = vst.msk [vmem:[#allocation3 + $0x38] sm:$0xff] %vm1240_vm6, %v1159_v4 }
 0x1a5   : > { %1381 = vrot.lane.b32.xlu0 %v3005_v8, %s2428_s7  ;;  %v3732_v8 = vld [vmem:[#allocation8_spill] sm:$0xff] }
 0x1a6   : > { %1367 = vrot.lane.b32.xlu2 %v3732_v8, %s2428_s7  ;;  %v1685_v8 = vld [vmem:[#allocation2 + $0x159] sm:$0xff] }
 0x1a7   : > { %v1169_v51 = vpop.permute.xlu0 %1168  ;;  %1377 = vrot.lane.b32.xlu1 %v3731_v48, %s2428_s7  ;;  %v1477_v48 = vld [vmem:[#allocation2 + $0xa8] sm:$0xff] }
 0x1a8   : > { %1253 = vst.msk [vmem:[#allocation3 + $0x60] sm:$0xff] %vm1240_vm6, %v1169_v51  ;;  %v1173_v3 = vpop.permute.xlu2 %1172 }
 0x1a9   : > { %v1165_v28 = vpop.permute.xlu1 %1164  ;;  %1255 = vst.msk [vmem:[#allocation3 + $0x70] sm:$0xff] %vm1240_vm6, %v1173_v3 }
 0x1aa   : > { %1251 = vst.msk [vmem:[#allocation3 + $0x50] sm:$0xff] %vm1240_vm6, %v1165_v28 }
 0x1ad   : > { %1387 = vrot.lane.b32.xlu0 %v3017_v17, %s2428_s7  ;;  %v3734_v17 = vld [vmem:[#allocation10_spill] sm:$0xff] }
 0x1ae   : > { %1373 = vrot.lane.b32.xlu2 %v3734_v17, %s2428_s7  ;;  %v1483_v17 = vld [vmem:[#allocation2 + $0xf0] sm:$0xff] }
 0x1af   : > { %v1175_v14 = vpop.permute.xlu0 %1174  ;;  %1383 = vrot.lane.b32.xlu1 %v3733_v26, %s2428_s7 }
 0x1b0   : > { %1256 = vst.msk [vmem:[#allocation3 + $0x78] sm:$0xff] %vm1240_vm6, %v1175_v14  ;;  %v1179_v43 = vpop.permute.xlu2 %1178  ;;  %v1480_v14 = vld [vmem:[#allocation2 + $0xc8] sm:$0xff] }
 0x1b1   : > { %v1171_v39 = vpop.permute.xlu1 %1170  ;;  %1258 = vst.msk [vmem:[#allocation3 + $0x88] sm:$0xff] %vm1240_vm6, %v1179_v43 }
 0x1b2   : > { %1254 = vst.msk [vmem:[#allocation3 + $0x68] sm:$0xff] %vm1240_vm6, %v1171_v39  ;;  %v1877_v39 = vld [vmem:[#allocation2 + $0x152] sm:$0xff] }
 0x1b5   : > { %1393 = vrot.lane.b32.xlu0 %v3027_v7, %s2428_s7  ;;  %v3736_v7 = vld [vmem:[#allocation12_spill] sm:$0xff] }
 0x1b6   : > { %1379 = vrot.lane.b32.xlu2 %v3736_v7, %s2428_s7  ;;  %v1878_v7 = vld [vmem:[#allocation2 + $0x15a] sm:$0xff] }
 0x1b7   : > { %v1181_v33 = vpop.permute.xlu0 %1180  ;;  %1389 = vrot.lane.b32.xlu1 %v3735_v44, %s2428_s7 }
 0x1b8   : > { %1259 = vst.msk [vmem:[#allocation3 + $0x90] sm:$0xff] %vm1240_vm6, %v1181_v33  ;;  %v1185_v55 = vpop.permute.xlu2 %1184  ;;  %v1869_v33 = vld [vmem:[#allocation2 + $0xf2] sm:$0xff] }
 0x1b9   : > { %v1177_v56 = vpop.permute.xlu1 %1176  ;;  %1261 = vst.msk [vmem:[#allocation3 + $0xa0] sm:$0xff] %vm1240_vm6, %v1185_v55 }
 0x1ba   : > { %1257 = vst.msk [vmem:[#allocation3 + $0x80] sm:$0xff] %vm1240_vm6, %v1177_v56  ;;  %v1661_v56 = vld [vmem:[#allocation2 + $0x39] sm:$0xff] }
 0x1bd   : > { %1399 = vrot.lane.b32.xlu0 %v3315_v1, %s2428_s7 }
 0x1be   : > { %1385 = vrot.lane.b32.xlu2 %v3737_v15, %s2428_s7  ;;  %v1684_v15 = vld [vmem:[#allocation2 + $0x151] sm:$0xff] }
 0x1bf   : > { %v1187_v49 = vpop.permute.xlu0 %1186  ;;  %1395 = vrot.lane.b32.xlu1 %v2984_v10, %s2428_s7 }
 0x1c0   : > { %1262 = vst.msk [vmem:[#allocation3 + $0xa8] sm:$0xff] %vm1240_vm6, %v1187_v49  ;;  %v1191_v27 = vpop.permute.xlu2 %1190 }
 0x1c1   : > { %v1183_v25 = vpop.permute.xlu1 %1182  ;;  %1264 = vst.msk [vmem:[#allocation3 + $0xb8] sm:$0xff] %vm1240_vm6, %v1191_v27  ;;  %v1862_v27 = vld [vmem:[#allocation2 + $0x9a] sm:$0xff] }
 0x1c2   : > { %1260 = vst.msk [vmem:[#allocation3 + $0x98] sm:$0xff] %vm1240_vm6, %v1183_v25 }
 0x1c5   : > { %1535 = vrot.lane.b32.xlu0 %v1469_v60, %s2429_s8  ;;  %v1853_v60 = vld [vmem:[#allocation2 + $0x32] sm:$0xff] }
 0x1c6   : > { %1391 = vrot.lane.b32.xlu2 %v3738_v31, %s2428_s7 }
 0x1c7   : > { %v1193_v9 = vpop.permute.xlu0 %1192  ;;  %1531 = vrot.lane.b32.xlu1 %v1467_v41, %s2429_s8 }
 0x1c8   : > { %1265 = vst.msk [vmem:[#allocation3 + $0xc0] sm:$0xff] %vm1240_vm6, %v1193_v9  ;;  %v1197_v37 = vpop.permute.xlu2 %1196 }
 0x1c9   : > { %v1189_v10 = vpop.permute.xlu1 %1188  ;;  %1267 = vst.msk [vmem:[#allocation3 + $0xd0] sm:$0xff] %vm1240_vm6, %v1197_v37  ;;  %v1485_v37 = vld [vmem:[#allocation2 + $0x108] sm:$0xff] }
 0x1ca   : > { %1263 = vst.msk [vmem:[#allocation3 + $0xb0] sm:$0xff] %vm1240_vm6, %v1189_v10  ;;  %v1870_v10 = vld [vmem:[#allocation2 + $0xfa] sm:$0xff] }
 0x1cd   : > { %1541 = vrot.lane.b32.xlu0 %v1472_v34, %s2429_s8  ;;  %v1854_v34 = vld [vmem:[#allocation2 + $0x3a] sm:$0xff] }
 0x1ce   : > { %1397 = vrot.lane.b32.xlu2 %v3340_v13, %s2428_s7 }
 0x1cf   : > { %v1199_v42 = vpop.permute.xlu0 %1198  ;;  %1537 = vrot.lane.b32.xlu1 %v1470_v20, %s2429_s8 }
 0x1d0   : > { %1268 = vst.msk [vmem:[#allocation3 + $0xd8] sm:$0xff] %vm1240_vm6, %v1199_v42  ;;  %v1203_v35 = vpop.permute.xlu2 %1202  ;;  %v1493_v42 = vld [vmem:[#allocation2 + $0x168] sm:$0xff] }
 0x1d1   : > { %v1195_v36 = vpop.permute.xlu1 %1194  ;;  %1270 = vst.msk [vmem:[#allocation3 + $0xe8] sm:$0xff] %vm1240_vm6, %v1203_v35  ;;  %v1679_v35 = vld [vmem:[#allocation2 + $0x111] sm:$0xff] }
 0x1d2   : > { %1266 = vst.msk [vmem:[#allocation3 + $0xc8] sm:$0xff] %vm1240_vm6, %v1195_v36 }
 0x1d5   : > { %1547 = vrot.lane.b32.xlu0 %v1475_v50, %s2429_s8 }
 0x1d6   : > { %1533 = vrot.lane.b32.xlu2 %v1468_v12, %s2429_s8 }
 0x1d7   : > { %v1205_v45 = vpop.permute.xlu0 %1204  ;;  %1543 = vrot.lane.b32.xlu1 %v2820_v58, %s2429_s8 }
 0x1d8   : > { %1271 = vst.msk [vmem:[#allocation3 + $0xf0] sm:$0xff] %vm1240_vm6, %v1205_v45  ;;  %v1338_v52 = vpop.permute.xlu2 %1337 }
 0x1d9   : > { %v1201_v59 = vpop.permute.xlu1 %1200  ;;  %1434 = vst.msk [vmem:[#allocation3] sm:$0xff] %vm1433_vm7, %v1338_v52  ;;  %v1871_v52 = vld [vmem:[#allocation2 + $0x10a] sm:$0xff] }
 0x1da   : > { %1269 = vst.msk [vmem:[#allocation3 + $0xe0] sm:$0xff] %vm1240_vm6, %v1201_v59  ;;  %v1494_v59 = vld [vmem:[#allocation2 + $0x170] sm:$0xff] }
 0x1dd   : > { %1553 = vrot.lane.b32.xlu0 %v2837_v62, %s2429_s8 }
 0x1de   : > { %1539 = vrot.lane.b32.xlu2 %v1471_v38, %s2429_s8 }
 0x1df   : > { %v1340_v0 = vpop.permute.xlu0 %1339  ;;  %1549 = vrot.lane.b32.xlu1 %v2847_v6, %s2429_s8 }
 0x1e0   : > { %1435 = vst.msk [vmem:[#allocation3 + $0x8] sm:$0xff] %vm1433_vm7, %v1340_v0  ;;  %v1344_v4 = vpop.permute.xlu2 %1343 }
 0x1e1   : > { %v1207_v58 = vpop.permute.xlu1 %1206  ;;  %1437 = vst.msk [vmem:[#allocation3 + $0x18] sm:$0xff] %vm1433_vm7, %v1344_v4 }
 0x1e2   : > { %1272 = vst.msk [vmem:[#allocation3 + $0xf8] sm:$0xff] %vm1240_vm6, %v1207_v58  ;;  %v1861_v58 = vld [vmem:[#allocation2 + $0x92] sm:$0xff] }
 0x1e5   : > { %1559 = vrot.lane.b32.xlu0 %v2864_v11, %s2429_s8 }
 0x1e6   : > { %1545 = vrot.lane.b32.xlu2 %v1474_v18, %s2429_s8  ;;  %v1486_v18 = vld [vmem:[#allocation2 + $0x110] sm:$0xff] }
 0x1e7   : > { %v1346_v62 = vpop.permute.xlu0 %1345  ;;  %1555 = vrot.lane.b32.xlu1 %v2874_v16, %s2429_s8 }
 0x1e8   : > { %1438 = vst.msk [vmem:[#allocation3 + $0x20] sm:$0xff] %vm1433_vm7, %v1346_v62  ;;  %v1350_v51 = vpop.permute.xlu2 %1349 }
 0x1e9   : > { %v1342_v6 = vpop.permute.xlu1 %1341  ;;  %1440 = vst.msk [vmem:[#allocation3 + $0x30] sm:$0xff] %vm1433_vm7, %v1350_v51 }
 0x1ea   : > { %1436 = vst.msk [vmem:[#allocation3 + $0x10] sm:$0xff] %vm1433_vm7, %v1342_v6  ;;  %v1880_v6 = vld [vmem:[#allocation2 + $0x172] sm:$0xff] }
 0x1ed   : > { %1565 = vrot.lane.b32.xlu0 %v2891_v23, %s2429_s8 }
 0x1ee   : > { %1551 = vrot.lane.b32.xlu2 %v1477_v48, %s2429_s8  ;;  %v1670_v48 = vld [vmem:[#allocation2 + $0xa9] sm:$0xff] }
 0x1ef   : > { %v1352_v11 = vpop.permute.xlu0 %1351  ;;  %1561 = vrot.lane.b32.xlu1 %v2901_v32, %s2429_s8 }
 0x1f0   : > { %1441 = vst.msk [vmem:[#allocation3 + $0x38] sm:$0xff] %vm1433_vm7, %v1352_v11  ;;  %v1356_v28 = vpop.permute.xlu2 %1355  ;;  %v1872_v11 = vld [vmem:[#allocation2 + $0x112] sm:$0xff] }
 0x1f1   : > { %v1348_v16 = vpop.permute.xlu1 %1347  ;;  %1443 = vst.msk [vmem:[#allocation3 + $0x48] sm:$0xff] %vm1433_vm7, %v1356_v28 }
 0x1f2   : > { %1439 = vst.msk [vmem:[#allocation3 + $0x28] sm:$0xff] %vm1433_vm7, %v1348_v16 }
 0x1f5   : > { %1756 = vrot.lane.b32.xlu0 %v1676_v46, %s2430_s9 }
 0x1f6   : > { %1557 = vrot.lane.b32.xlu2 %v1480_v14, %s2429_s8  ;;  %v1687_v14 = vld [vmem:[#allocation2 + $0x171] sm:$0xff] }
 0x1f7   : > { %v1358_v23 = vpop.permute.xlu0 %1357  ;;  %1579 = vrot.lane.b32.xlu1 %v2982_v47, %s2429_s8 }
 0x1f8   : > { %1444 = vst.msk [vmem:[#allocation3 + $0x50] sm:$0xff] %vm1433_vm7, %v1358_v23  ;;  %v1362_v26 = vpop.permute.xlu2 %1361 }
 0x1f9   : > { %v1354_v32 = vpop.permute.xlu1 %1353  ;;  %1446 = vst.msk [vmem:[#allocation3 + $0x60] sm:$0xff] %vm1433_vm7, %v1362_v26  ;;  %v1487_v26 = vld [vmem:[#allocation2 + $0x120] sm:$0xff] }
 0x1fa   : > { %1442 = vst.msk [vmem:[#allocation3 + $0x40] sm:$0xff] %vm1433_vm7, %v1354_v32 }
 0x1fd   : > { %1774 = vrot.lane.b32.xlu0 %v1685_v8, %s2430_s9  ;;  %v1856_v8 = vld [vmem:[#allocation2 + $0x52] sm:$0xff] }
 0x1fe   : > { %1563 = vrot.lane.b32.xlu2 %v1483_v17, %s2429_s8  ;;  %v2098_v17 = vld [vmem:[%s3700_s3 + $0x10] sm:$0x3] }
 0x1ff   : > { %v1364_v3 = vpop.permute.xlu0 %1363  ;;  %1758 = vrot.lane.b32.xlu1 %v3185_v19, %s2430_s9 }
 0x200   : > { %1447 = vst.msk [vmem:[#allocation3 + $0x68] sm:$0xff] %vm1433_vm7, %v1364_v3  ;;  %v1368_v44 = vpop.permute.xlu2 %1367 }
 0x201   : > { %v1360_v47 = vpop.permute.xlu1 %1359  ;;  %1449 = vst.msk [vmem:[#allocation3 + $0x78] sm:$0xff] %vm1433_vm7, %v1368_v44 }
 0x202   : > { %1445 = vst.msk [vmem:[#allocation3 + $0x58] sm:$0xff] %vm1433_vm7, %v1360_v47  ;;  %v1879_v47 = vld [vmem:[#allocation2 + $0x16a] sm:$0xff] }
 0x205   : > { %1965 = vrot.lane.b32.xlu0 %v1877_v39, %s2431_s10  ;;  %v1863_v39 = vld [vmem:[#allocation2 + $0xaa] sm:$0xff] }
 0x206   : > { %1581 = vrot.lane.b32.xlu2 %v2979_v21, %s2429_s8 }
 0x207   : > { %v1370_v43 = vpop.permute.xlu0 %1369  ;;  %1949 = vrot.lane.b32.xlu1 %v1869_v33, %s2431_s10  ;;  %v2112_v33 = vunpack.c.l.b16 %v2098_v17 }
 0x208   : > { %1450 = vst.msk [vmem:[#allocation3 + $0x80] sm:$0xff] %vm1433_vm7, %v1370_v43  ;;  %v1374_v55 = vpop.permute.xlu2 %1373 }
 0x209   : > { %v1366_v19 = vpop.permute.xlu1 %1365  ;;  %1452 = vst.msk [vmem:[#allocation3 + $0x90] sm:$0xff] %vm1433_vm7, %v1374_v55 }
 0x20a   : > { %1448 = vst.msk [vmem:[#allocation3 + $0x70] sm:$0xff] %vm1433_vm7, %v1366_v19 }
 0x20d   : > { %1726 = vrot.lane.b32.xlu0 %v1661_v56, %s2430_s9 }
 0x20e   : > { %1772 = vrot.lane.b32.xlu2 %v1684_v15, %s2430_s9 }
 0x20f   : > { %v1376_v49 = vpop.permute.xlu0 %1375  ;;  %1967 = vrot.lane.b32.xlu1 %v1878_v7, %s2431_s10  ;;  %v1488_v7 = vld [vmem:[#allocation2 + $0x128] sm:$0xff] }
 0x210   : > { %1453 = vst.msk [vmem:[#allocation3 + $0x98] sm:$0xff] %vm1433_vm7, %v1376_v49  ;;  %v1380_v21 = vpop.permute.xlu2 %1379  ;;  %v2385_v49 = vld [vmem:[%s3700_s3 + $0x8] sm:$0xff] }
 0x211   : > { %v1372_v25 = vpop.permute.xlu1 %1371  ;;  %1455 = vst.msk [vmem:[#allocation3 + $0xa8] sm:$0xff] %vm1433_vm7, %v1380_v21 }
 0x212   : > { %1451 = vst.msk [vmem:[#allocation3 + $0x88] sm:$0xff] %vm1433_vm7, %v1372_v25 }
 0x215   : > { %1917 = vrot.lane.b32.xlu0 %v1853_v60, %s2431_s10  ;;  %v1855_v60 = vld [vmem:[#allocation2 + $0x4a] sm:$0xff] }
 0x216   : > { %1951 = vrot.lane.b32.xlu2 %v1870_v10, %s2431_s10 }
 0x217   : > { %v1382_v41 = vpop.permute.xlu0 %1381  ;;  %1740 = vrot.lane.b32.xlu1 %v3152_v54, %s2430_s9 }
 0x218   : > { %1456 = vst.msk [vmem:[#allocation3 + $0xb0] sm:$0xff] %vm1433_vm7, %v1382_v41  ;;  %v1386_v20 = vpop.permute.xlu2 %1385 }
 0x219   : > { %v1378_v9 = vpop.permute.xlu1 %1377  ;;  %1458 = vst.msk [vmem:[#allocation3 + $0xc0] sm:$0xff] %vm1433_vm7, %v1386_v20 }
 0x21a   : > { %1454 = vst.msk [vmem:[#allocation3 + $0xa0] sm:$0xff] %vm1433_vm7, %v1378_v9  ;;  %v1874_v9 = vld [vmem:[#allocation2 + $0x12a] sm:$0xff] }
 0x21d   : > { %1935 = vrot.lane.b32.xlu0 %v1862_v27, %s2431_s10  ;;  %v1864_v27 = vld [vmem:[#allocation2 + $0xb2] sm:$0xff] }
 0x21e   : > { %1724 = vrot.lane.b32.xlu2 %v3145_v30, %s2430_s9 }
 0x21f   : > { %v1388_v31 = vpop.permute.xlu0 %1387  ;;  %1919 = vrot.lane.b32.xlu1 %v1854_v34, %s2431_s10  ;;  %v1664_v34 = vld [vmem:[#allocation2 + $0x61] sm:$0xff] }
 0x220   : > { %1459 = vst.msk [vmem:[#allocation3 + $0xc8] sm:$0xff] %vm1433_vm7, %v1388_v31  ;;  %v1392_v50 = vpop.permute.xlu2 %1391  ;;  %v1495_v31 = vld [vmem:[#allocation2 + $0x180] sm:$0xff] }
 0x221   : > { %v1384_v54 = vpop.permute.xlu1 %1383  ;;  %1461 = vst.msk [vmem:[#allocation3 + $0xd8] sm:$0xff] %vm1433_vm7, %v1392_v50 }
 0x222   : > { %1457 = vst.msk [vmem:[#allocation3 + $0xb8] sm:$0xff] %vm1433_vm7, %v1384_v54 }
 0x225   : > { %1583 = vrot.lane.b32.xlu0 %v1493_v42, %s2429_s8  ;;  %v1673_v42 = vld [vmem:[#allocation2 + $0xc9] sm:$0xff] }
 0x226   : > { %1742 = vrot.lane.b32.xlu2 %v3178_v29, %s2430_s9  ;;  %v1686_v29 = vld [vmem:[#allocation2 + $0x169] sm:$0xff] }
 0x227   : > { %v1394_v36 = vpop.permute.xlu0 %1393  ;;  %1567 = vrot.lane.b32.xlu1 %v1485_v37, %s2429_s8  ;;  %v1665_v37 = vld [vmem:[#allocation2 + $0x69] sm:$0xff] }
 0x228   : > { %1462 = vst.msk [vmem:[#allocation3 + $0xe0] sm:$0xff] %vm1433_vm7, %v1394_v36  ;;  %v1398_v12 = vpop.permute.xlu2 %1397 }
 0x229   : > { %v1390_v45 = vpop.permute.xlu1 %1389  ;;  %1464 = vst.msk [vmem:[#allocation3 + $0xf0] sm:$0xff] %vm1433_vm7, %v1398_v12 }
 0x22a   : > { %1460 = vst.msk [vmem:[#allocation3 + $0xd0] sm:$0xff] %vm1433_vm7, %v1390_v45 }
 0x22d   : > { %1762 = vrot.lane.b32.xlu0 %v1679_v35, %s2430_s9  ;;  %v1865_v35 = vld [vmem:[#allocation2 + $0xc2] sm:$0xff] }
 0x22e   : > { %1933 = vrot.lane.b32.xlu2 %v1861_v58, %s2431_s10 }
 0x22f   : > { %v1400_v30 = vpop.permute.xlu0 %1399  ;;  %1585 = vrot.lane.b32.xlu1 %v1494_v59, %s2429_s8  ;;  %v1873_v59 = vld [vmem:[#allocation2 + $0x122] sm:$0xff] }
 0x230   : > { %1465 = vst.msk [vmem:[#allocation3 + $0xf8] sm:$0xff] %vm1433_vm7, %v1400_v30  ;;  %v1534_v62 = vpop.permute.xlu2 %1533 }
 0x231   : > { %v1396_v0 = vpop.permute.xlu1 %1395  ;;  %1629 = vst.msk [vmem:[#allocation3 + $0x8] sm:$0xff] %vm1627_vm8, %v1534_v62 }
 0x232   : > { %1463 = vst.msk [vmem:[#allocation3 + $0xe8] sm:$0xff] %vm1433_vm7, %v1396_v0 }
 0x235   : > { %1953 = vrot.lane.b32.xlu0 %v1871_v52, %s2431_s10 }
 0x236   : > { %1569 = vrot.lane.b32.xlu2 %v1486_v18, %s2429_s8 }
 0x237   : > { %v1536_v38 = vpop.permute.xlu0 %1535  ;;  %1776 = vrot.lane.b32.xlu1 %v1686_v29, %s2430_s9  ;;  %v1490_v29 = vld [vmem:[#allocation2 + $0x140] sm:$0xff] }
 0x238   : > { %1630 = vst.msk [vmem:[#allocation3 + $0x10] sm:$0xff] %vm1627_vm8, %v1536_v38  ;;  %v1540_v16 = vpop.permute.xlu2 %1539 }
 0x239   : > { %v1532_v4 = vpop.permute.xlu1 %1531  ;;  %1632 = vst.msk [vmem:[#allocation3 + $0x20] sm:$0xff] %vm1627_vm8, %v1540_v16  ;;  %v1682_v16 = vld [vmem:[#allocation2 + $0x139] sm:$0xff] }
 0x23a   : > { %1628 = vst.msk [vmem:[#allocation3] sm:$0xff] %vm1627_vm8, %v1532_v4 }
 0x23d   : > { %1971 = vrot.lane.b32.xlu0 %v1880_v6, %s2431_s10  ;;  %v1866_v6 = vld [vmem:[#allocation2 + $0xca] sm:$0xff] }
 0x23e   : > { %1760 = vrot.lane.b32.xlu2 %v3210_v57, %s2430_s9 }
 0x23f   : > { %v1542_v51 = vpop.permute.xlu0 %1541  ;;  %1955 = vrot.lane.b32.xlu1 %v1872_v11, %s2431_s10 }
 0x240   : > { %1633 = vst.msk [vmem:[#allocation3 + $0x28] sm:$0xff] %vm1627_vm8, %v1542_v51  ;;  %v1546_v28 = vpop.permute.xlu2 %1545 }
 0x241   : > { %v1538_v46 = vpop.permute.xlu1 %1537  ;;  %1635 = vst.msk [vmem:[#allocation3 + $0x38] sm:$0xff] %vm1627_vm8, %v1546_v28 }
 0x242   : > { %1631 = vst.msk [vmem:[#allocation3 + $0x18] sm:$0xff] %vm1627_vm8, %v1538_v46  ;;  %v1672_v46 = vld [vmem:[#allocation2 + $0xc1] sm:$0xff] }
 0x245   : > { %1744 = vrot.lane.b32.xlu0 %v1670_v48, %s2430_s9 }
 0x246   : > { %1778 = vrot.lane.b32.xlu2 %v1687_v14, %s2430_s9  ;;  %v1691_v14 = vld [vmem:[#allocation2 + $0x1a1] sm:$0xff] }
 0x247   : > { %v1548_v23 = vpop.permute.xlu0 %1547  ;;  %1728 = vrot.lane.b32.xlu1 %v3129_v24, %s2430_s9 }
 0x248   : > { %1636 = vst.msk [vmem:[#allocation3 + $0x40] sm:$0xff] %vm1627_vm8, %v1548_v23  ;;  %v1552_v57 = vpop.permute.xlu2 %1551 }
 0x249   : > { %v1544_v32 = vpop.permute.xlu1 %1543  ;;  %1638 = vst.msk [vmem:[#allocation3 + $0x50] sm:$0xff] %vm1627_vm8, %v1552_v57  ;;  %v1858_v57 = vld [vmem:[#allocation2 + $0x6a] sm:$0xff] }
 0x24a   : > { %1634 = vst.msk [vmem:[#allocation3 + $0x30] sm:$0xff] %vm1627_vm8, %v1544_v32 }
 0x24d   : > { %1923 = vrot.lane.b32.xlu0 %v1856_v8, %s2431_s10 }
 0x24e   : > { %1969 = vrot.lane.b32.xlu2 %v1879_v47, %s2431_s10 }
 0x24f   : > { %v1554_v3 = vpop.permute.xlu0 %1553  ;;  %1746 = vrot.lane.b32.xlu1 %v3165_v5, %s2430_s9  ;;  %v2115_v5 = vpack.c.b16 %v2112_v33, %v2112_v33 }
 0x250   : > { %1639 = vst.msk [vmem:[#allocation3 + $0x58] sm:$0xff] %vm1627_vm8, %v1554_v3  ;;  %v1558_v44 = vpop.permute.xlu2 %1557 }
 0x251   : > { %v1550_v24 = vpop.permute.xlu1 %1549  ;;  %1641 = vst.msk [vmem:[#allocation3 + $0x68] sm:$0xff] %vm1627_vm8, %v1558_v44  ;;  %v2169_v56 = vsel %vm2167_vm9, %v2115_v5, 0  ;;  %v1883_v44 = vld [vmem:[#allocation2 + $0x19a] sm:$0xff] }
 0x252   : > { %1637 = vst.msk [vmem:[#allocation3 + $0x48] sm:$0xff] %vm1627_vm8, %v1550_v24  ;;  %2387 = vmatpush.bf16.msra.mxu2 %v2169_v56  ;;  %2388 = vmatpush.bf16.msra.mxu3 %v2169_v56  ;;  %v1489_v5 = vld [vmem:[#allocation2 + $0x138] sm:$0xff] }
 0x253   : > { %2386 = vmatpush.bf16.msra.mxu1 %v2169_v56  ;;  %2176 = vmatpush.bf16.msra.mxu0 %v2169_v56 }
 0x255   : > { %1571 = vrot.lane.b32.xlu0 %v1487_v26, %s2429_s8 }
 0x256   : > { %1730 = vrot.lane.b32.xlu2 %v3158_v40, %s2430_s9  ;;  %2390 = vmatpush.bf16.msra.mxu2 %v2385_v49 }
 0x257   : > { %v1560_v43 = vpop.permute.xlu0 %1559  ;;  %1937 = vrot.lane.b32.xlu1 %v1863_v39, %s2431_s10  ;;  %2391 = vmatpush.bf16.msra.mxu3 %v2385_v49  ;;  %v1683_v39 = vld [vmem:[#allocation2 + $0x141] sm:$0xff] }
 0x258   : > { %1642 = vst.msk [vmem:[#allocation3 + $0x70] sm:$0xff] %vm1627_vm8, %v1560_v43  ;;  %v1564_v25 = vpop.permute.xlu2 %1563  ;;  %2389 = vmatpush.bf16.msra.mxu1 %v2385_v49  ;;  %2177 = vmatpush.bf16.msra.mxu0 %v2385_v49 }
 0x259   : > { %v1556_v19 = vpop.permute.xlu1 %1555  ;;  %1644 = vst.msk [vmem:[#allocation3 + $0x80] sm:$0xff] %vm1627_vm8, %v1564_v25  ;;  %v1498_v25 = vld [vmem:[#allocation2 + $0x1a0] sm:$0xff] }
 0x25a   : > { %1640 = vst.msk [vmem:[#allocation3 + $0x60] sm:$0xff] %vm1627_vm8, %v1556_v19  ;;  %v1875_v19 = vld [vmem:[#allocation2 + $0x13a] sm:$0xff] }
 0x25d   : > { %1589 = vrot.lane.b32.xlu0 %v3135_v53, %s2429_s8  ;;  %v2384_v53 = vld [vmem:[%s3700_s3] sm:$0xff] }
 0x25e   : > { %2393 = vmatpush.bf16.msra.mxu2 %v2384_v53  ;;  %2394 = vmatpush.bf16.msra.mxu3 %v2384_v53 }
 0x25f   : > { %v1566_v55 = vpop.permute.xlu0 %1565  ;;  %1573 = vrot.lane.b32.xlu1 %v1488_v7, %s2429_s8  ;;  %2392 = vmatpush.bf16.msra.mxu1 %v2384_v53 }
 0x260   : > { %1645 = vst.msk [vmem:[#allocation3 + $0x88] sm:$0xff] %vm1627_vm8, %v1566_v55  ;;  %1921 = vrot.lane.b32.xlu2 %v1855_v60, %s2431_s10  ;;  %2178 = vmatpush.bf16.msra.mxu0 %v2384_v53  ;;  %v1582_v41 = vpop.permute.xlu2 %1581  ;;  %v1667_v55 = vld [vmem:[#allocation2 + $0x81] sm:$0xff] }
 0x261   : > { %v1562_v40 = vpop.permute.xlu1 %1561  ;;  %1653 = vst.msk [vmem:[#allocation3 + $0xc8] sm:$0xff] %vm1627_vm8, %v1582_v41  ;;  %v1884_v53 = vld [vmem:[#allocation2 + $0x1a2] sm:$0xff]  ;;  %v1859_v41 = vld [vmem:[#allocation2 + $0x7a] sm:$0xff] }
 0x262   : > { %1643 = vst.msk [vmem:[#allocation3 + $0x78] sm:$0xff] %vm1627_vm8, %v1562_v40 }
 0x265   : > { %1780 = vrot.lane.b32.xlu0 %v3208_v61, %s2430_s9 }
 0x267   : > { %v1757_v15 = vpop.permute.xlu0 %1756  ;;  %1764 = vrot.lane.b32.xlu1 %v3195_v22, %s2430_s9 }
 0x268   : > { %1837 = vst.msk [vmem:[#allocation3 + $0x80] sm:$0xff] %vm1820_vm10, %v1757_v15  ;;  %1939 = vrot.lane.b32.xlu2 %v1864_v27, %s2431_s10  ;;  %v1773_v10 = vpop.permute.xlu2 %1772 }
 0x269   : > { %v1580_v21 = vpop.permute.xlu1 %1579 }
 0x26a   : > { %1652 = vst.msk [vmem:[#allocation3 + $0xc0] sm:$0xff] %vm1627_vm8, %v1580_v21  ;;  %v1690_v21 = vld [vmem:[#allocation2 + $0x199] sm:$0xff] }
 0x26b   : > { %1845 = vst.msk [vmem:[#allocation3 + $0xc0] sm:$0xff] %vm1820_vm10, %v1773_v10 }
 0x26d   : > { %1959 = vrot.lane.b32.xlu0 %v1874_v9, %s2431_s10  ;;  %v1674_v9 = vld [vmem:[#allocation2 + $0xd9] sm:$0xff] }
 0x26f   : > { %v1775_v61 = vpop.permute.xlu0 %1774  ;;  %1782 = vrot.lane.b32.xlu1 %v3228_v63, %s2430_s9 }
 0x270   : > { %1846 = vst.msk [vmem:[#allocation3 + $0xc8] sm:$0xff] %vm1820_vm10, %v1775_v61  ;;  %1587 = vrot.lane.b32.xlu2 %v1495_v31, %s2429_s8  ;;  %v1952_v54 = vpop.permute.xlu2 %1951  ;;  %v1868_v31 = vld [vmem:[#allocation2 + $0xe2] sm:$0xff] }
 0x271   : > { %v1759_v22 = vpop.permute.xlu1 %1758 }
 0x272   : > { %1838 = vst.msk [vmem:[#allocation3 + $0x88] sm:$0xff] %vm1820_vm10, %v1759_v22 }
 0x273   : > { %2031 = vst.msk [vmem:[#allocation3 + $0x88] sm:$0xff] %vm2013_vm11, %v1952_v54  ;;  %v1876_v54 = vld [vmem:[#allocation2 + $0x142] sm:$0xff] }
 0x275   : > { %1732 = vrot.lane.b32.xlu0 %v1664_v34, %s2430_s9 }
 0x277   : > { %v1966_v20 = vpop.permute.xlu0 %1965  ;;  %1973 = vrot.lane.b32.xlu1 %v3340_v13, %s2431_s10 }
 0x278   : > { %2038 = vst.msk [vmem:[#allocation3 + $0xc0] sm:$0xff] %vm2013_vm11, %v1966_v20  ;;  %1766 = vrot.lane.b32.xlu2 %v3221_v2, %s2430_s9  ;;  %v1725_v50 = vpop.permute.xlu2 %1724  ;;  %v1857_v2 = vld [vmem:[#allocation2 + $0x62] sm:$0xff] }
 0x279   : > { %v1950_v63 = vpop.permute.xlu1 %1949  ;;  %1821 = vst.msk [vmem:[#allocation3] sm:$0xff] %vm1820_vm10, %v1725_v50 }
 0x27a   : > { %2030 = vst.msk [vmem:[#allocation3 + $0x80] sm:$0xff] %vm2013_vm11, %v1950_v63  ;;  %v2063_v45 = vld [vmem:[#allocation3 + $0x88] sm:$0xff] }
 0x27d   : > { %1750 = vrot.lane.b32.xlu0 %v1673_v42, %s2430_s9 }
 0x27f   : > { %v1727_v36 = vpop.permute.xlu0 %1726  ;;  %1734 = vrot.lane.b32.xlu1 %v1665_v37, %s2430_s9  ;;  %v2070_v38 = vld [vmem:[#allocation3 + $0xc0] sm:$0xff] }
 0x280   : > { %1822 = vst.msk [vmem:[#allocation3 + $0x8] sm:$0xff] %vm1820_vm10, %v1727_v36  ;;  %1957 = vrot.lane.b32.xlu2 %v1873_v59, %s2431_s10  ;;  %v1743_v52 = vpop.permute.xlu2 %1742  ;;  %v1860_v36 = vld [vmem:[#allocation2 + $0x82] sm:$0xff] }
 0x281   : > { %v1968_v13 = vpop.permute.xlu1 %1967  ;;  %v2062_v30 = vld [vmem:[#allocation3 + $0x80] sm:$0xff]  ;;  %1830 = vst.msk [vmem:[#allocation3 + $0x48] sm:$0xff] %vm1820_vm10, %v1743_v52 }
 0x282   : > { %2039 = vst.msk [vmem:[#allocation3 + $0xc8] sm:$0xff] %vm2013_vm11, %v1968_v13  ;;  %v2086_v12 = vpack.c.bf16 %v2063_v45, %v2062_v30 }
 0x284   : > { %2372 = vmatmul.msk.bf16.vlgmr.msra.gmra.mxu2 %vm2118_vm12, %v2086_v12 }
 0x285   : > { %1941 = vrot.lane.b32.xlu0 %v1865_v35, %s2431_s10  ;;  %v1666_v35 = vld [vmem:[#allocation2 + $0x79] sm:$0xff] }
 0x287   : > { %v1918_v0 = vpop.permute.xlu0 %1917  ;;  %1925 = vrot.lane.b32.xlu1 %v1857_v2, %s2431_s10 }
 0x288   : > { %2014 = vst.msk [vmem:[#allocation3] sm:$0xff] %vm2013_vm11, %v1918_v0  ;;  %1975 = vrot.lane.b32.xlu2 %v3315_v1, %s2431_s10  ;;  %v1934_v11 = vpop.permute.xlu2 %1933  ;;  %v1497_v1 = vld [vmem:[#allocation2 + $0x198] sm:$0xff] }
 0x289   : > { %v1741_v58 = vpop.permute.xlu1 %1740  ;;  %v2071_v62 = vld [vmem:[#allocation3 + $0xc8] sm:$0xff] }
 0x28a   : > { %1829 = vst.msk [vmem:[#allocation3 + $0x40] sm:$0xff] %vm1820_vm10, %v1741_v58  ;;  %v2090_v4 = vpack.c.bf16 %v2071_v62, %v2070_v38  ;;  %v1675_v58 = vld [vmem:[#allocation2 + $0xe1] sm:$0xff] }
 0x28b   : > { %2022 = vst.msk [vmem:[#allocation3 + $0x40] sm:$0xff] %vm2013_vm11, %v1934_v11 }
 0x28c   : > { %2376 = vmatmul.msk.bf16.vlgmr.msra.gmra.mxu3 %vm2118_vm12, %v2090_v4 }
 0x28d   : > { %1577 = vrot.lane.b32.xlu0 %v1490_v29, %s2429_s8 }
 0x28f   : > { %v1936_v18 = vpop.permute.xlu0 %1935  ;;  %1943 = vrot.lane.b32.xlu1 %v1866_v6, %s2431_s10  ;;  %v2046_v24 = vld [vmem:[#allocation3] sm:$0xff]  ;;  %v1867_v6 = vld [vmem:[#allocation2 + $0xda] sm:$0xff] }
 0x290   : > { %2023 = vst.msk [vmem:[#allocation3 + $0x48] sm:$0xff] %vm2013_vm11, %v1936_v18  ;;  %1748 = vrot.lane.b32.xlu2 %v1672_v46, %s2430_s9  ;;  %v1570_v23 = vpop.permute.xlu2 %1569 }
 0x291   : > { %v1920_v51 = vpop.permute.xlu1 %1919  ;;  %1647 = vst.msk [vmem:[#allocation3 + $0x98] sm:$0xff] %vm1627_vm8, %v1570_v23 }
 0x292   : > { %2015 = vst.msk [vmem:[#allocation3 + $0x8] sm:$0xff] %vm2013_vm11, %v1920_v51  ;;  %v2054_v32 = vld [vmem:[#allocation3 + $0x40] sm:$0xff] }
 0x295   : > { %1768 = vrot.lane.b32.xlu0 %v1682_v16, %s2430_s9 }
 0x297   : > { %v1584_v48 = vpop.permute.xlu0 %1583  ;;  %v2055_v28 = vld [vmem:[#allocation3 + $0x48] sm:$0xff]  ;;  %1591 = vrot.lane.b32.xlu1 %v1497_v1, %s2429_s8 }
 0x298   : > { %1654 = vst.msk [vmem:[#allocation3 + $0xd0] sm:$0xff] %vm1627_vm8, %v1584_v48  ;;  %v2082_v8 = vpack.c.bf16 %v2055_v28, %v2054_v32  ;;  %1927 = vrot.lane.b32.xlu2 %v1858_v57, %s2431_s10  ;;  %v1761_v33 = vpop.permute.xlu2 %1760 }
 0x299   : > { %v1568_v3 = vpop.permute.xlu1 %1567  ;;  %v2047_v26 = vld [vmem:[#allocation3 + $0x8] sm:$0xff] }
 0x29a   : > { %2368 = vmatmul.msk.bf16.vlgmr.msra.gmra.mxu1 %vm2118_vm12, %v2082_v8  ;;  %1646 = vst.msk [vmem:[#allocation3 + $0x90] sm:$0xff] %vm1627_vm8, %v1568_v3  ;;  %v2078_v47 = vpack.c.bf16 %v2047_v26, %v2046_v24 }
 0x29b   : > { %1839 = vst.msk [vmem:[#allocation3 + $0x90] sm:$0xff] %vm1820_vm10, %v1761_v33 }
 0x29c   : > { %2364 = vmatmul.msk.bf16.vlgmr.msra.gmra.mxu0 %vm2118_vm12, %v2078_v47 }
 0x29d   : > { %1786 = vrot.lane.b32.xlu0 %v1691_v14, %s2430_s9 }
 0x29f   : > { %v1763_v17 = vpop.permute.xlu0 %1762  ;;  %1770 = vrot.lane.b32.xlu1 %v1683_v39, %s2430_s9 }
 0x2a0   : > { %1840 = vst.msk [vmem:[#allocation3 + $0x98] sm:$0xff] %vm1820_vm10, %v1763_v17  ;;  %1575 = vrot.lane.b32.xlu2 %v1489_v5, %s2429_s8  ;;  %v1779_v7 = vpop.permute.xlu2 %1778 }
 0x2a1   : > { %v1586_v43 = vpop.permute.xlu1 %1585 }
 0x2a2   : > { %1655 = vst.msk [vmem:[#allocation3 + $0xd8] sm:$0xff] %vm1627_vm8, %v1586_v43 }
 0x2a3   : > { %1848 = vst.msk [vmem:[#allocation3 + $0xd8] sm:$0xff] %vm1820_vm10, %v1779_v7 }
 0x2a5   : > { %1977 = vrot.lane.b32.xlu0 %v1883_v44, %s2431_s10 }
 0x2a7   : > { %v1954_v56 = vpop.permute.xlu0 %1953  ;;  %1961 = vrot.lane.b32.xlu1 %v1875_v19, %s2431_s10 }
 0x2a8   : > { %2032 = vst.msk [vmem:[#allocation3 + $0x90] sm:$0xff] %vm2013_vm11, %v1954_v56  ;;  %1593 = vrot.lane.b32.xlu2 %v1498_v25, %s2429_s8  ;;  %v1970_v60 = vpop.permute.xlu2 %1969 }
 0x2a9   : > { %v1777_v49 = vpop.permute.xlu1 %1776 }
 0x2aa   : > { %1847 = vst.msk [vmem:[#allocation3 + $0xd0] sm:$0xff] %vm1820_vm10, %v1777_v49 }
 0x2ab   : > { %2040 = vst.msk [vmem:[#allocation3 + $0xd0] sm:$0xff] %vm2013_vm11, %v1970_v60 }
 0x2ad   : > { %1738 = vrot.lane.b32.xlu0 %v1667_v55, %s2430_s9 }
 0x2af   : > { %v1972_v40 = vpop.permute.xlu0 %1971  ;;  %1979 = vrot.lane.b32.xlu1 %v1884_v53, %s2431_s10  ;;  %v2064_v63 = vld [vmem:[#allocation3 + $0x90] sm:$0xff] }
 0x2b0   : > { %2041 = vst.msk [vmem:[#allocation3 + $0xd8] sm:$0xff] %vm2013_vm11, %v1972_v40  ;;  %1784 = vrot.lane.b32.xlu2 %v1690_v21, %s2430_s9  ;;  %v1731_v61 = vpop.permute.xlu2 %1730  ;;  %v3598_v53 = vld [vmem:[%s3701_s4] ss:$0 sm:$0xff] }
 0x2b1   : > { %v1956_v15 = vpop.permute.xlu1 %1955  ;;  %1824 = vst.msk [vmem:[#allocation3 + $0x18] sm:$0xff] %vm1820_vm10, %v1731_v61 }
 0x2b2   : > { %2033 = vst.msk [vmem:[#allocation3 + $0x98] sm:$0xff] %vm2013_vm11, %v1956_v15  ;;  %v2072_v22 = vld [vmem:[#allocation3 + $0xd0] sm:$0xff] }
 0x2b5   : > { %1929 = vrot.lane.b32.xlu0 %v1859_v41, %s2431_s10 }
 0x2b7   : > { %v1745_v27 = vpop.permute.xlu0 %1744  ;;  %v2073_v10 = vld [vmem:[#allocation3 + $0xd8] sm:$0xff]  ;;  %1752 = vrot.lane.b32.xlu1 %v1674_v9, %s2430_s9 }
 0x2b8   : > { %1831 = vst.msk [vmem:[#allocation3 + $0x50] sm:$0xff] %vm1820_vm10, %v1745_v27  ;;  %v2091_v34 = vpack.c.bf16 %v2073_v10, %v2072_v22  ;;  %1963 = vrot.lane.b32.xlu2 %v1876_v54, %s2431_s10 }
 0x2b9   : > { %v1729_v20 = vpop.permute.xlu1 %1728  ;;  %v2065_v42 = vld [vmem:[#allocation3 + $0x98] sm:$0xff] }
 0x2ba   : > { %2377 = vmatmul.msk.bf16.gmra.mxu3 %vm2118_vm12, %v2091_v34  ;;  %1823 = vst.msk [vmem:[#allocation3 + $0x10] sm:$0xff] %vm1820_vm10, %v1729_v20  ;;  %v2087_v37 = vpack.c.bf16 %v2065_v42, %v2064_v63  ;;  %v1922_v45 = vpop.permute.xlu2 %1921 }
 0x2bb   : > { %2016 = vst.msk [vmem:[#allocation3 + $0x10] sm:$0xff] %vm2013_vm11, %v1922_v45 }
 0x2bc   : > { %2373 = vmatmul.msk.bf16.gmra.mxu2 %vm2118_vm12, %v2087_v37 }
 0x2bd   : > { %1947 = vrot.lane.b32.xlu0 %v1868_v31, %s2431_s10 }
 0x2bf   : > { %v1924_v50 = vpop.permute.xlu0 %1923  ;;  %1931 = vrot.lane.b32.xlu1 %v1860_v36, %s2431_s10 }
 0x2c0   : > { %2017 = vst.msk [vmem:[#allocation3 + $0x18] sm:$0xff] %vm2013_vm11, %v1924_v50  ;;  %1736 = vrot.lane.b32.xlu2 %v1666_v35, %s2430_s9 }
 0x2c1   : > { %v1747_v13 = vpop.permute.xlu1 %1746 }
 0x2c2   : > { %1832 = vst.msk [vmem:[#allocation3 + $0x58] sm:$0xff] %vm1820_vm10, %v1747_v13  ;;  %v1940_v30 = vpop.permute.xlu2 %1939  ;;  %v2048_v2 = vld [vmem:[#allocation3 + $0x10] sm:$0xff] }
 0x2c3   : > { %2025 = vst.msk [vmem:[#allocation3 + $0x58] sm:$0xff] %vm2013_vm11, %v1940_v30 }
 0x2c7   : > { %v1572_v59 = vpop.permute.xlu0 %1571  ;;  %v2049_v12 = vld [vmem:[#allocation3 + $0x18] sm:$0xff] }
 0x2c8   : > { %1648 = vst.msk [vmem:[#allocation3 + $0xa0] sm:$0xff] %vm1627_vm8, %v1572_v59  ;;  %v2079_v0 = vpack.c.bf16 %v2049_v12, %v2048_v2  ;;  %1754 = vrot.lane.b32.xlu2 %v1675_v58, %s2430_s9 }
 0x2c9   : > { %v1938_v52 = vpop.permute.xlu1 %1937 }
 0x2ca   : > { %2365 = vmatmul.msk.bf16.gmra.mxu0 %vm2118_vm12, %v2079_v0  ;;  %2024 = vst.msk [vmem:[#allocation3 + $0x50] sm:$0xff] %vm2013_vm11, %v1938_v52  ;;  %v1588_v38 = vpop.permute.xlu2 %1587  ;;  %v2057_v62 = vld [vmem:[#allocation3 + $0x58] sm:$0xff] }
 0x2cb   : > { %1656 = vst.msk [vmem:[#allocation3 + $0xe0] sm:$0xff] %vm1627_vm8, %v1588_v38 }
 0x2cf   : > { %v1590_v29 = vpop.permute.xlu0 %1589 }
 0x2d0   : > { %1657 = vst.msk [vmem:[#allocation3 + $0xe8] sm:$0xff] %vm1627_vm8, %v1590_v29  ;;  %1945 = vrot.lane.b32.xlu2 %v1867_v6, %s2431_s10 }
 0x2d1   : > { %v1574_v4 = vpop.permute.xlu1 %1573  ;;  %v2056_v18 = vld [vmem:[#allocation3 + $0x50] sm:$0xff] }
 0x2d2   : > { %1649 = vst.msk [vmem:[#allocation3 + $0xa8] sm:$0xff] %vm1627_vm8, %v1574_v4  ;;  %v2083_v11 = vpack.c.bf16 %v2057_v62, %v2056_v18  ;;  %v1767_v16 = vpop.permute.xlu2 %1766 }
 0x2d3   : > { %1842 = vst.msk [vmem:[#allocation3 + $0xa8] sm:$0xff] %vm1820_vm10, %v1767_v16 }
 0x2d4   : > { %2369 = vmatmul.msk.bf16.gmra.mxu1 %vm2118_vm12, %v2083_v11 }
 0x2d7   : > { %v1781_v51 = vpop.permute.xlu0 %1780 }
 0x2d8   : > { %1849 = vst.msk [vmem:[#allocation3 + $0xe0] sm:$0xff] %vm1820_vm10, %v1781_v51 }
 0x2d9   : > { %v1765_v46 = vpop.permute.xlu1 %1764 }
 0x2da   : > { %1841 = vst.msk [vmem:[#allocation3 + $0xa0] sm:$0xff] %vm1820_vm10, %v1765_v46  ;;  %v1958_v48 = vpop.permute.xlu2 %1957 }
 0x2db   : > { %2034 = vst.msk [vmem:[#allocation3 + $0xa0] sm:$0xff] %vm2013_vm11, %v1958_v48 }
 0x2df   : > { %v1960_v1 = vpop.permute.xlu0 %1959 }
 0x2e0   : > { %2035 = vst.msk [vmem:[#allocation3 + $0xa8] sm:$0xff] %vm2013_vm11, %v1960_v1 }
 0x2e1   : > { %v1783_v23 = vpop.permute.xlu1 %1782 }
 0x2e2   : > { %1850 = vst.msk [vmem:[#allocation3 + $0xe8] sm:$0xff] %vm1820_vm10, %v1783_v23  ;;  %v1976_v32 = vpop.permute.xlu2 %1975  ;;  %v2066_v14 = vld [vmem:[#allocation3 + $0xa0] sm:$0xff] }
 0x2e3   : > { %2043 = vst.msk [vmem:[#allocation3 + $0xe8] sm:$0xff] %vm2013_vm11, %v1976_v32 }
 0x2e7   : > { %v1733_v28 = vpop.permute.xlu0 %1732  ;;  %v2067_v8 = vld [vmem:[#allocation3 + $0xa8] sm:$0xff] }
 0x2e8   : > { %1825 = vst.msk [vmem:[#allocation3 + $0x20] sm:$0xff] %vm1820_vm10, %v1733_v28  ;;  %v2088_v3 = vpack.c.bf16 %v2067_v8, %v2066_v14 }
 0x2e9   : > { %v1974_v57 = vpop.permute.xlu1 %1973 }
 0x2ea   : > { %2374 = vmatmul.msk.bf16.gmra.mxu2 %vm2118_vm12, %v2088_v3  ;;  %2042 = vst.msk [vmem:[#allocation3 + $0xe0] sm:$0xff] %vm2013_vm11, %v1974_v57  ;;  %v1749_v26 = vpop.permute.xlu2 %1748  ;;  %v2075_v47 = vld [vmem:[#allocation3 + $0xe8] sm:$0xff] }
 0x2eb   : > { %1833 = vst.msk [vmem:[#allocation3 + $0x60] sm:$0xff] %vm1820_vm10, %v1749_v26 }
 0x2ef   : > { %v1751_v24 = vpop.permute.xlu0 %1750 }
 0x2f0   : > { %1834 = vst.msk [vmem:[#allocation3 + $0x68] sm:$0xff] %vm1820_vm10, %v1751_v24 }
 0x2f1   : > { %v1735_v39 = vpop.permute.xlu1 %1734  ;;  %v2074_v17 = vld [vmem:[#allocation3 + $0xe0] sm:$0xff] }
 0x2f2   : > { %1826 = vst.msk [vmem:[#allocation3 + $0x28] sm:$0xff] %vm1820_vm10, %v1735_v39  ;;  %v2092_v33 = vpack.c.bf16 %v2075_v47, %v2074_v17  ;;  %v1928_v44 = vpop.permute.xlu2 %1927 }
 0x2f3   : > { %2019 = vst.msk [vmem:[#allocation3 + $0x28] sm:$0xff] %vm2013_vm11, %v1928_v44 }
 0x2f4   : > { %2378 = vmatmul.msk.bf16.gmra.mxu3 %vm2118_vm12, %v2092_v33 }
 0x2f7   : > { %v1942_v43 = vpop.permute.xlu0 %1941 }
 0x2f8   : > { %2026 = vst.msk [vmem:[#allocation3 + $0x60] sm:$0xff] %vm2013_vm11, %v1942_v43 }
 0x2f9   : > { %v1926_v5 = vpop.permute.xlu1 %1925 }
 0x2fa   : > { %2018 = vst.msk [vmem:[#allocation3 + $0x20] sm:$0xff] %vm2013_vm11, %v1926_v5  ;;  %v1576_v56 = vpop.permute.xlu2 %1575  ;;  %v2051_v7 = vld [vmem:[#allocation3 + $0x28] sm:$0xff] }
 0x2fb   : > { %1650 = vst.msk [vmem:[#allocation3 + $0xb0] sm:$0xff] %vm1627_vm8, %v1576_v56 }
 0x2ff   : > { %v1578_v19 = vpop.permute.xlu0 %1577  ;;  %v2058_v9 = vld [vmem:[#allocation3 + $0x60] sm:$0xff] }
 0x300   : > { %1651 = vst.msk [vmem:[#allocation3 + $0xb8] sm:$0xff] %vm1627_vm8, %v1578_v19 }
 0x301   : > { %v1944_v49 = vpop.permute.xlu1 %1943  ;;  %v2050_v55 = vld [vmem:[#allocation3 + $0x20] sm:$0xff] }
 0x302   : > { %2027 = vst.msk [vmem:[#allocation3 + $0x68] sm:$0xff] %vm2013_vm11, %v1944_v49  ;;  %v2080_v25 = vpack.c.bf16 %v2051_v7, %v2050_v55  ;;  %v1594_v60 = vpop.permute.xlu2 %1593 }
 0x303   : > { %1659 = vst.msk [vmem:[#allocation3 + $0xf8] sm:$0xff] %vm1627_vm8, %v1594_v60 }
 0x304   : > { %2366 = vmatmul.msk.bf16.gmra.mxu0 %vm2118_vm12, %v2080_v25 }
 0x307   : > { %v1769_v40 = vpop.permute.xlu0 %1768  ;;  %v2220_v15 = vpop.f32.mrf.mxu2 }
 0x308   : > { %1843 = vst.msk [vmem:[#allocation3 + $0xb0] sm:$0xff] %vm1820_vm10, %v1769_v40  ;;  %v2221_v41 = vadd.f32 %v3598_v53, %v2220_v15 }
 0x309   : > { %v1592_v21 = vpop.permute.xlu1 %1591  ;;  %v2059_v27 = vld [vmem:[#allocation3 + $0x68] sm:$0xff] }
 0x30a   : > { %1658 = vst.msk [vmem:[#allocation3 + $0xf0] sm:$0xff] %vm1627_vm8, %v1592_v21  ;;  %v2084_v61 = vpack.c.bf16 %v2059_v27, %v2058_v9  ;;  %v1785_v22 = vpop.permute.xlu2 %1784 }
 0x30b   : > { %2276 = vst [vmem:[%s3607_s24 + $0x80] sm:$0xff] %v2221_v41 }
 0x30c   : > { %2370 = vmatmul.msk.bf16.gmra.mxu1 %vm2118_vm12, %v2084_v61  ;;  %1851 = vst.msk [vmem:[#allocation3 + $0xf0] sm:$0xff] %vm1820_vm10, %v1785_v22 }
 0x30f   : > { %v1787_v10 = vpop.permute.xlu0 %1786  ;;  %v2222_v34 = vpop.f32.mrf.mxu2 }
 0x310   : > { %1852 = vst.msk [vmem:[#allocation3 + $0xf8] sm:$0xff] %vm1820_vm10, %v1787_v10  ;;  %v2240_v31 = vpop.f32.mrf.mxu3  ;;  %v2223_v20 = vadd.f32 %v3598_v53, %v2222_v34 }
 0x311   : > { %v2241_v54 = vadd.f32 %v3598_v53, %v2240_v31  ;;  %v1771_v63 = vpop.permute.xlu1 %1770 }
 0x312   : > { %1844 = vst.msk [vmem:[#allocation3 + $0xb8] sm:$0xff] %vm1820_vm10, %v1771_v63  ;;  %v1964_v37 = vpop.permute.xlu2 %1963 }
 0x313   : > { %2277 = vst [vmem:[%s3607_s24 + $0x88] sm:$0xff] %v2223_v20 }
 0x314   : > { %2284 = vst [vmem:[%s3607_s24 + $0xc0] sm:$0xff] %v2241_v54 }
 0x315   : > { %2037 = vst.msk [vmem:[#allocation3 + $0xb8] sm:$0xff] %vm2013_vm11, %v1964_v37 }
 0x317   : > { %v1978_v42 = vpop.permute.xlu0 %1977  ;;  %v2200_v36 = vpop.f32.mrf.mxu1 }
 0x318   : > { %2044 = vst.msk [vmem:[#allocation3 + $0xf0] sm:$0xff] %vm2013_vm11, %v1978_v42  ;;  %v2201_v50 = vadd.f32 %v3598_v53, %v2200_v36  ;;  %v2242_v45 = vpop.f32.mrf.mxu3 }
 0x319   : > { %v2243_v13 = vadd.f32 %v3598_v53, %v2242_v45  ;;  %v1962_v35 = vpop.permute.xlu1 %1961  ;;  %v2180_v59 = vpop.f32.mrf.mxu0 }
 0x31a   : > { %2268 = vst [vmem:[%s3607_s24 + $0x40] sm:$0xff] %v2201_v50  ;;  %v2181_v30 = vadd.f32 %v3598_v53, %v2180_v59  ;;  %v1737_v2 = vpop.permute.xlu2 %1736 }
 0x31b   : > { %2285 = vst [vmem:[%s3607_s24 + $0xc8] sm:$0xff] %v2243_v13 }
 0x31c   : > { %2036 = vst.msk [vmem:[#allocation3 + $0xb0] sm:$0xff] %vm2013_vm11, %v1962_v35  ;;  %v2069_v29 = vld [vmem:[#allocation3 + $0xb8] sm:$0xff] }
 0x31d   : > { %2260 = vst [vmem:[%s3607_s24] sm:$0xff] %v2181_v30 }
 0x31e   : > { %1827 = vst.msk [vmem:[#allocation3 + $0x30] sm:$0xff] %vm1820_vm10, %v1737_v2 }
 0x31f   : > { %v1739_v12 = vpop.permute.xlu0 %1738  ;;  %v2202_v0 = vpop.f32.mrf.mxu1  ;;  %v2076_v16 = vld [vmem:[#allocation3 + $0xf0] sm:$0xff] }
 0x320   : > { %1828 = vst.msk [vmem:[#allocation3 + $0x38] sm:$0xff] %vm1820_vm10, %v1739_v12  ;;  %v2203_v52 = vadd.f32 %v3598_v53, %v2202_v0 }
 0x321   : > { %v1980_v58 = vpop.permute.xlu1 %1979  ;;  %v2182_v38 = vpop.f32.mrf.mxu0 }
 0x322   : > { %2269 = vst [vmem:[%s3607_s24 + $0x48] sm:$0xff] %v2203_v52  ;;  %v2183_v62 = vadd.f32 %v3598_v53, %v2182_v38  ;;  %v1755_v11 = vpop.permute.xlu2 %1754 }
 0x323   : > { %2045 = vst.msk [vmem:[#allocation3 + $0xf8] sm:$0xff] %vm2013_vm11, %v1980_v58  ;;  %v2068_v4 = vld [vmem:[#allocation3 + $0xb0] sm:$0xff] }
 0x324   : > { %v2089_v6 = vpack.c.bf16 %v2069_v29, %v2068_v4  ;;  %2261 = vst [vmem:[%s3607_s24 + $0x8] sm:$0xff] %v2183_v62 }
 0x325   : > { %1836 = vst.msk [vmem:[#allocation3 + $0x78] sm:$0xff] %vm1820_vm10, %v1755_v11 }
 0x326   : > { %2375 = vmatmul.msk.bf16.gmra.mxu2 %vm2118_vm12, %v2089_v6 }
 0x327   : > { %v1930_v18 = vpop.permute.xlu0 %1929 }
 0x328   : > { %2020 = vst.msk [vmem:[#allocation3 + $0x30] sm:$0xff] %vm2013_vm11, %v1930_v18 }
 0x329   : > { %v1753_v51 = vpop.permute.xlu1 %1752 }
 0x32a   : > { %1835 = vst.msk [vmem:[#allocation3 + $0x70] sm:$0xff] %vm1820_vm10, %v1753_v51  ;;  %v2077_v46 = vld [vmem:[#allocation3 + $0xf8] sm:$0xff]  ;;  %v1946_v23 = vpop.permute.xlu2 %1945 }
 0x32b   : > { %v2093_v1 = vpack.c.bf16 %v2077_v46, %v2076_v16  ;;  %2028 = vst.msk [vmem:[#allocation3 + $0x70] sm:$0xff] %vm2013_vm11, %v1946_v23 }
 0x32d   : > { %2379 = vmatmul.msk.bf16.gmra.mxu3 %vm2118_vm12, %v2093_v1 }
 0x32f   : > { %v1948_v48 = vpop.permute.xlu0 %1947  ;;  %v2052_v3 = vld [vmem:[#allocation3 + $0x30] sm:$0xff] }
 0x330   : > { %2029 = vst.msk [vmem:[#allocation3 + $0x78] sm:$0xff] %vm2013_vm11, %v1948_v48 }
 0x331   : > { %v1932_v28 = vpop.permute.xlu1 %1931 }
 0x332   : > { %2021 = vst.msk [vmem:[#allocation3 + $0x38] sm:$0xff] %vm2013_vm11, %v1932_v28  ;;  %v2060_v8 = vld [vmem:[#allocation3 + $0x70] sm:$0xff] }
 0x337   : > { %v2061_v32 = vld [vmem:[#allocation3 + $0x78] sm:$0xff] }
 0x338   : > { %v2085_v14 = vpack.c.bf16 %v2061_v32, %v2060_v8 }
 0x339   : > { %v2053_v57 = vld [vmem:[#allocation3 + $0x38] sm:$0xff] }
 0x33a   : > { %2371 = vmatmul.msk.bf16.gmra.mxu1 %vm2118_vm12, %v2085_v14  ;;  %v2081_v24 = vpack.c.bf16 %v2053_v57, %v2052_v3 }
 0x33c   : > { %2367 = vmatmul.msk.bf16.gmra.mxu0 %vm2118_vm12, %v2081_v24 }
 0x33d   : > { %v2245_v26 = vpop.f32.mrf.mxu3 }
 0x33e   : > { %v2246_v47 = vadd.f32 %v3598_v53, %v2245_v26 }
 0x33f   : > { %v2225_v39 = vpop.f32.mrf.mxu2 }
 0x340   : > { %2286 = vst [vmem:[%s3607_s24 + $0xd0] sm:$0xff] %v2246_v47  ;;  %v2226_v17 = vadd.f32 %v3598_v53, %v2225_v39 }
 0x342   : > { %2278 = vst [vmem:[%s3607_s24 + $0x90] sm:$0xff] %v2226_v17 }
 0x345   : > { %v2247_v33 = vpop.f32.mrf.mxu3 }
 0x346   : > { %v2248_v43 = vadd.f32 %v3598_v53, %v2247_v33 }
 0x347   : > { %v2185_v44 = vpop.f32.mrf.mxu0  ;;  %v2227_v19 = vpop.f32.mrf.mxu2 }
 0x348   : > { %2287 = vst [vmem:[%s3607_s24 + $0xd8] sm:$0xff] %v2248_v43  ;;  %v2186_v5 = vadd.f32 %v3598_v53, %v2185_v44  ;;  %v2228_v56 = vadd.f32 %v3598_v53, %v2227_v19 }
 0x34a   : > { %2262 = vst [vmem:[%s3607_s24 + $0x10] sm:$0xff] %v2186_v5 }
 0x34b   : > { %2279 = vst [vmem:[%s3607_s24 + $0x98] sm:$0xff] %v2228_v56 }
 0x34f   : > { %v2187_v7 = vpop.f32.mrf.mxu0 }
 0x350   : > { %v2188_v49 = vadd.f32 %v3598_v53, %v2187_v7 }
 0x351   : > { %v2205_v55 = vpop.f32.mrf.mxu1 }
 0x352   : > { %2263 = vst [vmem:[%s3607_s24 + $0x18] sm:$0xff] %v2188_v49  ;;  %v2206_v25 = vadd.f32 %v3598_v53, %v2205_v55 }
 0x354   : > { %2270 = vst [vmem:[%s3607_s24 + $0x50] sm:$0xff] %v2206_v25 }
 0x359   : > { %v2207_v40 = vpop.f32.mrf.mxu1 }
 0x35a   : > { %v2208_v60 = vadd.f32 %v3598_v53, %v2207_v40 }
 0x35c   : > { %2271 = vst [vmem:[%s3607_s24 + $0x58] sm:$0xff] %v2208_v60 }
 0x36d   : > { %v2230_v15 = vpop.f32.mrf.mxu2 }
 0x36e   : > { %v2231_v41 = vadd.f32 %v3598_v53, %v2230_v15 }
 0x370   : > { %2280 = vst [vmem:[%s3607_s24 + $0xa0] sm:$0xff] %v2231_v41 }
 0x375   : > { %v2232_v21 = vpop.f32.mrf.mxu2 }
 0x376   : > { %v2233_v9 = vadd.f32 %v3598_v53, %v2232_v21 }
 0x377   : > { %v2250_v27 = vpop.f32.mrf.mxu3 }
 0x378   : > { %2281 = vst [vmem:[%s3607_s24 + $0xa8] sm:$0xff] %v2233_v9  ;;  %v2251_v61 = vadd.f32 %v3598_v53, %v2250_v27 }
 0x37a   : > { %2288 = vst [vmem:[%s3607_s24 + $0xe0] sm:$0xff] %v2251_v61 }
 0x37f   : > { %v2252_v10 = vpop.f32.mrf.mxu3 }
 0x380   : > { %v2253_v22 = vadd.f32 %v3598_v53, %v2252_v10 }
 0x381   : > { %v2190_v34 = vpop.f32.mrf.mxu0 }
 0x382   : > { %2289 = vst [vmem:[%s3607_s24 + $0xe8] sm:$0xff] %v2253_v22  ;;  %v2191_v31 = vadd.f32 %v3598_v53, %v2190_v34 }
 0x384   : > { %2264 = vst [vmem:[%s3607_s24 + $0x20] sm:$0xff] %v2191_v31 }
 0x389   : > { %v2192_v20 = vpop.f32.mrf.mxu0  ;;  %v2210_v54 = vpop.f32.mrf.mxu1 }
 0x38a   : > { %v2193_v63 = vadd.f32 %v3598_v53, %v2192_v20  ;;  %v2211_v42 = vadd.f32 %v3598_v53, %v2210_v54 }
 0x38c   : > { %2265 = vst [vmem:[%s3607_s24 + $0x28] sm:$0xff] %v2193_v63 }
 0x38d   : > { %2272 = vst [vmem:[%s3607_s24 + $0x60] sm:$0xff] %v2211_v42 }
 0x391   : > { %v2212_v37 = vpop.f32.mrf.mxu1 }
 0x392   : > { %v2213_v36 = vadd.f32 %v3598_v53, %v2212_v37 }
 0x394   : > { %2273 = vst [vmem:[%s3607_s24 + $0x68] sm:$0xff] %v2213_v36 }
 0x3a9   : > { %v2235_v50 = vpop.f32.mrf.mxu2 }
 0x3aa   : > { %v2236_v45 = vadd.f32 %v3598_v53, %v2235_v50 }
 0x3ac   : > { %2282 = vst [vmem:[%s3607_s24 + $0xb0] sm:$0xff] %v2236_v45 }
 0x3b0   : > { %v2255_v13 = vpop.f32.mrf.mxu3 }
 0x3b1   : > { %v2237_v35 = vpop.f32.mrf.mxu2  ;;  %v2256_v59 = vadd.f32 %v3598_v53, %v2255_v13 }
 0x3b2   : > { %v2238_v30 = vadd.f32 %v3598_v53, %v2237_v35 }
 0x3b3   : > { %2290 = vst [vmem:[%s3607_s24 + $0xf0] sm:$0xff] %v2256_v59 }
 0x3b4   : > { %2283 = vst [vmem:[%s3607_s24 + $0xb8] sm:$0xff] %v2238_v30 }
 0x3b7   : > { %v2215_v12 = vpop.f32.mrf.mxu1 }
 0x3b8   : > { %v2216_v2 = vadd.f32 %v3598_v53, %v2215_v12  ;;  %v2257_v0 = vpop.f32.mrf.mxu3 }
 0x3b9   : > { %v2258_v52 = vadd.f32 %v3598_v53, %v2257_v0  ;;  %v2195_v58 = vpop.f32.mrf.mxu0 }
 0x3ba   : > { %2274 = vst [vmem:[%s3607_s24 + $0x70] sm:$0xff] %v2216_v2  ;;  %v2196_v29 = vadd.f32 %v3598_v53, %v2195_v58 }
 0x3bb   : > { %2291 = vst [vmem:[%s3607_s24 + $0xf8] sm:$0xff] %v2258_v52 }
 0x3bc   : > { %2266 = vst [vmem:[%s3607_s24 + $0x30] sm:$0xff] %v2196_v29 }
 0x3bf   : > { %v2217_v38 = vpop.f32.mrf.mxu1 }
 0x3c0   : > { %v2218_v62 = vadd.f32 %v3598_v53, %v2217_v38 }
 0x3c1   : > { %v2197_v4 = vpop.f32.mrf.mxu0 }
 0x3c2   : > { %2275 = vst [vmem:[%s3607_s24 + $0x78] sm:$0xff] %v2218_v62  ;;  %v2198_v6 = vadd.f32 %v3598_v53, %v2197_v4 }
 0x3c4   : > { %2267 = vst [vmem:[%s3607_s24 + $0x38] sm:$0xff] %v2198_v6 }
 0x3c5 PF: > { %s15_s18 = sadd.s32 1, %s2421_s18  }
 0x3c6   : > { %p12_p4 = scmp.ge.s32.totalorder %s15_s18, 4  }
 0x3c8   :  { %14 = sbr.rel (!%p12_p4) target bundleno = 1 (0x1), region = 73 }

// kernel: dense_block_forward.3
= control target key start
LH: loop header
LB: loop body
LE: loop exit
PB: predicated region body
PF: predicated region fallthrough
CT: control target
= control target key end

     0   :  { %s2494_s18 = smov 0   ;;  %s3735_s0 = inlined_call_operand.vmem [shape: f32[2,16,16,8], index: 0, kind: input, shape index: {}]   ;;  %s3736_s1 = inlined_call_operand.vmem [shape: f32[1,8], index: 1, kind: input, shape index: {}]   ;;  %s3737_s2 = inlined_call_operand.vmem [shape: f32[1,8], index: 2, kind: input, shape index: {}]   ;;  %s3738_s3 = inlined_call_operand.vmem [shape: bf16[72,128], index: 3, kind: input, shape index: {}]   ;;  %s3739_s4 = inlined_call_operand.vmem [shape: f32[1,128], index: 4, kind: input, shape index: {}]   ;;  %s3740_s5 = inlined_call_operand.vmem [shape: f32[2,16,16,128], index: 5, kind: output, shape index: {}]  }
   0x1 LB: > { %s2363_s19 = sadd.s32 4294967295, %s2453_s18   ;;  %p2367_p0 = scmp.ge.s32.totalorder %s2453_s18, 1  ;;  %s2453_s18 = sphi %s2494_s18, %s15_s18  }
   0x2   : > { %p187_p1 = scmp.lt.s32.totalorder %s2453_s18, 3 }
   0x4   : > { %p188_p2 = pnand %p2367_p0, %p187_p1 }
   0x6   : > { %191 = sbr.rel (%p188_p2) target bundleno = 965 (0x3c5), region = 40 }
   0xb   : > { %vm362_vm0 = vcmask 64512   ;;  %p215_p3 = scmp.lt.s32.totalorder %s2363_s19, 1  ;;  %v2455_v0 = vmov 0.0   ;;  %vm365_vm1 = vcmask 58368   ;;  %v2513_v1 = vld [vmem:[%s3736_s1] ss:$0 sm:$0xff] }
   0xc   : > { %363 = vst.msk [vmem:[#allocation2] sm:$0xff] %vm362_vm0, %v2455_v0  ;;  %v2529_v2 = vld [vmem:[%s3737_s2] ss:$0 sm:$0xff]  ;;  %s2456_s28 = smov 8   ;;  %vm372_vm2 = vcmask 57344   ;;  %s2457_s29 = smov 16  }
   0xd   : > { %364 = vst.msk [vmem:[#allocation2 + $0x8] sm:$0xff] %vm362_vm0, %v2455_v0  ;;  %s3778_s19 = smov (!%p215_p3, %s2363_s19), 1  ;;  %vm661_vm3 = vcmask 130112   ;;  %s2458_s30 = smov 24   ;;  %vm854_vm4 = vcmask 195712   ;;  %vm1047_vm5 = vcmask 261312  }
   0xe   : > { %368 = vst.msk [vmem:[#allocation2 + $0x198] sm:$0xff] %vm362_vm0, %v2455_v0  ;;  %s2406_s22 = sshll.u32 %s3778_s19, 8  ;;  %s2459_s6 = smov 32   ;;  %vm1240_vm6 = vcmask 326912   ;;  %vm1433_vm7 = vcmask 392512   ;;  %vm1627_vm8 = vcmask 458112  }
   0xf   : > { %369 = vst.msk [vmem:[#allocation2 + $0x1a0] sm:$0xff] %vm362_vm0, %v2455_v0  ;;  %s2524_s25 = scalar_lea.vmem %s3735_s0, %s2406_s22  ;;  %s2460_s7 = smov 40   ;;  %vm2183_vm9 = vcmask 1043456   ;;  %vm1820_vm10 = vcmask 523712   ;;  %vm2013_vm11 = vcmask 589312   ;;  %vm2134_vm12 = vcmask 588800  }
  0x10   : > { %366 = vst.msk [vmem:[#allocation2 + $0x10] sm:$0x3] %vm365_vm1, %v2455_v0  ;;  %v226_v3 = vld [vmem:[%s2524_s25] sm:$0xff]  ;;  %v227_v5 = vld [vmem:[%s2524_s25 + $0x8] sm:$0xff]  ;;  %v233_v9 = vld [vmem:[%s2524_s25 + $0x38] sm:$0xff]  ;;  %s2461_s8 = smov 48  }
  0x11   : > { %370 = vst.msk [vmem:[#allocation2 + $0x1a8] sm:$0x3] %vm365_vm1, %v2455_v0  ;;  %v230_v4 = vld [vmem:[%s2524_s25 + $0x20] sm:$0xff]  ;;  %v262_v6 = vmul.f32 %v2513_v1, %v226_v3  ;;  %v263_v8 = vmul.f32 %v2513_v1, %v227_v5  ;;  %v231_v10 = vld [vmem:[%s2524_s25 + $0x28] sm:$0xff]  ;;  %v236_v11 = vld [vmem:[%s2524_s25 + $0x50] sm:$0xff]  ;;  %v269_v12 = vmul.f32 %v2513_v1, %v233_v9  ;;  %s2462_s9 = smov 56  }
  0x12   : > { %v266_v7 = vmul.f32 %v2513_v1, %v230_v4  ;;  %v267_v13 = vmul.f32 %v2513_v1, %v231_v10  ;;  %v272_v14 = vmul.f32 %v2513_v1, %v236_v11  ;;  %v228_v15 = vld [vmem:[%s2524_s25 + $0x10] sm:$0xff]  ;;  %v234_v16 = vld [vmem:[%s2524_s25 + $0x40] sm:$0xff]  ;;  %v239_v26 = vld [vmem:[%s2524_s25 + $0x68] sm:$0xff]  ;;  %391 = vst.msk [vmem:[#allocation2 + $0x59] sm:$0x1] %vm372_vm2, %v2455_v0  ;;  %s2463_s10 = smov 64  }
  0x13   : > { %v298_v18 = vadd.f32 %v2529_v2, %v262_v6  ;;  %v299_v20 = vadd.f32 %v2529_v2, %v263_v8  ;;  %v264_v21 = vmul.f32 %v2513_v1, %v228_v15  ;;  %v305_v22 = vadd.f32 %v2529_v2, %v269_v12  ;;  %v229_v27 = vld [vmem:[%s2524_s25 + $0x18] sm:$0xff]  ;;  %v242_v33 = vld [vmem:[%s2524_s25 + $0x80] sm:$0xff]  ;;  %v232_v34 = vld [vmem:[%s2524_s25 + $0x30] sm:$0xff]  ;;  %373 = vst.msk [vmem:[#allocation2 + $0x18] sm:$0x1] %vm372_vm2, %v2455_v0 }
  0x14   : > { %v501_v17 = vld [vmem:[#allocation2 + $0x1] sm:$0xff]  ;;  %v302_v19 = vadd.f32 %v2529_v2, %v266_v7  ;;  %v303_v23 = vadd.f32 %v2529_v2, %v267_v13  ;;  %v308_v24 = vadd.f32 %v2529_v2, %v272_v14  ;;  %v270_v25 = vmul.f32 %v2513_v1, %v234_v16  ;;  %v237_v28 = vld [vmem:[%s2524_s25 + $0x58] sm:$0xff]  ;;  %v240_v49 = vld [vmem:[%s2524_s25 + $0x70] sm:$0xff]  ;;  %374 = vst.msk [vmem:[#allocation2 + $0x30] sm:$0x1] %vm372_vm2, %v2455_v0 }
  0x15   : > { %565 = vrot.lane.b32.xlu0 %v501_v17, %s2456_s28  ;;  %v330_v29 = vmax.f32 %v298_v18, 0.0  ;;  %v331_v31 = vmax.f32 %v299_v20, 0.0  ;;  %v300_v32 = vadd.f32 %v2529_v2, %v264_v21  ;;  %v337_v35 = vmax.f32 %v305_v22, 0.0  ;;  %v245_v58 = vld [vmem:[%s2524_s25 + $0x98] sm:$0xff]  ;;  %v235_v59 = vld [vmem:[%s2524_s25 + $0x48] sm:$0xff]  ;;  %v248_v15 = vld [vmem:[%s2524_s25 + $0xb0] sm:$0xff] }
  0x16   : > { %v334_v30 = vmax.f32 %v302_v19, 0.0  ;;  %v306_v36 = vadd.f32 %v2529_v2, %v270_v25  ;;  %v335_v37 = vmax.f32 %v303_v23, 0.0  ;;  %v275_v38 = vmul.f32 %v2513_v1, %v239_v26  ;;  %v243_v8 = vld [vmem:[%s2524_s25 + $0x88] sm:$0xff]  ;;  %v238_v16 = vld [vmem:[%s2524_s25 + $0x60] sm:$0xff]  ;;  %375 = vst.msk [vmem:[#allocation2 + $0x48] sm:$0x1] %vm372_vm2, %v2455_v0 }
  0x17   : > { %405 = vst.msk [vmem:[#allocation2 + $0x19] sm:$0xff] %vm362_vm0, %v330_v29  ;;  %v265_v39 = vmul.f32 %v2513_v1, %v229_v27  ;;  %v273_v40 = vmul.f32 %v2513_v1, %v237_v28  ;;  %v340_v41 = vmax.f32 %v308_v24, 0.0  ;;  %v278_v42 = vmul.f32 %v2513_v1, %v242_v33  ;;  %v502_v44 = vld [vmem:[#allocation2 + $0x9] sm:$0xff]  ;;  %v246_v23 = vld [vmem:[%s2524_s25 + $0xa0] sm:$0xff] }
  0x18   : > { %409 = vst.msk [vmem:[#allocation2 + $0x49] sm:$0xff] %vm362_vm0, %v334_v30  ;;  %v268_v43 = vmul.f32 %v2513_v1, %v232_v34  ;;  %v332_v45 = vmax.f32 %v300_v32, 0.0  ;;  %v311_v46 = vadd.f32 %v2529_v2, %v275_v38  ;;  %v338_v50 = vmax.f32 %v306_v36, 0.0  ;;  %v251_v30 = vld [vmem:[%s2524_s25 + $0xc8] sm:$0xff]  ;;  %v249_v38 = vld [vmem:[%s2524_s25 + $0xb8] sm:$0xff] }
  0x19   : > { %406 = vst.msk [vmem:[#allocation2 + $0x21] sm:$0xff] %vm362_vm0, %v331_v31  ;;  %v301_v47 = vadd.f32 %v2529_v2, %v265_v39  ;;  %v309_v48 = vadd.f32 %v2529_v2, %v273_v40  ;;  %v314_v51 = vadd.f32 %v2529_v2, %v278_v42  ;;  %v276_v52 = vmul.f32 %v2513_v1, %v240_v49  ;;  %v241_v31 = vld [vmem:[%s2524_s25 + $0x78] sm:$0xff] }
  0x1a   : > { %412 = vst.msk [vmem:[#allocation2 + $0x69] sm:$0xff] %vm362_vm0, %v337_v35  ;;  %v343_v53 = vmax.f32 %v311_v46, 0.0  ;;  %v304_v54 = vadd.f32 %v2529_v2, %v268_v43  ;;  %v281_v62 = vmul.f32 %v2513_v1, %v245_v58  ;;  %v271_v63 = vmul.f32 %v2513_v1, %v235_v59  ;;  %v244_v46 = vld [vmem:[%s2524_s25 + $0x90] sm:$0xff] }
  0x1b   : > { %410 = vst.msk [vmem:[#allocation2 + $0x51] sm:$0xff] %vm362_vm0, %v335_v37  ;;  %v333_v55 = vmax.f32 %v301_v47, 0.0  ;;  %v312_v56 = vadd.f32 %v2529_v2, %v276_v52  ;;  %v341_v57 = vmax.f32 %v309_v48, 0.0  ;;  %v346_v61 = vmax.f32 %v314_v51, 0.0 }
  0x1c   : > { %415 = vst.msk [vmem:[#allocation2 + $0x91] sm:$0xff] %vm362_vm0, %v340_v41  ;;  %v336_v3 = vmax.f32 %v304_v54, 0.0  ;;  %v317_v5 = vadd.f32 %v2529_v2, %v281_v62  ;;  %v307_v6 = vadd.f32 %v2529_v2, %v271_v63  ;;  %v279_v11 = vmul.f32 %v2513_v1, %v243_v8 }
  0x1d   : > { %567 = vrot.lane.b32.xlu0 %v502_v44, %s2456_s28  ;;  %407 = vst.msk [vmem:[#allocation2 + $0x31] sm:$0xff] %vm362_vm0, %v332_v45  ;;  %v344_v4 = vmax.f32 %v312_v56, 0.0  ;;  %v284_v18 = vmul.f32 %v2513_v1, %v248_v15  ;;  %v274_v19 = vmul.f32 %v2513_v1, %v238_v16  ;;  %v282_v27 = vmul.f32 %v2513_v1, %v246_v23  ;;  %v254_v45 = vld [vmem:[%s2524_s25 + $0xe0] sm:$0xff] }
  0x1e   : > { %v503_v60 = vld [vmem:[#allocation2 + $0x19] sm:$0xff]  ;;  %413 = vst.msk [vmem:[#allocation2 + $0x79] sm:$0xff] %vm362_vm0, %v338_v50  ;;  %v349_v9 = vmax.f32 %v317_v5, 0.0  ;;  %v339_v10 = vmax.f32 %v307_v6, 0.0  ;;  %v315_v14 = vadd.f32 %v2529_v2, %v279_v11  ;;  %v287_v33 = vmul.f32 %v2513_v1, %v251_v30  ;;  %v695_v30 = vld [vmem:[#allocation2 + $0xa] sm:$0xff] }
  0x1f   : > { %569 = vrot.lane.b32.xlu1 %v503_v60, %s2456_s28  ;;  %418 = vst.msk [vmem:[#allocation2 + $0xb1] sm:$0xff] %vm362_vm0, %v343_v53  ;;  %v507_v7 = vld [vmem:[#allocation2 + $0x49] sm:$0xff]  ;;  %v320_v20 = vadd.f32 %v2529_v2, %v284_v18  ;;  %v310_v21 = vadd.f32 %v2529_v2, %v274_v19  ;;  %v318_v29 = vadd.f32 %v2529_v2, %v282_v27 }
  0x20   : > { %408 = vst.msk [vmem:[#allocation2 + $0x39] sm:$0xff] %vm362_vm0, %v333_v55  ;;  %v504_v12 = vld [vmem:[#allocation2 + $0x21] sm:$0xff]  ;;  %v347_v17 = vmax.f32 %v315_v14, 0.0  ;;  %v277_v34 = vmul.f32 %v2513_v1, %v241_v31  ;;  %v323_v35 = vadd.f32 %v2529_v2, %v287_v33  ;;  %v285_v42 = vmul.f32 %v2513_v1, %v249_v38  ;;  %v252_v53 = vld [vmem:[%s2524_s25 + $0xd0] sm:$0xff] }
  0x21   : > { %416 = vst.msk [vmem:[#allocation2 + $0x99] sm:$0xff] %vm362_vm0, %v341_v57  ;;  %v510_v22 = vld [vmem:[#allocation2 + $0x69] sm:$0xff]  ;;  %v352_v25 = vmax.f32 %v320_v20, 0.0  ;;  %v342_v26 = vmax.f32 %v310_v21, 0.0  ;;  %v350_v32 = vmax.f32 %v318_v29, 0.0  ;;  %v290_v48 = vmul.f32 %v2513_v1, %v254_v45 }
  0x22   : > { %421 = vst.msk [vmem:[#allocation2 + $0xd9] sm:$0xff] %vm362_vm0, %v346_v61  ;;  %v508_v28 = vld [vmem:[#allocation2 + $0x51] sm:$0xff]  ;;  %v313_v36 = vadd.f32 %v2529_v2, %v277_v34  ;;  %v355_v40 = vmax.f32 %v323_v35, 0.0  ;;  %v321_v44 = vadd.f32 %v2529_v2, %v285_v42  ;;  %v280_v49 = vmul.f32 %v2513_v1, %v244_v46  ;;  %v247_v60 = vld [vmem:[%s2524_s25 + $0xa8] sm:$0xff]  ;;  %v437_v35 = vld [vmem:[#allocation2] sm:$0xff] }
  0x23   : > { %411 = vst.msk [vmem:[#allocation2 + $0x61] sm:$0xff] %vm362_vm0, %v336_v3  ;;  %v513_v37 = vld [vmem:[#allocation2 + $0x91] sm:$0xff]  ;;  %v326_v50 = vadd.f32 %v2529_v2, %v290_v48  ;;  %v288_v57 = vmul.f32 %v2513_v1, %v252_v53  ;;  %v283_v62 = vmul.f32 %v2513_v1, %v247_v60 }
  0x24   : > { %v505_v13 = vld [vmem:[#allocation2 + $0x31] sm:$0xff]  ;;  %419 = vst.msk [vmem:[#allocation2 + $0xc1] sm:$0xff] %vm362_vm0, %v344_v4  ;;  %v345_v41 = vmax.f32 %v313_v36, 0.0  ;;  %v353_v47 = vmax.f32 %v321_v44, 0.0  ;;  %v316_v51 = vadd.f32 %v2529_v2, %v280_v49  ;;  %v255_v4 = vld [vmem:[%s2524_s25 + $0xe8] sm:$0xff] }
  0x25   : > { %577 = vrot.lane.b32.xlu0 %v507_v7, %s2456_s28  ;;  %573 = vrot.lane.b32.xlu2 %v505_v13, %s2456_s28  ;;  %424 = vst.msk [vmem:[#allocation2 + $0xf9] sm:$0xff] %vm362_vm0, %v349_v9  ;;  %v511_v43 = vld [vmem:[#allocation2 + $0x79] sm:$0xff]  ;;  %v358_v55 = vmax.f32 %v326_v50, 0.0  ;;  %v324_v59 = vadd.f32 %v2529_v2, %v288_v57  ;;  %v319_v63 = vadd.f32 %v2529_v2, %v283_v62  ;;  %v438_v36 = vld [vmem:[#allocation2 + $0x8] sm:$0xff]  ;;  %v2787_v38 = vld [vmem:[#allocation2 + $0x30] sm:$0xff] }
  0x26   : > { %414 = vst.msk [vmem:[#allocation2 + $0x81] sm:$0xff] %vm362_vm0, %v339_v10  ;;  %v516_v52 = vld [vmem:[#allocation2 + $0xb1] sm:$0xff]  ;;  %v348_v56 = vmax.f32 %v316_v51, 0.0  ;;  %v291_v7 = vmul.f32 %v2513_v1, %v255_v4  ;;  %v250_v10 = vld [vmem:[%s2524_s25 + $0xc0] sm:$0xff] }
  0x27   : > { %571 = vrot.lane.b32.xlu1 %v504_v12, %s2456_s28  ;;  %422 = vst.msk [vmem:[#allocation2 + $0xe1] sm:$0xff] %vm362_vm0, %v347_v17  ;;  %v2613_v24 = vld [vmem:[#allocation2 + $0x39] sm:$0xff]  ;;  %v356_v61 = vmax.f32 %v324_v59, 0.0  ;;  %v351_v6 = vmax.f32 %v319_v63, 0.0  ;;  %v286_v12 = vmul.f32 %v2513_v1, %v250_v10  ;;  %v2829_v49 = vld [vmem:[#allocation2 + $0x50] sm:$0xff]  ;;  %v694_v51 = vld [vmem:[#allocation2 + $0x2] sm:$0xff] }
  0x28   : > { %427 = vst.msk [vmem:[#allocation2 + $0x121] sm:$0xff] %vm362_vm0, %v352_v25  ;;  %v514_v58 = vld [vmem:[#allocation2 + $0x99] sm:$0xff]  ;;  %v327_v9 = vadd.f32 %v2529_v2, %v291_v7 }
  0x29   : > { %417 = vst.msk [vmem:[#allocation2 + $0xa9] sm:$0xff] %vm362_vm0, %v342_v26  ;;  %v519_v3 = vld [vmem:[#allocation2 + $0xd9] sm:$0xff]  ;;  %v322_v13 = vadd.f32 %v2529_v2, %v286_v12 }
  0x2a   : > { %425 = vst.msk [vmem:[#allocation2 + $0x109] sm:$0xff] %vm362_vm0, %v350_v32  ;;  %v2631_v39 = vld [vmem:[#allocation2 + $0x61] sm:$0xff]  ;;  %v359_v11 = vmax.f32 %v327_v9, 0.0  ;;  %v2774_v34 = vld [vmem:[#allocation2 + $0x32] sm:$0xff]  ;;  %v2883_v9 = vld [vmem:[#allocation2 + $0x4a] sm:$0xff] }
  0x2b   : > { %430 = vst.msk [vmem:[#allocation2 + $0x141] sm:$0xff] %vm362_vm0, %v355_v40  ;;  %v517_v8 = vld [vmem:[#allocation2 + $0xc1] sm:$0xff]  ;;  %v354_v16 = vmax.f32 %v322_v13, 0.0  ;;  %v2790_v40 = vld [vmem:[#allocation2 + $0x18] sm:$0xff] }
  0x2c   : > { %420 = vst.msk [vmem:[#allocation2 + $0xc9] sm:$0xff] %vm362_vm0, %v345_v41  ;;  %v522_v14 = vld [vmem:[#allocation2 + $0xf9] sm:$0xff]  ;;  %v2793_v41 = vld [vmem:[#allocation2 + $0x48] sm:$0xff] }
  0x2d   : > { %583 = vrot.lane.b32.xlu0 %v510_v22, %s2456_s28  ;;  %575 = vrot.lane.b32.xlu2 %v2613_v24, %s2456_s28  ;;  %428 = vst.msk [vmem:[#allocation2 + $0x129] sm:$0xff] %vm362_vm0, %v353_v47  ;;  %v2649_v54 = vld [vmem:[#allocation2 + $0x81] sm:$0xff]  ;;  %v2803_v42 = vld [vmem:[#allocation2 + $0x52] sm:$0xff] }
  0x2e   : > { %433 = vst.msk [vmem:[#allocation2 + $0x169] sm:$0xff] %vm362_vm0, %v358_v55  ;;  %v520_v17 = vld [vmem:[#allocation2 + $0xe1] sm:$0xff] }
  0x2f   : > { %579 = vrot.lane.b32.xlu1 %v508_v28, %s2456_s28  ;;  %423 = vst.msk [vmem:[#allocation2 + $0xf1] sm:$0xff] %vm362_vm0, %v348_v56  ;;  %v525_v18 = vld [vmem:[#allocation2 + $0x121] sm:$0xff]  ;;  %v253_v28 = vld [vmem:[%s2524_s25 + $0xd8] sm:$0xff] }
  0x30   : > { %431 = vst.msk [vmem:[#allocation2 + $0x151] sm:$0xff] %vm362_vm0, %v356_v61  ;;  %v2664_v5 = vld [vmem:[#allocation2 + $0xa9] sm:$0xff]  ;;  %v289_v29 = vmul.f32 %v2513_v1, %v253_v28  ;;  %v2832_v50 = vld [vmem:[#allocation2 + $0x7a] sm:$0xff] }
  0x31   : > { %426 = vst.msk [vmem:[#allocation2 + $0x111] sm:$0xff] %vm362_vm0, %v351_v6  ;;  %v523_v20 = vld [vmem:[#allocation2 + $0x109] sm:$0xff]  ;;  %v2850_v57 = vld [vmem:[#allocation2 + $0x80] sm:$0xff]  ;;  %v2879_v6 = vld [vmem:[#allocation2 + $0x98] sm:$0xff] }
  0x32   : > { %434 = vst.msk [vmem:[#allocation2 + $0x171] sm:$0xff] %vm362_vm0, %v359_v11  ;;  %v528_v21 = vld [vmem:[#allocation2 + $0x141] sm:$0xff]  ;;  %v325_v32 = vadd.f32 %v2529_v2, %v289_v29  ;;  %v2869_v62 = vld [vmem:[#allocation2 + $0xb0] sm:$0xff] }
  0x33   : > { %v2677_v15 = vld [vmem:[#allocation2 + $0xc9] sm:$0xff]  ;;  %429 = vst.msk [vmem:[#allocation2 + $0x139] sm:$0xff] %vm362_vm0, %v354_v16 }
  0x34   : > { %376 = vst.msk [vmem:[#allocation2 + $0x60] sm:$0x1] %vm372_vm2, %v2455_v0  ;;  %v526_v23 = vld [vmem:[#allocation2 + $0x129] sm:$0xff]  ;;  %v357_v33 = vmax.f32 %v325_v32, 0.0  ;;  %v2933_v32 = vld [vmem:[#allocation2 + $0xe0] sm:$0xff] }
  0x35   : > { %589 = vrot.lane.b32.xlu0 %v513_v37, %s2456_s28  ;;  %581 = vrot.lane.b32.xlu2 %v2631_v39, %s2456_s28  ;;  %377 = vst.msk [vmem:[#allocation2 + $0x78] sm:$0x1] %vm372_vm2, %v2455_v0  ;;  %v2722_v25 = vld [vmem:[#allocation2 + $0x169] sm:$0xff]  ;;  %v2784_v37 = vld [vmem:[#allocation2 + $0x1a] sm:$0xff] }
  0x36   : > { %v2684_v19 = vld [vmem:[#allocation2 + $0xf1] sm:$0xff]  ;;  %378 = vst.msk [vmem:[#allocation2 + $0x90] sm:$0x1] %vm372_vm2, %v2455_v0  ;;  %v2821_v46 = vld [vmem:[#allocation2 + $0x68] sm:$0xff] }
  0x37   : > { %585 = vrot.lane.b32.xlu1 %v511_v43, %s2456_s28  ;;  %379 = vst.msk [vmem:[#allocation2 + $0xa8] sm:$0x1] %vm372_vm2, %v2455_v0  ;;  %v2734_v27 = vld [vmem:[#allocation2 + $0x151] sm:$0xff]  ;;  %v2807_v43 = vld [vmem:[#allocation2 + $0x20] sm:$0xff] }
  0x38   : > { %v2702_v22 = vld [vmem:[#allocation2 + $0x111] sm:$0xff]  ;;  %380 = vst.msk [vmem:[#allocation2 + $0xc0] sm:$0x1] %vm372_vm2, %v2455_v0 }
  0x39   : > { %381 = vst.msk [vmem:[#allocation2 + $0xd8] sm:$0x1] %vm372_vm2, %v2455_v0  ;;  %v2759_v31 = vld [vmem:[#allocation2 + $0x171] sm:$0xff] }
  0x3a   : > { %382 = vst.msk [vmem:[#allocation2 + $0xf0] sm:$0x1] %vm372_vm2, %v2455_v0  ;;  %v2726_v26 = vld [vmem:[#allocation2 + $0x139] sm:$0xff]  ;;  %v2894_v10 = vld [vmem:[#allocation2 + $0xaa] sm:$0xff] }
  0x3b   : > { %383 = vst.msk [vmem:[#allocation2 + $0x108] sm:$0x1] %vm372_vm2, %v2455_v0  ;;  %v2827_v48 = vld [vmem:[#allocation2 + $0x60] sm:$0xff] }
  0x3c   : > { %384 = vst.msk [vmem:[#allocation2 + $0x120] sm:$0x1] %vm372_vm2, %v2455_v0 }
  0x3d   : > { %595 = vrot.lane.b32.xlu0 %v516_v52, %s2456_s28  ;;  %587 = vrot.lane.b32.xlu2 %v2649_v54, %s2456_s28  ;;  %385 = vst.msk [vmem:[#allocation2 + $0x138] sm:$0x1] %vm372_vm2, %v2455_v0  ;;  %v2841_v52 = vld [vmem:[#allocation2 + $0x62] sm:$0xff]  ;;  %v2843_v53 = vld [vmem:[#allocation2 + $0x90] sm:$0xff] }
  0x3e   : > { %386 = vst.msk [vmem:[#allocation2 + $0x150] sm:$0x1] %vm372_vm2, %v2455_v0  ;;  %v2876_v4 = vld [vmem:[#allocation2 + $0xa8] sm:$0xff] }
  0x3f   : > { %591 = vrot.lane.b32.xlu1 %v514_v58, %s2456_s28  ;;  %387 = vst.msk [vmem:[#allocation2 + $0x168] sm:$0x1] %vm372_vm2, %v2455_v0  ;;  %v2852_v58 = vld [vmem:[#allocation2 + $0x78] sm:$0xff]  ;;  %v2906_v16 = vld [vmem:[#allocation2 + $0xc0] sm:$0xff] }
  0x40   : > { %388 = vst.msk [vmem:[#allocation2 + $0x180] sm:$0x1] %vm372_vm2, %v2455_v0  ;;  %v2896_v11 = vld [vmem:[#allocation2 + $0xd8] sm:$0xff] }
  0x41   : > { %389 = vst.msk [vmem:[#allocation2 + $0x29] sm:$0x1] %vm372_vm2, %v2455_v0 }
  0x42   : > { %390 = vst.msk [vmem:[#allocation2 + $0x41] sm:$0x1] %vm372_vm2, %v2455_v0 }
  0x43   : > { %392 = vst.msk [vmem:[#allocation2 + $0x71] sm:$0x1] %vm372_vm2, %v2455_v0 }
  0x44   : > { %393 = vst.msk [vmem:[#allocation2 + $0x89] sm:$0x1] %vm372_vm2, %v2455_v0 }
  0x45   : > { %601 = vrot.lane.b32.xlu0 %v519_v3, %s2456_s28  ;;  %593 = vrot.lane.b32.xlu2 %v2664_v5, %s2456_s28  ;;  %394 = vst.msk [vmem:[#allocation2 + $0xa1] sm:$0x1] %vm372_vm2, %v2455_v0 }
  0x46   : > { %395 = vst.msk [vmem:[#allocation2 + $0xb9] sm:$0x1] %vm372_vm2, %v2455_v0 }
  0x47   : > { %597 = vrot.lane.b32.xlu1 %v517_v8, %s2456_s28  ;;  %396 = vst.msk [vmem:[#allocation2 + $0xd1] sm:$0x1] %vm372_vm2, %v2455_v0  ;;  %v2881_v8 = vld [vmem:[#allocation2 + $0xc2] sm:$0xff] }
  0x48   : > { %397 = vst.msk [vmem:[#allocation2 + $0xe9] sm:$0x1] %vm372_vm2, %v2455_v0  ;;  %v2857_v60 = vld [vmem:[#allocation2 + $0x22] sm:$0xff] }
  0x49   : > { %398 = vst.msk [vmem:[#allocation2 + $0x101] sm:$0x1] %vm372_vm2, %v2455_v0  ;;  %v2819_v45 = vld [vmem:[#allocation2 + $0x3a] sm:$0xff] }
  0x4a   : > { %399 = vst.msk [vmem:[#allocation2 + $0x119] sm:$0x1] %vm372_vm2, %v2455_v0 }
  0x4b   : > { %400 = vst.msk [vmem:[#allocation2 + $0x131] sm:$0x1] %vm372_vm2, %v2455_v0  ;;  %v2867_v61 = vld [vmem:[#allocation2 + $0x82] sm:$0xff] }
  0x4c   : > { %401 = vst.msk [vmem:[#allocation2 + $0x149] sm:$0x1] %vm372_vm2, %v2455_v0  ;;  %v2855_v59 = vld [vmem:[#allocation2 + $0x9a] sm:$0xff] }
  0x4d   : > { %607 = vrot.lane.b32.xlu0 %v522_v14, %s2456_s28  ;;  %599 = vrot.lane.b32.xlu2 %v2677_v15, %s2456_s28  ;;  %402 = vst.msk [vmem:[#allocation2 + $0x161] sm:$0x1] %vm372_vm2, %v2455_v0  ;;  %v2903_v14 = vld [vmem:[#allocation2 + $0xc8] sm:$0xff] }
  0x4e   : > { %403 = vst.msk [vmem:[#allocation2 + $0x179] sm:$0x1] %vm372_vm2, %v2455_v0 }
  0x4f   : > { %603 = vrot.lane.b32.xlu1 %v520_v17, %s2456_s28  ;;  %404 = vst.msk [vmem:[#allocation2 + $0x191] sm:$0x1] %vm372_vm2, %v2455_v0  ;;  %v2799_v0 = vld [vmem:[#allocation2 + $0x38] sm:$0xff] }
  0x50   : > { %432 = vst.msk [vmem:[#allocation2 + $0x159] sm:$0xff] %vm362_vm0, %v357_v33 }
  0x51   : > { %469 = vst.msk [vmem:[#allocation3] sm:$0xff] %vm362_vm0, %v437_v35  ;;  %v2935_v35 = vld [vmem:[#allocation2 + $0x10a] sm:$0xff] }
  0x52   : > { %470 = vst.msk [vmem:[#allocation3 + $0x8] sm:$0xff] %vm362_vm0, %v438_v36  ;;  %v2937_v36 = vld [vmem:[#allocation2 + $0x92] sm:$0xff] }
  0x53   : > { %473 = vst.msk [vmem:[#allocation3 + $0x20] sm:$0xff] %vm362_vm0, %v2787_v38 }
  0x54   : > { %471 = vst.msk [vmem:[#allocation3 + $0x10] sm:$0xff] %vm362_vm0, %v2790_v40 }
  0x55   : > { %613 = vrot.lane.b32.xlu0 %v525_v18, %s2456_s28  ;;  %605 = vrot.lane.b32.xlu2 %v2684_v19, %s2456_s28  ;;  %475 = vst.msk [vmem:[#allocation3 + $0x30] sm:$0xff] %vm362_vm0, %v2793_v41  ;;  %v2908_v18 = vld [vmem:[#allocation2 + $0xe2] sm:$0xff] }
  0x56   : > { %474 = vst.msk [vmem:[#allocation3 + $0x28] sm:$0xff] %vm362_vm0, %v2799_v0 }
  0x57   : > { %609 = vrot.lane.b32.xlu1 %v523_v20, %s2456_s28  ;;  %v2811_v44 = vld [vmem:[#allocation2 + $0x159] sm:$0xff]  ;;  %472 = vst.msk [vmem:[#allocation3 + $0x18] sm:$0xff] %vm362_vm0, %v2807_v43  ;;  %v2910_v20 = vld [vmem:[#allocation2 + $0x6a] sm:$0xff] }
  0x58   : > { %478 = vst.msk [vmem:[#allocation3 + $0x48] sm:$0xff] %vm362_vm0, %v2821_v46 }
  0x59   : > { %477 = vst.msk [vmem:[#allocation3 + $0x40] sm:$0xff] %vm362_vm0, %v2827_v48 }
  0x5a   : > { %476 = vst.msk [vmem:[#allocation3 + $0x38] sm:$0xff] %vm362_vm0, %v2829_v49 }
  0x5b   : > { %481 = vst.msk [vmem:[#allocation3 + $0x60] sm:$0xff] %vm362_vm0, %v2843_v53 }
  0x5c   : > { %480 = vst.msk [vmem:[#allocation3 + $0x58] sm:$0xff] %vm362_vm0, %v2850_v57 }
  0x5d   : > { %619 = vrot.lane.b32.xlu0 %v528_v21, %s2456_s28  ;;  %611 = vrot.lane.b32.xlu2 %v2702_v22, %s2456_s28  ;;  %479 = vst.msk [vmem:[#allocation3 + $0x50] sm:$0xff] %vm362_vm0, %v2852_v58  ;;  %v2921_v21 = vld [vmem:[#allocation2 + $0xca] sm:$0xff] }
  0x5e   : > { %3753 = vst [vmem:[#allocation4_spill] sm:$0xff] %v2867_v61 }
  0x5f   : > { %615 = vrot.lane.b32.xlu1 %v526_v23, %s2456_s28  ;;  %484 = vst.msk [vmem:[#allocation3 + $0x78] sm:$0xff] %vm362_vm0, %v2869_v62  ;;  %v2923_v23 = vld [vmem:[#allocation2 + $0xf8] sm:$0xff] }
  0x60   : > { %3754 = vst [vmem:[#allocation5_spill] sm:$0xff] %v2881_v8 }
  0x61   : > { %483 = vst.msk [vmem:[#allocation3 + $0x70] sm:$0xff] %vm362_vm0, %v2876_v4 }
  0x62   : > { %482 = vst.msk [vmem:[#allocation3 + $0x68] sm:$0xff] %vm362_vm0, %v2879_v6 }
  0x63   : > { %3755 = vst [vmem:[#allocation6_spill] sm:$0xff] %v2894_v10 }
  0x64   : > { %487 = vst.msk [vmem:[#allocation3 + $0x90] sm:$0xff] %vm362_vm0, %v2896_v11 }
  0x65   : > { %625 = vrot.lane.b32.xlu0 %v2722_v25, %s2456_s28  ;;  %617 = vrot.lane.b32.xlu2 %v2726_v26, %s2456_s28  ;;  %3756 = vst [vmem:[#allocation7_spill] sm:$0xff] %v2908_v18 }
  0x66   : > { %486 = vst.msk [vmem:[#allocation3 + $0x88] sm:$0xff] %vm362_vm0, %v2903_v14 }
  0x67   : > { %621 = vrot.lane.b32.xlu1 %v2734_v27, %s2456_s28  ;;  %485 = vst.msk [vmem:[#allocation3 + $0x80] sm:$0xff] %vm362_vm0, %v2906_v16 }
  0x68   : > { %3757 = vst [vmem:[#allocation8_spill] sm:$0xff] %v2921_v21 }
  0x69   : > { %490 = vst.msk [vmem:[#allocation3 + $0xa8] sm:$0xff] %vm362_vm0, %v2923_v23 }
  0x6a   : > { %3758 = vst [vmem:[#allocation9_spill] sm:$0xff] %v2935_v35 }
  0x6b   : > { %488 = vst.msk [vmem:[#allocation3 + $0x98] sm:$0xff] %vm362_vm0, %v2933_v32 }
  0x6d   : > { %760 = vrot.lane.b32.xlu0 %v695_v30, %s2457_s29  ;;  %623 = vrot.lane.b32.xlu2 %v2811_v44, %s2456_s28  ;;  %v2930_v30 = vld [vmem:[#allocation2 + $0xf0] sm:$0xff] }
  0x6e   : > { %489 = vst.msk [vmem:[#allocation3 + $0xa0] sm:$0xff] %vm362_vm0, %v2930_v30 }
  0x6f   : > { %627 = vrot.lane.b32.xlu1 %v2759_v31, %s2456_s28  ;;  %s3645_s28 = scalar_lea.vmem %s3740_s5, %s2406_s22 }
  0x75   : > { %766 = vrot.lane.b32.xlu0 %v2774_v34, %s2457_s29  ;;  %758 = vrot.lane.b32.xlu2 %v694_v51, %s2457_s29  ;;  %v2950_v51 = vld [vmem:[#allocation2 + $0x120] sm:$0xff] }
  0x76   : > { %493 = vst.msk [vmem:[#allocation3 + $0xc0] sm:$0xff] %vm362_vm0, %v2950_v51 }
  0x77   : > { %762 = vrot.lane.b32.xlu1 %v2784_v37, %s2457_s29 }
  0x7d   : > { %772 = vrot.lane.b32.xlu0 %v2803_v42, %s2457_s29  ;;  %764 = vrot.lane.b32.xlu2 %v2857_v60, %s2457_s29 }
  0x7f   : > { %768 = vrot.lane.b32.xlu1 %v2819_v45, %s2457_s29  ;;  %v574_v47 = vpop.permute.xlu2 %573 }
  0x80   : > { %666 = vst.msk [vmem:[#allocation3 + $0x20] sm:$0xff] %vm661_vm3, %v574_v47  ;;  %v2948_v47 = vld [vmem:[#allocation2 + $0xf2] sm:$0xff] }
  0x81   : > { %3759 = vst [vmem:[#allocation10_spill] sm:$0xff] %v2948_v47 }
  0x85   : > { %778 = vrot.lane.b32.xlu0 %v2832_v50, %s2457_s29  ;;  %770 = vrot.lane.b32.xlu2 %v2883_v9, %s2457_s29 }
  0x87   : > { %v566_v55 = vpop.permute.xlu0 %565  ;;  %774 = vrot.lane.b32.xlu1 %v2841_v52, %s2457_s29  ;;  %v576_v56 = vpop.permute.xlu2 %575 }
  0x88   : > { %662 = vst.msk [vmem:[#allocation3] sm:$0xff] %vm661_vm3, %v566_v55 }
  0x89   : > { %667 = vst.msk [vmem:[#allocation3 + $0x28] sm:$0xff] %vm661_vm3, %v576_v56 }
  0x8d   : > { %784 = vrot.lane.b32.xlu0 %v2855_v59, %s2457_s29  ;;  %776 = vrot.lane.b32.xlu2 %v2910_v20, %s2457_s29 }
  0x8f   : > { %v568_v63 = vpop.permute.xlu0 %567  ;;  %780 = vrot.lane.b32.xlu1 %v2867_v61, %s2457_s29  ;;  %v582_v3 = vpop.permute.xlu2 %581 }
  0x90   : > { %663 = vst.msk [vmem:[#allocation3 + $0x8] sm:$0xff] %vm661_vm3, %v568_v63  ;;  %v2957_v63 = vld [vmem:[#allocation2 + $0x110] sm:$0xff] }
  0x91   : > { %670 = vst.msk [vmem:[#allocation3 + $0x40] sm:$0xff] %vm661_vm3, %v582_v3  ;;  %v570_v7 = vpop.permute.xlu1 %569  ;;  %v2960_v3 = vld [vmem:[#allocation2 + $0x108] sm:$0xff] }
  0x92   : > { %664 = vst.msk [vmem:[#allocation3 + $0x10] sm:$0xff] %vm661_vm3, %v570_v7 }
  0x93   : > { %492 = vst.msk [vmem:[#allocation3 + $0xb8] sm:$0xff] %vm362_vm0, %v2957_v63 }
  0x94   : > { %491 = vst.msk [vmem:[#allocation3 + $0xb0] sm:$0xff] %vm362_vm0, %v2960_v3 }
  0x95   : > { %790 = vrot.lane.b32.xlu0 %v2881_v8, %s2457_s29  ;;  %782 = vrot.lane.b32.xlu2 %v2937_v36, %s2457_s29  ;;  %v3037_v8 = vld [vmem:[#allocation2 + $0x122] sm:$0xff] }
  0x97   : > { %v578_v12 = vpop.permute.xlu0 %577  ;;  %786 = vrot.lane.b32.xlu1 %v2894_v10, %s2457_s29  ;;  %v588_v13 = vpop.permute.xlu2 %587  ;;  %v3016_v10 = vld [vmem:[#allocation2 + $0x172] sm:$0xff] }
  0x98   : > { %668 = vst.msk [vmem:[#allocation3 + $0x30] sm:$0xff] %vm661_vm3, %v578_v12  ;;  %v2962_v12 = vld [vmem:[#allocation2 + $0x12a] sm:$0xff] }
  0x99   : > { %673 = vst.msk [vmem:[#allocation3 + $0x58] sm:$0xff] %vm661_vm3, %v588_v13  ;;  %v572_v17 = vpop.permute.xlu1 %571  ;;  %v2964_v13 = vld [vmem:[#allocation2 + $0xb2] sm:$0xff] }
  0x9a   : > { %665 = vst.msk [vmem:[#allocation3 + $0x18] sm:$0xff] %vm661_vm3, %v572_v17  ;;  %v2975_v17 = vld [vmem:[#allocation2 + $0x112] sm:$0xff] }
  0x9b   : > { %3760 = vst [vmem:[#allocation11_spill] sm:$0xff] %v2962_v12 }
  0x9c   : > { %3761 = vst [vmem:[#allocation12_spill] sm:$0xff] %v2975_v17 }
  0x9d   : > { %796 = vrot.lane.b32.xlu0 %v2908_v18, %s2457_s29  ;;  %788 = vrot.lane.b32.xlu2 %v2964_v13, %s2457_s29  ;;  %v3018_v18 = vld [vmem:[#allocation2 + $0xfa] sm:$0xff] }
  0x9f   : > { %v584_v28 = vpop.permute.xlu0 %583  ;;  %792 = vrot.lane.b32.xlu1 %v2921_v21, %s2457_s29  ;;  %v594_v29 = vpop.permute.xlu2 %593  ;;  %v3011_v21 = vld [vmem:[#allocation2 + $0x158] sm:$0xff] }
  0xa0   : > { %671 = vst.msk [vmem:[#allocation3 + $0x48] sm:$0xff] %vm661_vm3, %v584_v28  ;;  %v2977_v28 = vld [vmem:[#allocation2 + $0x140] sm:$0xff] }
  0xa1   : > { %676 = vst.msk [vmem:[#allocation3 + $0x70] sm:$0xff] %vm661_vm3, %v594_v29  ;;  %v580_v33 = vpop.permute.xlu1 %579 }
  0xa2   : > { %669 = vst.msk [vmem:[#allocation3 + $0x38] sm:$0xff] %vm661_vm3, %v580_v33 }
  0xa3   : > { %496 = vst.msk [vmem:[#allocation3 + $0xd8] sm:$0xff] %vm362_vm0, %v2977_v28 }
  0xa4   : > { %498 = vst.msk [vmem:[#allocation3 + $0xe8] sm:$0xff] %vm362_vm0, %v3011_v21 }
  0xa5   : > { %802 = vrot.lane.b32.xlu0 %v2935_v35, %s2457_s29 }
  0xa7   : > { %v590_v55 = vpop.permute.xlu0 %589  ;;  %798 = vrot.lane.b32.xlu1 %v2948_v47, %s2457_s29  ;;  %v600_v56 = vpop.permute.xlu2 %599  ;;  %v2989_v47 = vld [vmem:[#allocation2 + $0x152] sm:$0xff] }
  0xa8   : > { %674 = vst.msk [vmem:[#allocation3 + $0x60] sm:$0xff] %vm661_vm3, %v590_v55  ;;  %v2984_v55 = vld [vmem:[#allocation2 + $0x138] sm:$0xff] }
  0xa9   : > { %679 = vst.msk [vmem:[#allocation3 + $0x88] sm:$0xff] %vm661_vm3, %v600_v56  ;;  %v586_v7 = vpop.permute.xlu1 %585  ;;  %v2987_v56 = vld [vmem:[#allocation2 + $0x128] sm:$0xff] }
  0xaa   : > { %672 = vst.msk [vmem:[#allocation3 + $0x50] sm:$0xff] %vm661_vm3, %v586_v7 }
  0xab   : > { %3762 = vst [vmem:[#allocation13_spill] sm:$0xff] %v2989_v47 }
  0xac   : > { %495 = vst.msk [vmem:[#allocation3 + $0xd0] sm:$0xff] %vm362_vm0, %v2984_v55 }
  0xad   : > { %808 = vrot.lane.b32.xlu0 %v2962_v12, %s2457_s29  ;;  %v2991_v12 = vld [vmem:[#allocation2 + $0xda] sm:$0xff]  ;;  %494 = vst.msk [vmem:[#allocation3 + $0xc8] sm:$0xff] %vm362_vm0, %v2987_v56 }
  0xae   : > { %794 = vrot.lane.b32.xlu2 %v2991_v12, %s2457_s29 }
  0xaf   : > { %v596_v29 = vpop.permute.xlu0 %595  ;;  %804 = vrot.lane.b32.xlu1 %v2975_v17, %s2457_s29  ;;  %v606_v33 = vpop.permute.xlu2 %605 }
  0xb0   : > { %677 = vst.msk [vmem:[#allocation3 + $0x78] sm:$0xff] %vm661_vm3, %v596_v29  ;;  %v3002_v29 = vld [vmem:[#allocation2 + $0x13a] sm:$0xff] }
  0xb1   : > { %682 = vst.msk [vmem:[#allocation3 + $0xa0] sm:$0xff] %vm661_vm3, %v606_v33  ;;  %v592_v7 = vpop.permute.xlu1 %591  ;;  %v3004_v33 = vld [vmem:[#allocation2 + $0x168] sm:$0xff] }
  0xb2   : > { %675 = vst.msk [vmem:[#allocation3 + $0x68] sm:$0xff] %vm661_vm3, %v592_v7 }
  0xb3   : > { %3763 = vst [vmem:[#allocation14_spill] sm:$0xff] %v3002_v29 }
  0xb4   : > { %499 = vst.msk [vmem:[#allocation3 + $0xf0] sm:$0xff] %vm362_vm0, %v3004_v33 }
  0xb5   : > { %814 = vrot.lane.b32.xlu0 %v2989_v47, %s2457_s29  ;;  %v3014_v47 = vld [vmem:[#allocation2 + $0x150] sm:$0xff] }
  0xb6   : > { %497 = vst.msk [vmem:[#allocation3 + $0xe0] sm:$0xff] %vm362_vm0, %v3014_v47  ;;  %800 = vrot.lane.b32.xlu2 %v3018_v18, %s2457_s29 }
  0xb7   : > { %v602_v17 = vpop.permute.xlu0 %601  ;;  %810 = vrot.lane.b32.xlu1 %v3002_v29, %s2457_s29  ;;  %v612_v7 = vpop.permute.xlu2 %611 }
  0xb8   : > { %680 = vst.msk [vmem:[#allocation3 + $0x90] sm:$0xff] %vm661_vm3, %v602_v17  ;;  %v3029_v17 = vld [vmem:[#allocation2 + $0x15a] sm:$0xff] }
  0xb9   : > { %685 = vst.msk [vmem:[#allocation3 + $0xb8] sm:$0xff] %vm661_vm3, %v612_v7  ;;  %v598_v35 = vpop.permute.xlu1 %597 }
  0xba   : > { %678 = vst.msk [vmem:[#allocation3 + $0x80] sm:$0xff] %vm661_vm3, %v598_v35  ;;  %v3035_v35 = vld [vmem:[#allocation2 + $0x170] sm:$0xff] }
  0xbb   : > { %3764 = vst [vmem:[#allocation15_spill] sm:$0xff] %v3029_v17 }
  0xbc   : > { %500 = vst.msk [vmem:[#allocation3 + $0xf8] sm:$0xff] %vm362_vm0, %v3035_v35 }
  0xbd   : > { %820 = vrot.lane.b32.xlu0 %v3016_v10, %s2457_s29 }
  0xbe   : > { %806 = vrot.lane.b32.xlu2 %v3037_v8, %s2457_s29 }
  0xbf   : > { %v608_v7 = vpop.permute.xlu0 %607  ;;  %816 = vrot.lane.b32.xlu1 %v3029_v17, %s2457_s29  ;;  %v618_v29 = vpop.permute.xlu2 %617  ;;  %v3049_v17 = vld [vmem:[#allocation2 + $0x142] sm:$0xff] }
  0xc0   : > { %683 = vst.msk [vmem:[#allocation3 + $0xa8] sm:$0xff] %vm661_vm3, %v608_v7 }
  0xc1   : > { %688 = vst.msk [vmem:[#allocation3 + $0xd0] sm:$0xff] %vm661_vm3, %v618_v29  ;;  %v604_v61 = vpop.permute.xlu1 %603 }
  0xc2   : > { %681 = vst.msk [vmem:[#allocation3 + $0x98] sm:$0xff] %vm661_vm3, %v604_v61 }
  0xc5   : > { %955 = vrot.lane.b32.xlu0 %v2787_v38, %s2458_s30 }
  0xc6   : > { %812 = vrot.lane.b32.xlu2 %v3049_v17, %s2457_s29 }
  0xc7   : > { %v614_v7 = vpop.permute.xlu0 %613  ;;  %951 = vrot.lane.b32.xlu1 %v2790_v40, %s2458_s30 }
  0xc8   : > { %686 = vst.msk [vmem:[#allocation3 + $0xc0] sm:$0xff] %vm661_vm3, %v614_v7  ;;  %v3059_v7 = vld [vmem:[#allocation2 + $0x16a] sm:$0xff] }
  0xc9   : > { %v610_v29 = vpop.permute.xlu1 %609 }
  0xca   : > { %684 = vst.msk [vmem:[#allocation3 + $0xb0] sm:$0xff] %vm661_vm3, %v610_v29 }
  0xcd   : > { %961 = vrot.lane.b32.xlu0 %v2829_v49, %s2458_s30  ;;  %v624_v49 = vpop.permute.xlu2 %623 }
  0xce   : > { %818 = vrot.lane.b32.xlu2 %v3059_v7, %s2457_s29  ;;  %691 = vst.msk [vmem:[#allocation3 + $0xe8] sm:$0xff] %vm661_vm3, %v624_v49 }
  0xcf   : > { %v620_v38 = vpop.permute.xlu0 %619  ;;  %957 = vrot.lane.b32.xlu1 %v2799_v0, %s2458_s30 }
  0xd0   : > { %689 = vst.msk [vmem:[#allocation3 + $0xd8] sm:$0xff] %vm661_vm3, %v620_v38 }
  0xd1   : > { %v616_v61 = vpop.permute.xlu1 %615 }
  0xd2   : > { %687 = vst.msk [vmem:[#allocation3 + $0xc8] sm:$0xff] %vm661_vm3, %v616_v61 }
  0xd5   : > { %967 = vrot.lane.b32.xlu0 %v2852_v58, %s2458_s30  ;;  %v759_v38 = vpop.permute.xlu2 %758 }
  0xd6   : > { %953 = vrot.lane.b32.xlu2 %v2807_v43, %s2458_s30  ;;  %855 = vst.msk [vmem:[#allocation3] sm:$0xff] %vm854_vm4, %v759_v38 }
  0xd7   : > { %v626_v40 = vpop.permute.xlu0 %625  ;;  %963 = vrot.lane.b32.xlu1 %v2827_v48, %s2458_s30 }
  0xd8   : > { %692 = vst.msk [vmem:[#allocation3 + $0xf0] sm:$0xff] %vm661_vm3, %v626_v40  ;;  %v256_v40 = vld [vmem:[%s2524_s25 + $0xf0] sm:$0xff] }
  0xd9   : > { %v622_v0 = vpop.permute.xlu1 %621  ;;  %v292_v49 = vmul.f32 %v2513_v1, %v256_v40 }
  0xda   : > { %690 = vst.msk [vmem:[#allocation3 + $0xe0] sm:$0xff] %vm661_vm3, %v622_v0 }
  0xdd   : > { %973 = vrot.lane.b32.xlu0 %v2879_v6, %s2458_s30  ;;  %v765_v61 = vpop.permute.xlu2 %764 }
  0xde   : > { %959 = vrot.lane.b32.xlu2 %v2793_v41, %s2458_s30  ;;  %858 = vst.msk [vmem:[#allocation3 + $0x18] sm:$0xff] %vm854_vm4, %v765_v61  ;;  %v328_v41 = vadd.f32 %v2529_v2, %v292_v49 }
  0xdf   : > { %v761_v29 = vpop.permute.xlu0 %760  ;;  %969 = vrot.lane.b32.xlu1 %v2850_v57, %s2458_s30 }
  0xe0   : > { %856 = vst.msk [vmem:[#allocation3 + $0x8] sm:$0xff] %vm854_vm4, %v761_v29  ;;  %v360_v38 = vmax.f32 %v328_v41, 0.0  ;;  %v1080_v41 = vld [vmem:[#allocation2 + $0x19] sm:$0xff] }
  0xe1   : > { %v628_v48 = vpop.permute.xlu1 %627 }
  0xe2   : > { %693 = vst.msk [vmem:[#allocation3 + $0xf8] sm:$0xff] %vm661_vm3, %v628_v48 }
  0xe3   : > { %435 = vst.msk [vmem:[#allocation2 + $0x181] sm:$0xff] %vm362_vm0, %v360_v38 }
  0xe5   : > { %979 = vrot.lane.b32.xlu0 %v2906_v16, %s2458_s30  ;;  %v771_v29 = vpop.permute.xlu2 %770 }
  0xe6   : > { %965 = vrot.lane.b32.xlu2 %v2821_v46, %s2458_s30  ;;  %861 = vst.msk [vmem:[#allocation3 + $0x30] sm:$0xff] %vm854_vm4, %v771_v29 }
  0xe7   : > { %v767_v43 = vpop.permute.xlu0 %766  ;;  %975 = vrot.lane.b32.xlu1 %v2876_v4, %s2458_s30 }
  0xe8   : > { %859 = vst.msk [vmem:[#allocation3 + $0x20] sm:$0xff] %vm854_vm4, %v767_v43 }
  0xe9   : > { %v763_v57 = vpop.permute.xlu1 %762 }
  0xea   : > { %857 = vst.msk [vmem:[#allocation3 + $0x10] sm:$0xff] %vm854_vm4, %v763_v57 }
  0xed   : > { %985 = vrot.lane.b32.xlu0 %v2933_v32, %s2458_s30  ;;  %v777_v48 = vpop.permute.xlu2 %776 }
  0xee   : > { %971 = vrot.lane.b32.xlu2 %v2843_v53, %s2458_s30  ;;  %864 = vst.msk [vmem:[#allocation3 + $0x48] sm:$0xff] %vm854_vm4, %v777_v48 }
  0xef   : > { %v773_v0 = vpop.permute.xlu0 %772  ;;  %981 = vrot.lane.b32.xlu1 %v2903_v14, %s2458_s30 }
  0xf0   : > { %862 = vst.msk [vmem:[#allocation3 + $0x38] sm:$0xff] %vm854_vm4, %v773_v0 }
  0xf1   : > { %v769_v4 = vpop.permute.xlu1 %768 }
  0xf2   : > { %860 = vst.msk [vmem:[#allocation3 + $0x28] sm:$0xff] %vm854_vm4, %v769_v4  ;;  %v1081_v4 = vld [vmem:[#allocation2 + $0x21] sm:$0xff] }
  0xf5   : > { %991 = vrot.lane.b32.xlu0 %v2960_v3, %s2458_s30  ;;  %v257_v3 = vld [vmem:[%s2524_s25 + $0xf8] sm:$0xff]  ;;  %v783_v43 = vpop.permute.xlu2 %782 }
  0xf6   : > { %977 = vrot.lane.b32.xlu2 %v2869_v62, %s2458_s30  ;;  %v293_v61 = vmul.f32 %v2513_v1, %v257_v3  ;;  %867 = vst.msk [vmem:[#allocation3 + $0x60] sm:$0xff] %vm854_vm4, %v783_v43 }
  0xf7   : > { %v779_v46 = vpop.permute.xlu0 %778  ;;  %987 = vrot.lane.b32.xlu1 %v2930_v30, %s2458_s30 }
  0xf8   : > { %865 = vst.msk [vmem:[#allocation3 + $0x50] sm:$0xff] %vm854_vm4, %v779_v46  ;;  %v329_v30 = vadd.f32 %v2529_v2, %v293_v61 }
  0xf9   : > { %v775_v14 = vpop.permute.xlu1 %774 }
  0xfa   : > { %863 = vst.msk [vmem:[#allocation3 + $0x40] sm:$0xff] %vm854_vm4, %v775_v14 }
  0xfd   : > { %997 = vrot.lane.b32.xlu0 %v2987_v56, %s2458_s30  ;;  %v361_v56 = vmax.f32 %v329_v30, 0.0  ;;  %v789_v40 = vpop.permute.xlu2 %788  ;;  %v3177_v30 = vld [vmem:[#allocation2 + $0x31] sm:$0xff] }
  0xfe   : > { %983 = vrot.lane.b32.xlu2 %v2896_v11, %s2458_s30  ;;  %870 = vst.msk [vmem:[#allocation3 + $0x78] sm:$0xff] %vm854_vm4, %v789_v40  ;;  %v3190_v40 = vld [vmem:[#allocation2 + $0x51] sm:$0xff] }
  0xff   : > { %v785_v53 = vpop.permute.xlu0 %784  ;;  %993 = vrot.lane.b32.xlu1 %v2957_v63, %s2458_s30  ;;  %436 = vst.msk [vmem:[#allocation2 + $0x189] sm:$0xff] %vm362_vm0, %v361_v56 }
 0x100   : > { %868 = vst.msk [vmem:[#allocation3 + $0x68] sm:$0xff] %vm854_vm4, %v785_v53 }
 0x101   : > { %v781_v57 = vpop.permute.xlu1 %780 }
 0x102   : > { %866 = vst.msk [vmem:[#allocation3 + $0x58] sm:$0xff] %vm854_vm4, %v781_v57 }
 0x105   : > { %1003 = vrot.lane.b32.xlu0 %v3014_v47, %s2458_s30 }
 0x106   : > { %989 = vrot.lane.b32.xlu2 %v2923_v23, %s2458_s30  ;;  %v3167_v53 = vld [vmem:[#allocation2 + $0x188] sm:$0xff] }
 0x107   : > { %v791_v1 = vpop.permute.xlu0 %790  ;;  %999 = vrot.lane.b32.xlu1 %v2984_v55, %s2458_s30 }
 0x108   : > { %871 = vst.msk [vmem:[#allocation3 + $0x80] sm:$0xff] %vm854_vm4, %v791_v1  ;;  %v795_v49 = vpop.permute.xlu2 %794 }
 0x109   : > { %v787_v2 = vpop.permute.xlu1 %786  ;;  %873 = vst.msk [vmem:[#allocation3 + $0x90] sm:$0xff] %vm854_vm4, %v795_v49 }
 0x10a   : > { %869 = vst.msk [vmem:[#allocation3 + $0x70] sm:$0xff] %vm854_vm4, %v787_v2 }
 0x10d   : > { %1009 = vrot.lane.b32.xlu0 %v3035_v35, %s2458_s30  ;;  %v917_v35 = vld [vmem:[#allocation2 + $0x180] sm:$0xff] }
 0x10e   : > { %995 = vrot.lane.b32.xlu2 %v2950_v51, %s2458_s30 }
 0x10f   : > { %v797_v63 = vpop.permute.xlu0 %796  ;;  %1005 = vrot.lane.b32.xlu1 %v3011_v21, %s2458_s30 }
 0x110   : > { %874 = vst.msk [vmem:[#allocation3 + $0x98] sm:$0xff] %vm854_vm4, %v797_v63  ;;  %v801_v29 = vpop.permute.xlu2 %800 }
 0x111   : > { %v793_v55 = vpop.permute.xlu1 %792  ;;  %876 = vst.msk [vmem:[#allocation3 + $0xa8] sm:$0xff] %vm854_vm4, %v801_v29  ;;  %v3210_v29 = vld [vmem:[#allocation2 + $0x99] sm:$0xff] }
 0x112   : > { %872 = vst.msk [vmem:[#allocation3 + $0x88] sm:$0xff] %vm854_vm4, %v793_v55  ;;  %v1088_v55 = vld [vmem:[#allocation2 + $0x79] sm:$0xff] }
 0x115   : > { %1144 = vrot.lane.b32.xlu0 %v1080_v41, %s2459_s6 }
 0x116   : > { %1001 = vrot.lane.b32.xlu2 %v2977_v28, %s2458_s30 }
 0x117   : > { %v803_v0 = vpop.permute.xlu0 %802  ;;  %1011 = vrot.lane.b32.xlu1 %v917_v35, %s2458_s30 }
 0x118   : > { %877 = vst.msk [vmem:[#allocation3 + $0xb0] sm:$0xff] %vm854_vm4, %v803_v0  ;;  %v807_v46 = vpop.permute.xlu2 %806 }
 0x119   : > { %v799_v38 = vpop.permute.xlu1 %798  ;;  %879 = vst.msk [vmem:[#allocation3 + $0xc0] sm:$0xff] %vm854_vm4, %v807_v46  ;;  %v1094_v46 = vld [vmem:[#allocation2 + $0xc1] sm:$0xff] }
 0x11a   : > { %875 = vst.msk [vmem:[#allocation3 + $0xa0] sm:$0xff] %vm854_vm4, %v799_v38 }
 0x11d   : > { %1150 = vrot.lane.b32.xlu0 %v2613_v24, %s2459_s6  ;;  %v3161_v24 = vld [vmem:[#allocation2 + $0x49] sm:$0xff] }
 0x11e   : > { %1007 = vrot.lane.b32.xlu2 %v3004_v33, %s2458_s30 }
 0x11f   : > { %v809_v51 = vpop.permute.xlu0 %808  ;;  %1146 = vrot.lane.b32.xlu1 %v1081_v4, %s2459_s6 }
 0x120   : > { %880 = vst.msk [vmem:[#allocation3 + $0xc8] sm:$0xff] %vm854_vm4, %v809_v51  ;;  %v813_v14 = vpop.permute.xlu2 %812 }
 0x121   : > { %v805_v48 = vpop.permute.xlu1 %804  ;;  %882 = vst.msk [vmem:[#allocation3 + $0xd8] sm:$0xff] %vm854_vm4, %v813_v14 }
 0x122   : > { %878 = vst.msk [vmem:[#allocation3 + $0xb8] sm:$0xff] %vm854_vm4, %v805_v48 }
 0x125   : > { %1156 = vrot.lane.b32.xlu0 %v2631_v39, %s2459_s6  ;;  %v1087_v39 = vld [vmem:[#allocation2 + $0x69] sm:$0xff] }
 0x126   : > { %1013 = vrot.lane.b32.xlu2 %v3167_v53, %s2458_s30 }
 0x127   : > { %v815_v28 = vpop.permute.xlu0 %814  ;;  %1152 = vrot.lane.b32.xlu1 %v3161_v24, %s2459_s6 }
 0x128   : > { %883 = vst.msk [vmem:[#allocation3 + $0xe0] sm:$0xff] %vm854_vm4, %v815_v28  ;;  %v819_v43 = vpop.permute.xlu2 %818 }
 0x129   : > { %v811_v3 = vpop.permute.xlu1 %810  ;;  %885 = vst.msk [vmem:[#allocation3 + $0xf0] sm:$0xff] %vm854_vm4, %v819_v43 }
 0x12a   : > { %881 = vst.msk [vmem:[#allocation3 + $0xd0] sm:$0xff] %vm854_vm4, %v811_v3  ;;  %v1097_v3 = vld [vmem:[#allocation2 + $0xe1] sm:$0xff] }
 0x12d   : > { %1162 = vrot.lane.b32.xlu0 %v2649_v54, %s2459_s6  ;;  %v3184_v54 = vld [vmem:[#allocation2 + $0x91] sm:$0xff] }
 0x12e   : > { %1148 = vrot.lane.b32.xlu2 %v3177_v30, %s2459_s6 }
 0x12f   : > { %v821_v33 = vpop.permute.xlu0 %820  ;;  %1158 = vrot.lane.b32.xlu1 %v1087_v39, %s2459_s6 }
 0x130   : > { %886 = vst.msk [vmem:[#allocation3 + $0xf8] sm:$0xff] %vm854_vm4, %v821_v33  ;;  %v954_v56 = vpop.permute.xlu2 %953 }
 0x131   : > { %v817_v61 = vpop.permute.xlu1 %816  ;;  %1049 = vst.msk [vmem:[#allocation3 + $0x8] sm:$0xff] %vm1047_vm5, %v954_v56 }
 0x132   : > { %884 = vst.msk [vmem:[#allocation3 + $0xe8] sm:$0xff] %vm854_vm4, %v817_v61  ;;  %v3240_v61 = vld [vmem:[#allocation2 + $0x181] sm:$0xff] }
 0x135   : > { %1168 = vrot.lane.b32.xlu0 %v2664_v5, %s2459_s6  ;;  %v3197_v5 = vld [vmem:[#allocation2 + $0xb1] sm:$0xff] }
 0x136   : > { %1154 = vrot.lane.b32.xlu2 %v3190_v40, %s2459_s6 }
 0x137   : > { %v956_v57 = vpop.permute.xlu0 %955  ;;  %1164 = vrot.lane.b32.xlu1 %v3184_v54, %s2459_s6 }
 0x138   : > { %1050 = vst.msk [vmem:[#allocation3 + $0x10] sm:$0xff] %vm1047_vm5, %v956_v57  ;;  %v960_v63 = vpop.permute.xlu2 %959  ;;  %v3242_v57 = vld [vmem:[#allocation2 + $0x109] sm:$0xff] }
 0x139   : > { %v952_v1 = vpop.permute.xlu1 %951  ;;  %1052 = vst.msk [vmem:[#allocation3 + $0x20] sm:$0xff] %vm1047_vm5, %v960_v63  ;;  %v3260_v63 = vld [vmem:[#allocation2 + $0x189] sm:$0xff] }
 0x13a   : > { %1048 = vst.msk [vmem:[#allocation3] sm:$0xff] %vm1047_vm5, %v952_v1 }
 0x13d   : > { %1174 = vrot.lane.b32.xlu0 %v2677_v15, %s2459_s6  ;;  %v1096_v15 = vld [vmem:[#allocation2 + $0xd9] sm:$0xff] }
 0x13e   : > { %1160 = vrot.lane.b32.xlu2 %v1088_v55, %s2459_s6 }
 0x13f   : > { %v962_v2 = vpop.permute.xlu0 %961  ;;  %1170 = vrot.lane.b32.xlu1 %v3197_v5, %s2459_s6 }
 0x140   : > { %1053 = vst.msk [vmem:[#allocation3 + $0x28] sm:$0xff] %vm1047_vm5, %v962_v2  ;;  %v966_v35 = vpop.permute.xlu2 %965  ;;  %v3253_v2 = vld [vmem:[#allocation2 + $0x129] sm:$0xff] }
 0x141   : > { %v958_v49 = vpop.permute.xlu1 %957  ;;  %1055 = vst.msk [vmem:[#allocation3 + $0x38] sm:$0xff] %vm1047_vm5, %v966_v35  ;;  %v3765_v35 = vld [vmem:[#allocation5_spill] sm:$0xff] }
 0x142   : > { %1051 = vst.msk [vmem:[#allocation3 + $0x18] sm:$0xff] %vm1047_vm5, %v958_v49 }
 0x145   : > { %1180 = vrot.lane.b32.xlu0 %v2684_v19, %s2459_s6  ;;  %v3217_v19 = vld [vmem:[#allocation2 + $0xf9] sm:$0xff] }
 0x146   : > { %1166 = vrot.lane.b32.xlu2 %v3210_v29, %s2459_s6 }
 0x147   : > { %v968_v41 = vpop.permute.xlu0 %967  ;;  %1176 = vrot.lane.b32.xlu1 %v1096_v15, %s2459_s6 }
 0x148   : > { %1056 = vst.msk [vmem:[#allocation3 + $0x40] sm:$0xff] %vm1047_vm5, %v968_v41  ;;  %v972_v4 = vpop.permute.xlu2 %971 }
 0x149   : > { %v964_v0 = vpop.permute.xlu1 %963  ;;  %1058 = vst.msk [vmem:[#allocation3 + $0x50] sm:$0xff] %vm1047_vm5, %v972_v4 }
 0x14a   : > { %1054 = vst.msk [vmem:[#allocation3 + $0x30] sm:$0xff] %vm1047_vm5, %v964_v0 }
 0x14d   : > { %1186 = vrot.lane.b32.xlu0 %v2702_v22, %s2459_s6  ;;  %v3227_v22 = vld [vmem:[#allocation2 + $0x121] sm:$0xff] }
 0x14e   : > { %1172 = vrot.lane.b32.xlu2 %v1094_v46, %s2459_s6 }
 0x14f   : > { %v974_v38 = vpop.permute.xlu0 %973  ;;  %1182 = vrot.lane.b32.xlu1 %v3217_v19, %s2459_s6 }
 0x150   : > { %1059 = vst.msk [vmem:[#allocation3 + $0x58] sm:$0xff] %vm1047_vm5, %v974_v38  ;;  %v978_v28 = vpop.permute.xlu2 %977  ;;  %v3767_v38 = vld [vmem:[#allocation7_spill] sm:$0xff] }
 0x151   : > { %v970_v51 = vpop.permute.xlu1 %969  ;;  %1061 = vst.msk [vmem:[#allocation3 + $0x68] sm:$0xff] %vm1047_vm5, %v978_v28 }
 0x152   : > { %1057 = vst.msk [vmem:[#allocation3 + $0x48] sm:$0xff] %vm1047_vm5, %v970_v51 }
 0x155   : > { %1192 = vrot.lane.b32.xlu0 %v2726_v26, %s2459_s6  ;;  %v1105_v26 = vld [vmem:[#allocation2 + $0x141] sm:$0xff] }
 0x156   : > { %1178 = vrot.lane.b32.xlu2 %v1097_v3, %s2459_s6 }
 0x157   : > { %v980_v48 = vpop.permute.xlu0 %979  ;;  %1188 = vrot.lane.b32.xlu1 %v3227_v22, %s2459_s6 }
 0x158   : > { %1062 = vst.msk [vmem:[#allocation3 + $0x70] sm:$0xff] %vm1047_vm5, %v980_v48  ;;  %v984_v33 = vpop.permute.xlu2 %983  ;;  %v3769_v48 = vld [vmem:[#allocation9_spill] sm:$0xff] }
 0x159   : > { %v976_v14 = vpop.permute.xlu1 %975  ;;  %1064 = vst.msk [vmem:[#allocation3 + $0x80] sm:$0xff] %vm1047_vm5, %v984_v33 }
 0x15a   : > { %1060 = vst.msk [vmem:[#allocation3 + $0x60] sm:$0xff] %vm1047_vm5, %v976_v14 }
 0x15d   : > { %1198 = vrot.lane.b32.xlu0 %v2811_v44, %s2459_s6 }
 0x15e   : > { %1184 = vrot.lane.b32.xlu2 %v3242_v57, %s2459_s6 }
 0x15f   : > { %v986_v39 = vpop.permute.xlu0 %985  ;;  %1194 = vrot.lane.b32.xlu1 %v1105_v26, %s2459_s6  ;;  %v3771_v26 = vld [vmem:[#allocation11_spill] sm:$0xff] }
 0x160   : > { %1065 = vst.msk [vmem:[#allocation3 + $0x88] sm:$0xff] %vm1047_vm5, %v986_v39  ;;  %v990_v56 = vpop.permute.xlu2 %989 }
 0x161   : > { %v982_v43 = vpop.permute.xlu1 %981  ;;  %1067 = vst.msk [vmem:[#allocation3 + $0x98] sm:$0xff] %vm1047_vm5, %v990_v56 }
 0x162   : > { %1063 = vst.msk [vmem:[#allocation3 + $0x78] sm:$0xff] %vm1047_vm5, %v982_v43 }
 0x165   : > { %1204 = vrot.lane.b32.xlu0 %v3240_v61, %s2459_s6 }
 0x166   : > { %1190 = vrot.lane.b32.xlu2 %v3253_v2, %s2459_s6 }
 0x167   : > { %v992_v44 = vpop.permute.xlu0 %991  ;;  %1200 = vrot.lane.b32.xlu1 %v2722_v25, %s2459_s6 }
 0x168   : > { %1068 = vst.msk [vmem:[#allocation3 + $0xa0] sm:$0xff] %vm1047_vm5, %v992_v44  ;;  %v996_v55 = vpop.permute.xlu2 %995  ;;  %v3773_v44 = vld [vmem:[#allocation13_spill] sm:$0xff] }
 0x169   : > { %v988_v1 = vpop.permute.xlu1 %987  ;;  %1070 = vst.msk [vmem:[#allocation3 + $0xb0] sm:$0xff] %vm1047_vm5, %v996_v55 }
 0x16a   : > { %1066 = vst.msk [vmem:[#allocation3 + $0x90] sm:$0xff] %vm1047_vm5, %v988_v1  ;;  %v3347_v1 = vld [vmem:[#allocation2 + $0x18a] sm:$0xff] }
 0x16d   : > { %1339 = vrot.lane.b32.xlu0 %v2857_v60, %s2460_s7 }
 0x16e   : > { %1196 = vrot.lane.b32.xlu2 %v2734_v27, %s2459_s6 }
 0x16f   : > { %v998_v49 = vpop.permute.xlu0 %997  ;;  %1206 = vrot.lane.b32.xlu1 %v3260_v63, %s2459_s6 }
 0x170   : > { %1071 = vst.msk [vmem:[#allocation3 + $0xb8] sm:$0xff] %vm1047_vm5, %v998_v49  ;;  %v1002_v15 = vpop.permute.xlu2 %1001 }
 0x171   : > { %v994_v25 = vpop.permute.xlu1 %993  ;;  %1073 = vst.msk [vmem:[#allocation3 + $0xc8] sm:$0xff] %vm1047_vm5, %v1002_v15  ;;  %v3775_v15 = vld [vmem:[#allocation14_spill] sm:$0xff] }
 0x172   : > { %1069 = vst.msk [vmem:[#allocation3 + $0xa8] sm:$0xff] %vm1047_vm5, %v994_v25 }
 0x175   : > { %1345 = vrot.lane.b32.xlu0 %v2883_v9, %s2460_s7 }
 0x176   : > { %1202 = vrot.lane.b32.xlu2 %v2759_v31, %s2459_s6 }
 0x177   : > { %v1004_v60 = vpop.permute.xlu0 %1003  ;;  %1341 = vrot.lane.b32.xlu1 %v2774_v34, %s2460_s7 }
 0x178   : > { %1074 = vst.msk [vmem:[#allocation3 + $0xd0] sm:$0xff] %vm1047_vm5, %v1004_v60  ;;  %v1008_v27 = vpop.permute.xlu2 %1007  ;;  %v1469_v60 = vld [vmem:[#allocation2 + $0x48] sm:$0xff] }
 0x179   : > { %v1000_v41 = vpop.permute.xlu1 %999  ;;  %1076 = vst.msk [vmem:[#allocation3 + $0xe0] sm:$0xff] %vm1047_vm5, %v1008_v27 }
 0x17a   : > { %1072 = vst.msk [vmem:[#allocation3 + $0xc0] sm:$0xff] %vm1047_vm5, %v1000_v41  ;;  %v1467_v41 = vld [vmem:[#allocation2 + $0x30] sm:$0xff] }
 0x17d   : > { %1351 = vrot.lane.b32.xlu0 %v2910_v20, %s2460_s7 }
 0x17e   : > { %1337 = vrot.lane.b32.xlu2 %v2784_v37, %s2460_s7 }
 0x17f   : > { %v1010_v9 = vpop.permute.xlu0 %1009  ;;  %1347 = vrot.lane.b32.xlu1 %v2803_v42, %s2460_s7 }
 0x180   : > { %1077 = vst.msk [vmem:[#allocation3 + $0xe8] sm:$0xff] %vm1047_vm5, %v1010_v9  ;;  %v1014_v20 = vpop.permute.xlu2 %1013 }
 0x181   : > { %v1006_v34 = vpop.permute.xlu1 %1005  ;;  %1079 = vst.msk [vmem:[#allocation3 + $0xf8] sm:$0xff] %vm1047_vm5, %v1014_v20  ;;  %v1470_v20 = vld [vmem:[#allocation2 + $0x50] sm:$0xff] }
 0x182   : > { %1075 = vst.msk [vmem:[#allocation3 + $0xd8] sm:$0xff] %vm1047_vm5, %v1006_v34  ;;  %v1472_v34 = vld [vmem:[#allocation2 + $0x68] sm:$0xff] }
 0x185   : > { %1357 = vrot.lane.b32.xlu0 %v2937_v36, %s2460_s7 }
 0x186   : > { %1343 = vrot.lane.b32.xlu2 %v2819_v45, %s2460_s7 }
 0x187   : > { %v1145_v31 = vpop.permute.xlu0 %1144  ;;  %1353 = vrot.lane.b32.xlu1 %v2832_v50, %s2460_s7 }
 0x188   : > { %1241 = vst.msk [vmem:[#allocation3] sm:$0xff] %vm1240_vm6, %v1145_v31  ;;  %v1149_v36 = vpop.permute.xlu2 %1148  ;;  %v3776_v31 = vld [vmem:[#allocation15_spill] sm:$0xff] }
 0x189   : > { %v1012_v42 = vpop.permute.xlu1 %1011  ;;  %1243 = vst.msk [vmem:[#allocation3 + $0x10] sm:$0xff] %vm1240_vm6, %v1149_v36 }
 0x18a   : > { %1078 = vst.msk [vmem:[#allocation3 + $0xf0] sm:$0xff] %vm1047_vm5, %v1012_v42 }
 0x18d   : > { %1363 = vrot.lane.b32.xlu0 %v2964_v13, %s2460_s7 }
 0x18e   : > { %1349 = vrot.lane.b32.xlu2 %v2841_v52, %s2460_s7 }
 0x18f   : > { %v1151_v37 = vpop.permute.xlu0 %1150  ;;  %1359 = vrot.lane.b32.xlu1 %v2855_v59, %s2460_s7 }
 0x190   : > { %1244 = vst.msk [vmem:[#allocation3 + $0x18] sm:$0xff] %vm1240_vm6, %v1151_v37  ;;  %v1155_v45 = vpop.permute.xlu2 %1154 }
 0x191   : > { %v1147_v50 = vpop.permute.xlu1 %1146  ;;  %1246 = vst.msk [vmem:[#allocation3 + $0x28] sm:$0xff] %vm1240_vm6, %v1155_v45 }
 0x192   : > { %1242 = vst.msk [vmem:[#allocation3 + $0x8] sm:$0xff] %vm1240_vm6, %v1147_v50  ;;  %v1475_v50 = vld [vmem:[#allocation2 + $0x90] sm:$0xff] }
 0x195   : > { %1369 = vrot.lane.b32.xlu0 %v2991_v12, %s2460_s7  ;;  %v3766_v12 = vld [vmem:[#allocation4_spill] sm:$0xff] }
 0x196   : > { %1355 = vrot.lane.b32.xlu2 %v3766_v12, %s2460_s7  ;;  %v1468_v12 = vld [vmem:[#allocation2 + $0x38] sm:$0xff] }
 0x197   : > { %v1157_v13 = vpop.permute.xlu0 %1156  ;;  %1365 = vrot.lane.b32.xlu1 %v3765_v35, %s2460_s7 }
 0x198   : > { %1247 = vst.msk [vmem:[#allocation3 + $0x30] sm:$0xff] %vm1240_vm6, %v1157_v13  ;;  %v1161_v52 = vpop.permute.xlu2 %1160  ;;  %v3372_v13 = vld [vmem:[#allocation2 + $0x182] sm:$0xff] }
 0x199   : > { %v1153_v59 = vpop.permute.xlu1 %1152  ;;  %1249 = vst.msk [vmem:[#allocation3 + $0x40] sm:$0xff] %vm1240_vm6, %v1161_v52 }
 0x19a   : > { %1245 = vst.msk [vmem:[#allocation3 + $0x20] sm:$0xff] %vm1240_vm6, %v1153_v59 }
 0x19d   : > { %1375 = vrot.lane.b32.xlu0 %v3018_v18, %s2460_s7  ;;  %v3768_v18 = vld [vmem:[#allocation6_spill] sm:$0xff] }
 0x19e   : > { %1361 = vrot.lane.b32.xlu2 %v3768_v18, %s2460_s7  ;;  %v1474_v18 = vld [vmem:[#allocation2 + $0x80] sm:$0xff] }
 0x19f   : > { %v1163_v0 = vpop.permute.xlu0 %1162  ;;  %1371 = vrot.lane.b32.xlu1 %v3767_v38, %s2460_s7  ;;  %v1471_v38 = vld [vmem:[#allocation2 + $0x60] sm:$0xff] }
 0x1a0   : > { %1250 = vst.msk [vmem:[#allocation3 + $0x48] sm:$0xff] %vm1240_vm6, %v1163_v0  ;;  %v1167_v46 = vpop.permute.xlu2 %1166 }
 0x1a1   : > { %v1159_v4 = vpop.permute.xlu1 %1158  ;;  %1252 = vst.msk [vmem:[#allocation3 + $0x58] sm:$0xff] %vm1240_vm6, %v1167_v46  ;;  %v1676_v46 = vld [vmem:[#allocation2 + $0xf1] sm:$0xff] }
 0x1a2   : > { %1248 = vst.msk [vmem:[#allocation3 + $0x38] sm:$0xff] %vm1240_vm6, %v1159_v4 }
 0x1a5   : > { %1381 = vrot.lane.b32.xlu0 %v3037_v8, %s2460_s7  ;;  %v3770_v8 = vld [vmem:[#allocation8_spill] sm:$0xff] }
 0x1a6   : > { %1367 = vrot.lane.b32.xlu2 %v3770_v8, %s2460_s7  ;;  %v1685_v8 = vld [vmem:[#allocation2 + $0x159] sm:$0xff] }
 0x1a7   : > { %v1169_v51 = vpop.permute.xlu0 %1168  ;;  %1377 = vrot.lane.b32.xlu1 %v3769_v48, %s2460_s7  ;;  %v1477_v48 = vld [vmem:[#allocation2 + $0xa8] sm:$0xff] }
 0x1a8   : > { %1253 = vst.msk [vmem:[#allocation3 + $0x60] sm:$0xff] %vm1240_vm6, %v1169_v51  ;;  %v1173_v3 = vpop.permute.xlu2 %1172 }
 0x1a9   : > { %v1165_v28 = vpop.permute.xlu1 %1164  ;;  %1255 = vst.msk [vmem:[#allocation3 + $0x70] sm:$0xff] %vm1240_vm6, %v1173_v3 }
 0x1aa   : > { %1251 = vst.msk [vmem:[#allocation3 + $0x50] sm:$0xff] %vm1240_vm6, %v1165_v28 }
 0x1ad   : > { %1387 = vrot.lane.b32.xlu0 %v3049_v17, %s2460_s7  ;;  %v3772_v17 = vld [vmem:[#allocation10_spill] sm:$0xff] }
 0x1ae   : > { %1373 = vrot.lane.b32.xlu2 %v3772_v17, %s2460_s7  ;;  %v1483_v17 = vld [vmem:[#allocation2 + $0xf0] sm:$0xff] }
 0x1af   : > { %v1175_v14 = vpop.permute.xlu0 %1174  ;;  %1383 = vrot.lane.b32.xlu1 %v3771_v26, %s2460_s7 }
 0x1b0   : > { %1256 = vst.msk [vmem:[#allocation3 + $0x78] sm:$0xff] %vm1240_vm6, %v1175_v14  ;;  %v1179_v43 = vpop.permute.xlu2 %1178  ;;  %v1480_v14 = vld [vmem:[#allocation2 + $0xc8] sm:$0xff] }
 0x1b1   : > { %v1171_v39 = vpop.permute.xlu1 %1170  ;;  %1258 = vst.msk [vmem:[#allocation3 + $0x88] sm:$0xff] %vm1240_vm6, %v1179_v43 }
 0x1b2   : > { %1254 = vst.msk [vmem:[#allocation3 + $0x68] sm:$0xff] %vm1240_vm6, %v1171_v39  ;;  %v1877_v39 = vld [vmem:[#allocation2 + $0x152] sm:$0xff] }
 0x1b5   : > { %1393 = vrot.lane.b32.xlu0 %v3059_v7, %s2460_s7  ;;  %v3774_v7 = vld [vmem:[#allocation12_spill] sm:$0xff] }
 0x1b6   : > { %1379 = vrot.lane.b32.xlu2 %v3774_v7, %s2460_s7  ;;  %v1878_v7 = vld [vmem:[#allocation2 + $0x15a] sm:$0xff] }
 0x1b7   : > { %v1181_v33 = vpop.permute.xlu0 %1180  ;;  %1389 = vrot.lane.b32.xlu1 %v3773_v44, %s2460_s7 }
 0x1b8   : > { %1259 = vst.msk [vmem:[#allocation3 + $0x90] sm:$0xff] %vm1240_vm6, %v1181_v33  ;;  %v1185_v55 = vpop.permute.xlu2 %1184  ;;  %v1869_v33 = vld [vmem:[#allocation2 + $0xf2] sm:$0xff] }
 0x1b9   : > { %v1177_v56 = vpop.permute.xlu1 %1176  ;;  %1261 = vst.msk [vmem:[#allocation3 + $0xa0] sm:$0xff] %vm1240_vm6, %v1185_v55 }
 0x1ba   : > { %1257 = vst.msk [vmem:[#allocation3 + $0x80] sm:$0xff] %vm1240_vm6, %v1177_v56  ;;  %v1661_v56 = vld [vmem:[#allocation2 + $0x39] sm:$0xff] }
 0x1bd   : > { %1399 = vrot.lane.b32.xlu0 %v3347_v1, %s2460_s7 }
 0x1be   : > { %1385 = vrot.lane.b32.xlu2 %v3775_v15, %s2460_s7  ;;  %v1684_v15 = vld [vmem:[#allocation2 + $0x151] sm:$0xff] }
 0x1bf   : > { %v1187_v49 = vpop.permute.xlu0 %1186  ;;  %1395 = vrot.lane.b32.xlu1 %v3016_v10, %s2460_s7 }
 0x1c0   : > { %1262 = vst.msk [vmem:[#allocation3 + $0xa8] sm:$0xff] %vm1240_vm6, %v1187_v49  ;;  %v1191_v27 = vpop.permute.xlu2 %1190 }
 0x1c1   : > { %v1183_v25 = vpop.permute.xlu1 %1182  ;;  %1264 = vst.msk [vmem:[#allocation3 + $0xb8] sm:$0xff] %vm1240_vm6, %v1191_v27  ;;  %v1862_v27 = vld [vmem:[#allocation2 + $0x9a] sm:$0xff] }
 0x1c2   : > { %1260 = vst.msk [vmem:[#allocation3 + $0x98] sm:$0xff] %vm1240_vm6, %v1183_v25 }
 0x1c5   : > { %1535 = vrot.lane.b32.xlu0 %v1469_v60, %s2461_s8  ;;  %v1853_v60 = vld [vmem:[#allocation2 + $0x32] sm:$0xff] }
 0x1c6   : > { %1391 = vrot.lane.b32.xlu2 %v3776_v31, %s2460_s7 }
 0x1c7   : > { %v1193_v9 = vpop.permute.xlu0 %1192  ;;  %1531 = vrot.lane.b32.xlu1 %v1467_v41, %s2461_s8 }
 0x1c8   : > { %1265 = vst.msk [vmem:[#allocation3 + $0xc0] sm:$0xff] %vm1240_vm6, %v1193_v9  ;;  %v1197_v37 = vpop.permute.xlu2 %1196 }
 0x1c9   : > { %v1189_v10 = vpop.permute.xlu1 %1188  ;;  %1267 = vst.msk [vmem:[#allocation3 + $0xd0] sm:$0xff] %vm1240_vm6, %v1197_v37  ;;  %v1485_v37 = vld [vmem:[#allocation2 + $0x108] sm:$0xff] }
 0x1ca   : > { %1263 = vst.msk [vmem:[#allocation3 + $0xb0] sm:$0xff] %vm1240_vm6, %v1189_v10  ;;  %v1870_v10 = vld [vmem:[#allocation2 + $0xfa] sm:$0xff] }
 0x1cd   : > { %1541 = vrot.lane.b32.xlu0 %v1472_v34, %s2461_s8  ;;  %v1854_v34 = vld [vmem:[#allocation2 + $0x3a] sm:$0xff] }
 0x1ce   : > { %1397 = vrot.lane.b32.xlu2 %v3372_v13, %s2460_s7 }
 0x1cf   : > { %v1199_v42 = vpop.permute.xlu0 %1198  ;;  %1537 = vrot.lane.b32.xlu1 %v1470_v20, %s2461_s8 }
 0x1d0   : > { %1268 = vst.msk [vmem:[#allocation3 + $0xd8] sm:$0xff] %vm1240_vm6, %v1199_v42  ;;  %v1203_v35 = vpop.permute.xlu2 %1202  ;;  %v1493_v42 = vld [vmem:[#allocation2 + $0x168] sm:$0xff] }
 0x1d1   : > { %v1195_v36 = vpop.permute.xlu1 %1194  ;;  %1270 = vst.msk [vmem:[#allocation3 + $0xe8] sm:$0xff] %vm1240_vm6, %v1203_v35  ;;  %v1679_v35 = vld [vmem:[#allocation2 + $0x111] sm:$0xff] }
 0x1d2   : > { %1266 = vst.msk [vmem:[#allocation3 + $0xc8] sm:$0xff] %vm1240_vm6, %v1195_v36 }
 0x1d5   : > { %1547 = vrot.lane.b32.xlu0 %v1475_v50, %s2461_s8 }
 0x1d6   : > { %1533 = vrot.lane.b32.xlu2 %v1468_v12, %s2461_s8 }
 0x1d7   : > { %v1205_v45 = vpop.permute.xlu0 %1204  ;;  %1543 = vrot.lane.b32.xlu1 %v2852_v58, %s2461_s8 }
 0x1d8   : > { %1271 = vst.msk [vmem:[#allocation3 + $0xf0] sm:$0xff] %vm1240_vm6, %v1205_v45  ;;  %v1338_v52 = vpop.permute.xlu2 %1337 }
 0x1d9   : > { %v1201_v59 = vpop.permute.xlu1 %1200  ;;  %1434 = vst.msk [vmem:[#allocation3] sm:$0xff] %vm1433_vm7, %v1338_v52  ;;  %v1871_v52 = vld [vmem:[#allocation2 + $0x10a] sm:$0xff] }
 0x1da   : > { %1269 = vst.msk [vmem:[#allocation3 + $0xe0] sm:$0xff] %vm1240_vm6, %v1201_v59  ;;  %v1494_v59 = vld [vmem:[#allocation2 + $0x170] sm:$0xff] }
 0x1dd   : > { %1553 = vrot.lane.b32.xlu0 %v2869_v62, %s2461_s8 }
 0x1de   : > { %1539 = vrot.lane.b32.xlu2 %v1471_v38, %s2461_s8 }
 0x1df   : > { %v1340_v0 = vpop.permute.xlu0 %1339  ;;  %1549 = vrot.lane.b32.xlu1 %v2879_v6, %s2461_s8 }
 0x1e0   : > { %1435 = vst.msk [vmem:[#allocation3 + $0x8] sm:$0xff] %vm1433_vm7, %v1340_v0  ;;  %v1344_v4 = vpop.permute.xlu2 %1343 }
 0x1e1   : > { %v1207_v58 = vpop.permute.xlu1 %1206  ;;  %1437 = vst.msk [vmem:[#allocation3 + $0x18] sm:$0xff] %vm1433_vm7, %v1344_v4 }
 0x1e2   : > { %1272 = vst.msk [vmem:[#allocation3 + $0xf8] sm:$0xff] %vm1240_vm6, %v1207_v58  ;;  %v1861_v58 = vld [vmem:[#allocation2 + $0x92] sm:$0xff] }
 0x1e5   : > { %1559 = vrot.lane.b32.xlu0 %v2896_v11, %s2461_s8 }
 0x1e6   : > { %1545 = vrot.lane.b32.xlu2 %v1474_v18, %s2461_s8  ;;  %v1486_v18 = vld [vmem:[#allocation2 + $0x110] sm:$0xff] }
 0x1e7   : > { %v1346_v62 = vpop.permute.xlu0 %1345  ;;  %1555 = vrot.lane.b32.xlu1 %v2906_v16, %s2461_s8 }
 0x1e8   : > { %1438 = vst.msk [vmem:[#allocation3 + $0x20] sm:$0xff] %vm1433_vm7, %v1346_v62  ;;  %v1350_v51 = vpop.permute.xlu2 %1349 }
 0x1e9   : > { %v1342_v6 = vpop.permute.xlu1 %1341  ;;  %1440 = vst.msk [vmem:[#allocation3 + $0x30] sm:$0xff] %vm1433_vm7, %v1350_v51 }
 0x1ea   : > { %1436 = vst.msk [vmem:[#allocation3 + $0x10] sm:$0xff] %vm1433_vm7, %v1342_v6  ;;  %v1880_v6 = vld [vmem:[#allocation2 + $0x172] sm:$0xff] }
 0x1ed   : > { %1565 = vrot.lane.b32.xlu0 %v2923_v23, %s2461_s8 }
 0x1ee   : > { %1551 = vrot.lane.b32.xlu2 %v1477_v48, %s2461_s8  ;;  %v1670_v48 = vld [vmem:[#allocation2 + $0xa9] sm:$0xff] }
 0x1ef   : > { %v1352_v11 = vpop.permute.xlu0 %1351  ;;  %1561 = vrot.lane.b32.xlu1 %v2933_v32, %s2461_s8 }
 0x1f0   : > { %1441 = vst.msk [vmem:[#allocation3 + $0x38] sm:$0xff] %vm1433_vm7, %v1352_v11  ;;  %v1356_v28 = vpop.permute.xlu2 %1355  ;;  %v1872_v11 = vld [vmem:[#allocation2 + $0x112] sm:$0xff] }
 0x1f1   : > { %v1348_v16 = vpop.permute.xlu1 %1347  ;;  %1443 = vst.msk [vmem:[#allocation3 + $0x48] sm:$0xff] %vm1433_vm7, %v1356_v28 }
 0x1f2   : > { %1439 = vst.msk [vmem:[#allocation3 + $0x28] sm:$0xff] %vm1433_vm7, %v1348_v16 }
 0x1f5   : > { %1756 = vrot.lane.b32.xlu0 %v1676_v46, %s2462_s9 }
 0x1f6   : > { %1557 = vrot.lane.b32.xlu2 %v1480_v14, %s2461_s8  ;;  %v1687_v14 = vld [vmem:[#allocation2 + $0x171] sm:$0xff] }
 0x1f7   : > { %v1358_v23 = vpop.permute.xlu0 %1357  ;;  %1579 = vrot.lane.b32.xlu1 %v3014_v47, %s2461_s8 }
 0x1f8   : > { %1444 = vst.msk [vmem:[#allocation3 + $0x50] sm:$0xff] %vm1433_vm7, %v1358_v23  ;;  %v1362_v26 = vpop.permute.xlu2 %1361 }
 0x1f9   : > { %v1354_v32 = vpop.permute.xlu1 %1353  ;;  %1446 = vst.msk [vmem:[#allocation3 + $0x60] sm:$0xff] %vm1433_vm7, %v1362_v26 }
 0x1fa   : > { %1442 = vst.msk [vmem:[#allocation3 + $0x40] sm:$0xff] %vm1433_vm7, %v1354_v32 }
 0x1fd   : > { %1774 = vrot.lane.b32.xlu0 %v1685_v8, %s2462_s9  ;;  %v1856_v8 = vld [vmem:[#allocation2 + $0x52] sm:$0xff] }
 0x1fe   : > { %1563 = vrot.lane.b32.xlu2 %v1483_v17, %s2461_s8  ;;  %v1487_v17 = vld [vmem:[#allocation2 + $0x120] sm:$0xff] }
 0x1ff   : > { %v1364_v3 = vpop.permute.xlu0 %1363  ;;  %1758 = vrot.lane.b32.xlu1 %v3217_v19, %s2462_s9 }
 0x200   : > { %1447 = vst.msk [vmem:[#allocation3 + $0x68] sm:$0xff] %vm1433_vm7, %v1364_v3  ;;  %v1368_v44 = vpop.permute.xlu2 %1367 }
 0x201   : > { %v1360_v47 = vpop.permute.xlu1 %1359  ;;  %1449 = vst.msk [vmem:[#allocation3 + $0x78] sm:$0xff] %vm1433_vm7, %v1368_v44  ;;  %v1863_v44 = vld [vmem:[#allocation2 + $0xaa] sm:$0xff] }
 0x202   : > { %1445 = vst.msk [vmem:[#allocation3 + $0x58] sm:$0xff] %vm1433_vm7, %v1360_v47 }
 0x205   : > { %1965 = vrot.lane.b32.xlu0 %v1877_v39, %s2463_s10 }
 0x206   : > { %1581 = vrot.lane.b32.xlu2 %v3011_v21, %s2461_s8 }
 0x207   : > { %v1370_v43 = vpop.permute.xlu0 %1369  ;;  %1949 = vrot.lane.b32.xlu1 %v1869_v33, %s2463_s10  ;;  %v1879_v33 = vld [vmem:[#allocation2 + $0x16a] sm:$0xff] }
 0x208   : > { %1450 = vst.msk [vmem:[#allocation3 + $0x80] sm:$0xff] %vm1433_vm7, %v1370_v43  ;;  %v1374_v55 = vpop.permute.xlu2 %1373 }
 0x209   : > { %v1366_v19 = vpop.permute.xlu1 %1365  ;;  %1452 = vst.msk [vmem:[#allocation3 + $0x90] sm:$0xff] %vm1433_vm7, %v1374_v55  ;;  %v1488_v55 = vld [vmem:[#allocation2 + $0x128] sm:$0xff] }
 0x20a   : > { %1448 = vst.msk [vmem:[#allocation3 + $0x70] sm:$0xff] %vm1433_vm7, %v1366_v19 }
 0x20d   : > { %1726 = vrot.lane.b32.xlu0 %v1661_v56, %s2462_s9 }
 0x20e   : > { %1772 = vrot.lane.b32.xlu2 %v1684_v15, %s2462_s9 }
 0x20f   : > { %v1376_v49 = vpop.permute.xlu0 %1375  ;;  %1967 = vrot.lane.b32.xlu1 %v1878_v7, %s2463_s10  ;;  %v2410_v7 = vld [vmem:[%s3738_s3 + $0x10] sm:$0xff] }
 0x210   : > { %1453 = vst.msk [vmem:[#allocation3 + $0x98] sm:$0xff] %vm1433_vm7, %v1376_v49  ;;  %v1380_v21 = vpop.permute.xlu2 %1379 }
 0x211   : > { %v1372_v25 = vpop.permute.xlu1 %1371  ;;  %1455 = vst.msk [vmem:[#allocation3 + $0xa8] sm:$0xff] %vm1433_vm7, %v1380_v21 }
 0x212   : > { %1451 = vst.msk [vmem:[#allocation3 + $0x88] sm:$0xff] %vm1433_vm7, %v1372_v25  ;;  %v2409_v25 = vld [vmem:[%s3738_s3 + $0x8] sm:$0xff] }
 0x215   : > { %1917 = vrot.lane.b32.xlu0 %v1853_v60, %s2463_s10 }
 0x216   : > { %1951 = vrot.lane.b32.xlu2 %v1870_v10, %s2463_s10  ;;  %v1874_v10 = vld [vmem:[#allocation2 + $0x12a] sm:$0xff] }
 0x217   : > { %v1382_v41 = vpop.permute.xlu0 %1381  ;;  %1740 = vrot.lane.b32.xlu1 %v3184_v54, %s2462_s9 }
 0x218   : > { %1456 = vst.msk [vmem:[#allocation3 + $0xb0] sm:$0xff] %vm1433_vm7, %v1382_v41  ;;  %v1386_v20 = vpop.permute.xlu2 %1385  ;;  %v1855_v41 = vld [vmem:[#allocation2 + $0x4a] sm:$0xff] }
 0x219   : > { %v1378_v9 = vpop.permute.xlu1 %1377  ;;  %1458 = vst.msk [vmem:[#allocation3 + $0xc0] sm:$0xff] %vm1433_vm7, %v1386_v20  ;;  %v1664_v20 = vld [vmem:[#allocation2 + $0x61] sm:$0xff] }
 0x21a   : > { %1454 = vst.msk [vmem:[#allocation3 + $0xa0] sm:$0xff] %vm1433_vm7, %v1378_v9 }
 0x21d   : > { %1935 = vrot.lane.b32.xlu0 %v1862_v27, %s2463_s10 }
 0x21e   : > { %1724 = vrot.lane.b32.xlu2 %v3177_v30, %s2462_s9 }
 0x21f   : > { %v1388_v31 = vpop.permute.xlu0 %1387  ;;  %1919 = vrot.lane.b32.xlu1 %v1854_v34, %s2463_s10  ;;  %v1864_v34 = vld [vmem:[#allocation2 + $0xb2] sm:$0xff] }
 0x220   : > { %1459 = vst.msk [vmem:[#allocation3 + $0xc8] sm:$0xff] %vm1433_vm7, %v1388_v31  ;;  %v1392_v50 = vpop.permute.xlu2 %1391 }
 0x221   : > { %v1384_v54 = vpop.permute.xlu1 %1383  ;;  %1461 = vst.msk [vmem:[#allocation3 + $0xd8] sm:$0xff] %vm1433_vm7, %v1392_v50  ;;  %v1665_v50 = vld [vmem:[#allocation2 + $0x69] sm:$0xff] }
 0x222   : > { %1457 = vst.msk [vmem:[#allocation3 + $0xb8] sm:$0xff] %vm1433_vm7, %v1384_v54  ;;  %v1495_v54 = vld [vmem:[#allocation2 + $0x180] sm:$0xff] }
 0x225   : > { %1583 = vrot.lane.b32.xlu0 %v1493_v42, %s2461_s8 }
 0x226   : > { %1742 = vrot.lane.b32.xlu2 %v3210_v29, %s2462_s9  ;;  %v1686_v29 = vld [vmem:[#allocation2 + $0x169] sm:$0xff] }
 0x227   : > { %v1394_v36 = vpop.permute.xlu0 %1393  ;;  %1567 = vrot.lane.b32.xlu1 %v1485_v37, %s2461_s8 }
 0x228   : > { %1462 = vst.msk [vmem:[#allocation3 + $0xe0] sm:$0xff] %vm1433_vm7, %v1394_v36  ;;  %v1398_v12 = vpop.permute.xlu2 %1397  ;;  %v1673_v36 = vld [vmem:[#allocation2 + $0xc9] sm:$0xff] }
 0x229   : > { %v1390_v45 = vpop.permute.xlu1 %1389  ;;  %1464 = vst.msk [vmem:[#allocation3 + $0xf0] sm:$0xff] %vm1433_vm7, %v1398_v12  ;;  %v1873_v12 = vld [vmem:[#allocation2 + $0x122] sm:$0xff] }
 0x22a   : > { %1460 = vst.msk [vmem:[#allocation3 + $0xd0] sm:$0xff] %vm1433_vm7, %v1390_v45 }
 0x22d   : > { %1762 = vrot.lane.b32.xlu0 %v1679_v35, %s2462_s9 }
 0x22e   : > { %1933 = vrot.lane.b32.xlu2 %v1861_v58, %s2463_s10 }
 0x22f   : > { %v1400_v30 = vpop.permute.xlu0 %1399  ;;  %1585 = vrot.lane.b32.xlu1 %v1494_v59, %s2461_s8 }
 0x230   : > { %1465 = vst.msk [vmem:[#allocation3 + $0xf8] sm:$0xff] %vm1433_vm7, %v1400_v30  ;;  %v1534_v62 = vpop.permute.xlu2 %1533  ;;  %v1865_v30 = vld [vmem:[#allocation2 + $0xc2] sm:$0xff] }
 0x231   : > { %v1396_v0 = vpop.permute.xlu1 %1395  ;;  %1629 = vst.msk [vmem:[#allocation3 + $0x8] sm:$0xff] %vm1627_vm8, %v1534_v62  ;;  %v1490_v62 = vld [vmem:[#allocation2 + $0x140] sm:$0xff] }
 0x232   : > { %1463 = vst.msk [vmem:[#allocation3 + $0xe8] sm:$0xff] %vm1433_vm7, %v1396_v0 }
 0x235   : > { %1953 = vrot.lane.b32.xlu0 %v1871_v52, %s2463_s10 }
 0x236   : > { %1569 = vrot.lane.b32.xlu2 %v1486_v18, %s2461_s8 }
 0x237   : > { %v1536_v38 = vpop.permute.xlu0 %1535  ;;  %1776 = vrot.lane.b32.xlu1 %v1686_v29, %s2462_s9 }
 0x238   : > { %1630 = vst.msk [vmem:[#allocation3 + $0x10] sm:$0xff] %vm1627_vm8, %v1536_v38  ;;  %v1540_v16 = vpop.permute.xlu2 %1539 }
 0x239   : > { %v1532_v4 = vpop.permute.xlu1 %1531  ;;  %1632 = vst.msk [vmem:[#allocation3 + $0x20] sm:$0xff] %vm1627_vm8, %v1540_v16 }
 0x23a   : > { %1628 = vst.msk [vmem:[#allocation3] sm:$0xff] %vm1627_vm8, %v1532_v4 }
 0x23d   : > { %1971 = vrot.lane.b32.xlu0 %v1880_v6, %s2463_s10 }
 0x23e   : > { %1760 = vrot.lane.b32.xlu2 %v3242_v57, %s2462_s9  ;;  %v2102_v57 = vld [vmem:[%s3738_s3 + $0x20] sm:$0xf] }
 0x23f   : > { %v1542_v51 = vpop.permute.xlu0 %1541  ;;  %1955 = vrot.lane.b32.xlu1 %v1872_v11, %s2463_s10  ;;  %v2124_v3 = vunpack.c.l.b16 %v2102_v57  ;;  %v1866_v11 = vld [vmem:[#allocation2 + $0xca] sm:$0xff] }
 0x240   : > { %1633 = vst.msk [vmem:[#allocation3 + $0x28] sm:$0xff] %vm1627_vm8, %v1542_v51  ;;  %v1546_v28 = vpop.permute.xlu2 %1545 }
 0x241   : > { %v1538_v46 = vpop.permute.xlu1 %1537  ;;  %1635 = vst.msk [vmem:[#allocation3 + $0x38] sm:$0xff] %vm1627_vm8, %v1546_v28 }
 0x242   : > { %1631 = vst.msk [vmem:[#allocation3 + $0x18] sm:$0xff] %vm1627_vm8, %v1538_v46 }
 0x245   : > { %1744 = vrot.lane.b32.xlu0 %v1670_v48, %s2462_s9  ;;  %v1682_v48 = vld [vmem:[#allocation2 + $0x139] sm:$0xff] }
 0x246   : > { %1778 = vrot.lane.b32.xlu2 %v1687_v14, %s2462_s9 }
 0x247   : > { %v1548_v23 = vpop.permute.xlu0 %1547  ;;  %1728 = vrot.lane.b32.xlu1 %v3161_v24, %s2462_s9  ;;  %v2129_v24 = vpack.c.b16 %v2124_v3, %v2124_v3  ;;  %v1691_v3 = vld [vmem:[#allocation2 + $0x1a1] sm:$0xff] }
 0x248   : > { %1636 = vst.msk [vmem:[#allocation3 + $0x40] sm:$0xff] %vm1627_vm8, %v1548_v23  ;;  %v1552_v47 = vpop.permute.xlu2 %1551  ;;  %v1672_v23 = vld [vmem:[#allocation2 + $0xc1] sm:$0xff] }
 0x249   : > { %v1544_v32 = vpop.permute.xlu1 %1543  ;;  %1638 = vst.msk [vmem:[#allocation3 + $0x50] sm:$0xff] %vm1627_vm8, %v1552_v47  ;;  %v2185_v43 = vsel %vm2183_vm9, %v2129_v24, 0  ;;  %v1858_v47 = vld [vmem:[#allocation2 + $0x6a] sm:$0xff] }
 0x24a   : > { %1634 = vst.msk [vmem:[#allocation3 + $0x30] sm:$0xff] %vm1627_vm8, %v1544_v32  ;;  %2413 = vmatpush.bf16.msra.mxu2 %v2185_v43  ;;  %2414 = vmatpush.bf16.msra.mxu3 %v2185_v43 }
 0x24b   : > { %2412 = vmatpush.bf16.msra.mxu1 %v2185_v43  ;;  %2190 = vmatpush.bf16.msra.mxu0 %v2185_v43 }
 0x24d   : > { %1923 = vrot.lane.b32.xlu0 %v1856_v8, %s2463_s10 }
 0x24e   : > { %1969 = vrot.lane.b32.xlu2 %v1879_v33, %s2463_s10  ;;  %v1683_v33 = vld [vmem:[#allocation2 + $0x141] sm:$0xff] }
 0x24f   : > { %v1554_v26 = vpop.permute.xlu0 %1553  ;;  %1746 = vrot.lane.b32.xlu1 %v3197_v5, %s2462_s9  ;;  %v2411_v5 = vld [vmem:[%s3738_s3 + $0x18] sm:$0xff] }
 0x250   : > { %1639 = vst.msk [vmem:[#allocation3 + $0x58] sm:$0xff] %vm1627_vm8, %v1554_v26  ;;  %v1558_v56 = vpop.permute.xlu2 %1557  ;;  %2416 = vmatpush.bf16.msra.mxu2 %v2411_v5  ;;  %2417 = vmatpush.bf16.msra.mxu3 %v2411_v5 }
 0x251   : > { %v1550_v39 = vpop.permute.xlu1 %1549  ;;  %2415 = vmatpush.bf16.msra.mxu1 %v2411_v5  ;;  %1641 = vst.msk [vmem:[#allocation3 + $0x68] sm:$0xff] %vm1627_vm8, %v1558_v56  ;;  %2191 = vmatpush.bf16.msra.mxu0 %v2411_v5  ;;  %v1489_v56 = vld [vmem:[#allocation2 + $0x138] sm:$0xff] }
 0x252   : > { %1637 = vst.msk [vmem:[#allocation3 + $0x48] sm:$0xff] %vm1627_vm8, %v1550_v39 }
 0x254   : > { %2419 = vmatpush.bf16.msra.mxu2 %v2410_v7  ;;  %2420 = vmatpush.bf16.msra.mxu3 %v2410_v7 }
 0x255   : > { %1571 = vrot.lane.b32.xlu0 %v1487_v17, %s2461_s8  ;;  %2418 = vmatpush.bf16.msra.mxu1 %v2410_v7 }
 0x256   : > { %1730 = vrot.lane.b32.xlu2 %v3190_v40, %s2462_s9  ;;  %2192 = vmatpush.bf16.msra.mxu0 %v2410_v7  ;;  %v1875_v7 = vld [vmem:[#allocation2 + $0x13a] sm:$0xff] }
 0x257   : > { %v1560_v19 = vpop.permute.xlu0 %1559  ;;  %1937 = vrot.lane.b32.xlu1 %v1863_v44, %s2463_s10 }
 0x258   : > { %1642 = vst.msk [vmem:[#allocation3 + $0x70] sm:$0xff] %vm1627_vm8, %v1560_v19  ;;  %v1564_v15 = vpop.permute.xlu2 %1563  ;;  %2422 = vmatpush.bf16.msra.mxu2 %v2409_v25  ;;  %2423 = vmatpush.bf16.msra.mxu3 %v2409_v25  ;;  %v1883_v19 = vld [vmem:[#allocation2 + $0x19a] sm:$0xff] }
 0x259   : > { %v1556_v49 = vpop.permute.xlu1 %1555  ;;  %2421 = vmatpush.bf16.msra.mxu1 %v2409_v25  ;;  %1644 = vst.msk [vmem:[#allocation3 + $0x80] sm:$0xff] %vm1627_vm8, %v1564_v15  ;;  %v1498_v15 = vld [vmem:[#allocation2 + $0x1a0] sm:$0xff] }
 0x25a   : > { %1640 = vst.msk [vmem:[#allocation3 + $0x60] sm:$0xff] %vm1627_vm8, %v1556_v49  ;;  %2193 = vmatpush.bf16.msra.mxu0 %v2409_v25 }
 0x25d   : > { %1589 = vrot.lane.b32.xlu0 %v3167_v53, %s2461_s8  ;;  %v2408_v53 = vld [vmem:[%s3738_s3] sm:$0xff] }
 0x25e   : > { %2425 = vmatpush.bf16.msra.mxu2 %v2408_v53  ;;  %2426 = vmatpush.bf16.msra.mxu3 %v2408_v53 }
 0x25f   : > { %v1566_v60 = vpop.permute.xlu0 %1565  ;;  %1573 = vrot.lane.b32.xlu1 %v1488_v55, %s2461_s8  ;;  %2424 = vmatpush.bf16.msra.mxu1 %v2408_v53 }
 0x260   : > { %1645 = vst.msk [vmem:[#allocation3 + $0x88] sm:$0xff] %vm1627_vm8, %v1566_v60  ;;  %1921 = vrot.lane.b32.xlu2 %v1855_v41, %s2463_s10  ;;  %2194 = vmatpush.bf16.msra.mxu0 %v2408_v53  ;;  %v1582_v9 = vpop.permute.xlu2 %1581  ;;  %v1667_v60 = vld [vmem:[#allocation2 + $0x81] sm:$0xff] }
 0x261   : > { %v1562_v40 = vpop.permute.xlu1 %1561  ;;  %1653 = vst.msk [vmem:[#allocation3 + $0xc8] sm:$0xff] %vm1627_vm8, %v1582_v9  ;;  %v1884_v53 = vld [vmem:[#allocation2 + $0x1a2] sm:$0xff]  ;;  %v1859_v9 = vld [vmem:[#allocation2 + $0x7a] sm:$0xff] }
 0x262   : > { %1643 = vst.msk [vmem:[#allocation3 + $0x78] sm:$0xff] %vm1627_vm8, %v1562_v40 }
 0x265   : > { %1780 = vrot.lane.b32.xlu0 %v3240_v61, %s2462_s9 }
 0x267   : > { %v1757_v21 = vpop.permute.xlu0 %1756  ;;  %1764 = vrot.lane.b32.xlu1 %v3227_v22, %s2462_s9 }
 0x268   : > { %1837 = vst.msk [vmem:[#allocation3 + $0x80] sm:$0xff] %vm1820_vm10, %v1757_v21  ;;  %1939 = vrot.lane.b32.xlu2 %v1864_v34, %s2463_s10  ;;  %v1773_v31 = vpop.permute.xlu2 %1772 }
 0x269   : > { %v1580_v27 = vpop.permute.xlu1 %1579 }
 0x26a   : > { %1652 = vst.msk [vmem:[#allocation3 + $0xc0] sm:$0xff] %vm1627_vm8, %v1580_v27  ;;  %v1690_v27 = vld [vmem:[#allocation2 + $0x199] sm:$0xff] }
 0x26b   : > { %1845 = vst.msk [vmem:[#allocation3 + $0xc0] sm:$0xff] %vm1820_vm10, %v1773_v31 }
 0x26d   : > { %1959 = vrot.lane.b32.xlu0 %v1874_v10, %s2463_s10  ;;  %v1674_v10 = vld [vmem:[#allocation2 + $0xd9] sm:$0xff] }
 0x26f   : > { %v1775_v61 = vpop.permute.xlu0 %1774  ;;  %1782 = vrot.lane.b32.xlu1 %v3260_v63, %s2462_s9 }
 0x270   : > { %1846 = vst.msk [vmem:[#allocation3 + $0xc8] sm:$0xff] %vm1820_vm10, %v1775_v61  ;;  %1587 = vrot.lane.b32.xlu2 %v1495_v54, %s2461_s8  ;;  %v1952_v37 = vpop.permute.xlu2 %1951  ;;  %v1868_v54 = vld [vmem:[#allocation2 + $0xe2] sm:$0xff] }
 0x271   : > { %v1759_v22 = vpop.permute.xlu1 %1758 }
 0x272   : > { %1838 = vst.msk [vmem:[#allocation3 + $0x88] sm:$0xff] %vm1820_vm10, %v1759_v22 }
 0x273   : > { %2031 = vst.msk [vmem:[#allocation3 + $0x88] sm:$0xff] %vm2013_vm11, %v1952_v37  ;;  %v1876_v37 = vld [vmem:[#allocation2 + $0x142] sm:$0xff] }
 0x275   : > { %1732 = vrot.lane.b32.xlu0 %v1664_v20, %s2462_s9 }
 0x277   : > { %v1966_v42 = vpop.permute.xlu0 %1965  ;;  %1973 = vrot.lane.b32.xlu1 %v3372_v13, %s2463_s10 }
 0x278   : > { %2038 = vst.msk [vmem:[#allocation3 + $0xc0] sm:$0xff] %vm2013_vm11, %v1966_v42  ;;  %1766 = vrot.lane.b32.xlu2 %v3253_v2, %s2462_s9  ;;  %v1725_v35 = vpop.permute.xlu2 %1724  ;;  %v1857_v2 = vld [vmem:[#allocation2 + $0x62] sm:$0xff] }
 0x279   : > { %v1950_v63 = vpop.permute.xlu1 %1949  ;;  %1821 = vst.msk [vmem:[#allocation3] sm:$0xff] %vm1820_vm10, %v1725_v35 }
 0x27a   : > { %2030 = vst.msk [vmem:[#allocation3 + $0x80] sm:$0xff] %vm2013_vm11, %v1950_v63  ;;  %v2063_v59 = vld [vmem:[#allocation3 + $0x88] sm:$0xff] }
 0x27d   : > { %1750 = vrot.lane.b32.xlu0 %v1673_v36, %s2462_s9 }
 0x27f   : > { %v1727_v45 = vpop.permute.xlu0 %1726  ;;  %1734 = vrot.lane.b32.xlu1 %v1665_v50, %s2462_s9  ;;  %v2070_v4 = vld [vmem:[#allocation3 + $0xc0] sm:$0xff] }
 0x280   : > { %1822 = vst.msk [vmem:[#allocation3 + $0x8] sm:$0xff] %vm1820_vm10, %v1727_v45  ;;  %1957 = vrot.lane.b32.xlu2 %v1873_v12, %s2463_s10  ;;  %v1743_v29 = vpop.permute.xlu2 %1742  ;;  %v1860_v45 = vld [vmem:[#allocation2 + $0x82] sm:$0xff] }
 0x281   : > { %v1968_v13 = vpop.permute.xlu1 %1967  ;;  %v2062_v0 = vld [vmem:[#allocation3 + $0x80] sm:$0xff]  ;;  %1830 = vst.msk [vmem:[#allocation3 + $0x48] sm:$0xff] %vm1820_vm10, %v1743_v29 }
 0x282   : > { %2039 = vst.msk [vmem:[#allocation3 + $0xc8] sm:$0xff] %vm2013_vm11, %v1968_v13  ;;  %v2086_v52 = vpack.c.bf16 %v2063_v59, %v2062_v0 }
 0x284   : > { %2396 = vmatmul.msk.bf16.vlgmr.msra.gmra.mxu2 %vm2134_vm12, %v2086_v52 }
 0x285   : > { %1941 = vrot.lane.b32.xlu0 %v1865_v30, %s2463_s10  ;;  %v1666_v30 = vld [vmem:[#allocation2 + $0x79] sm:$0xff] }
 0x287   : > { %v1918_v58 = vpop.permute.xlu0 %1917  ;;  %1925 = vrot.lane.b32.xlu1 %v1857_v2, %s2463_s10 }
 0x288   : > { %2014 = vst.msk [vmem:[#allocation3] sm:$0xff] %vm2013_vm11, %v1918_v58  ;;  %1975 = vrot.lane.b32.xlu2 %v3347_v1, %s2463_s10  ;;  %v1934_v16 = vpop.permute.xlu2 %1933  ;;  %v1497_v1 = vld [vmem:[#allocation2 + $0x198] sm:$0xff] }
 0x289   : > { %v1741_v38 = vpop.permute.xlu1 %1740  ;;  %v2071_v6 = vld [vmem:[#allocation3 + $0xc8] sm:$0xff] }
 0x28a   : > { %1829 = vst.msk [vmem:[#allocation3 + $0x40] sm:$0xff] %vm1820_vm10, %v1741_v38  ;;  %v2090_v18 = vpack.c.bf16 %v2071_v6, %v2070_v4  ;;  %v1675_v38 = vld [vmem:[#allocation2 + $0xe1] sm:$0xff] }
 0x28b   : > { %2022 = vst.msk [vmem:[#allocation3 + $0x40] sm:$0xff] %vm2013_vm11, %v1934_v16 }
 0x28c   : > { %2400 = vmatmul.msk.bf16.vlgmr.msra.gmra.mxu3 %vm2134_vm12, %v2090_v18 }
 0x28d   : > { %1577 = vrot.lane.b32.xlu0 %v1490_v62, %s2461_s8 }
 0x28f   : > { %v1936_v51 = vpop.permute.xlu0 %1935  ;;  %1943 = vrot.lane.b32.xlu1 %v1866_v11, %s2463_s10  ;;  %v2046_v24 = vld [vmem:[#allocation3] sm:$0xff]  ;;  %v1867_v11 = vld [vmem:[#allocation2 + $0xda] sm:$0xff] }
 0x290   : > { %2023 = vst.msk [vmem:[#allocation3 + $0x48] sm:$0xff] %vm2013_vm11, %v1936_v51  ;;  %1748 = vrot.lane.b32.xlu2 %v1672_v23, %s2462_s9  ;;  %v1570_v32 = vpop.permute.xlu2 %1569 }
 0x291   : > { %v1920_v46 = vpop.permute.xlu1 %1919  ;;  %1647 = vst.msk [vmem:[#allocation3 + $0x98] sm:$0xff] %vm1627_vm8, %v1570_v32 }
 0x292   : > { %2015 = vst.msk [vmem:[#allocation3 + $0x8] sm:$0xff] %vm2013_vm11, %v1920_v46  ;;  %v2054_v14 = vld [vmem:[#allocation3 + $0x40] sm:$0xff] }
 0x295   : > { %1768 = vrot.lane.b32.xlu0 %v1682_v48, %s2462_s9 }
 0x297   : > { %v1584_v28 = vpop.permute.xlu0 %1583  ;;  %v2055_v8 = vld [vmem:[#allocation3 + $0x48] sm:$0xff]  ;;  %1591 = vrot.lane.b32.xlu1 %v1497_v1, %s2461_s8 }
 0x298   : > { %1654 = vst.msk [vmem:[#allocation3 + $0xd0] sm:$0xff] %vm1627_vm8, %v1584_v28  ;;  %v2082_v57 = vpack.c.bf16 %v2055_v8, %v2054_v14  ;;  %1927 = vrot.lane.b32.xlu2 %v1858_v47, %s2463_s10  ;;  %v1761_v44 = vpop.permute.xlu2 %1760 }
 0x299   : > { %v1568_v26 = vpop.permute.xlu1 %1567  ;;  %v2047_v39 = vld [vmem:[#allocation3 + $0x8] sm:$0xff] }
 0x29a   : > { %2392 = vmatmul.msk.bf16.vlgmr.msra.gmra.mxu1 %vm2134_vm12, %v2082_v57  ;;  %1646 = vst.msk [vmem:[#allocation3 + $0x90] sm:$0xff] %vm1627_vm8, %v1568_v26  ;;  %v2078_v17 = vpack.c.bf16 %v2047_v39, %v2046_v24 }
 0x29b   : > { %1839 = vst.msk [vmem:[#allocation3 + $0x90] sm:$0xff] %vm1820_vm10, %v1761_v44 }
 0x29c   : > { %2388 = vmatmul.msk.bf16.vlgmr.msra.gmra.mxu0 %vm2134_vm12, %v2078_v17 }
 0x29d   : > { %1786 = vrot.lane.b32.xlu0 %v1691_v3, %s2462_s9 }
 0x29f   : > { %v1763_v43 = vpop.permute.xlu0 %1762  ;;  %1770 = vrot.lane.b32.xlu1 %v1683_v33, %s2462_s9 }
 0x2a0   : > { %1840 = vst.msk [vmem:[#allocation3 + $0x98] sm:$0xff] %vm1820_vm10, %v1763_v43  ;;  %1575 = vrot.lane.b32.xlu2 %v1489_v56, %s2461_s8  ;;  %v1779_v55 = vpop.permute.xlu2 %1778 }
 0x2a1   : > { %v1586_v5 = vpop.permute.xlu1 %1585 }
 0x2a2   : > { %1655 = vst.msk [vmem:[#allocation3 + $0xd8] sm:$0xff] %vm1627_vm8, %v1586_v5 }
 0x2a3   : > { %1848 = vst.msk [vmem:[#allocation3 + $0xd8] sm:$0xff] %vm1820_vm10, %v1779_v55 }
 0x2a5   : > { %1977 = vrot.lane.b32.xlu0 %v1883_v19, %s2463_s10 }
 0x2a7   : > { %v1954_v49 = vpop.permute.xlu0 %1953  ;;  %1961 = vrot.lane.b32.xlu1 %v1875_v7, %s2463_s10 }
 0x2a8   : > { %2032 = vst.msk [vmem:[#allocation3 + $0x90] sm:$0xff] %vm2013_vm11, %v1954_v49  ;;  %1593 = vrot.lane.b32.xlu2 %v1498_v15, %s2461_s8  ;;  %v1970_v41 = vpop.permute.xlu2 %1969 }
 0x2a9   : > { %v1777_v25 = vpop.permute.xlu1 %1776 }
 0x2aa   : > { %1847 = vst.msk [vmem:[#allocation3 + $0xd0] sm:$0xff] %vm1820_vm10, %v1777_v25 }
 0x2ab   : > { %2040 = vst.msk [vmem:[#allocation3 + $0xd0] sm:$0xff] %vm2013_vm11, %v1970_v41 }
 0x2ad   : > { %1738 = vrot.lane.b32.xlu0 %v1667_v60, %s2462_s9 }
 0x2af   : > { %v1972_v40 = vpop.permute.xlu0 %1971  ;;  %1979 = vrot.lane.b32.xlu1 %v1884_v53, %s2463_s10  ;;  %v2064_v63 = vld [vmem:[#allocation3 + $0x90] sm:$0xff] }
 0x2b0   : > { %2041 = vst.msk [vmem:[#allocation3 + $0xd8] sm:$0xff] %vm2013_vm11, %v1972_v40  ;;  %1784 = vrot.lane.b32.xlu2 %v1690_v27, %s2462_s9  ;;  %v1731_v61 = vpop.permute.xlu2 %1730  ;;  %v3636_v53 = vld [vmem:[%s3739_s4] ss:$0 sm:$0xff] }
 0x2b1   : > { %v1956_v21 = vpop.permute.xlu1 %1955  ;;  %1824 = vst.msk [vmem:[#allocation3 + $0x18] sm:$0xff] %vm1820_vm10, %v1731_v61 }
 0x2b2   : > { %2033 = vst.msk [vmem:[#allocation3 + $0x98] sm:$0xff] %vm2013_vm11, %v1956_v21  ;;  %v2072_v22 = vld [vmem:[#allocation3 + $0xd0] sm:$0xff] }
 0x2b5   : > { %1929 = vrot.lane.b32.xlu0 %v1859_v9, %s2463_s10 }
 0x2b7   : > { %v1745_v34 = vpop.permute.xlu0 %1744  ;;  %v2073_v31 = vld [vmem:[#allocation3 + $0xd8] sm:$0xff]  ;;  %1752 = vrot.lane.b32.xlu1 %v1674_v10, %s2462_s9 }
 0x2b8   : > { %1831 = vst.msk [vmem:[#allocation3 + $0x50] sm:$0xff] %vm1820_vm10, %v1745_v34  ;;  %v2091_v20 = vpack.c.bf16 %v2073_v31, %v2072_v22  ;;  %1963 = vrot.lane.b32.xlu2 %v1876_v37, %s2463_s10 }
 0x2b9   : > { %v1729_v42 = vpop.permute.xlu1 %1728  ;;  %v2065_v36 = vld [vmem:[#allocation3 + $0x98] sm:$0xff] }
 0x2ba   : > { %2401 = vmatmul.msk.bf16.gmra.mxu3 %vm2134_vm12, %v2091_v20  ;;  %1823 = vst.msk [vmem:[#allocation3 + $0x10] sm:$0xff] %vm1820_vm10, %v1729_v42  ;;  %v2087_v50 = vpack.c.bf16 %v2065_v36, %v2064_v63  ;;  %v1922_v59 = vpop.permute.xlu2 %1921 }
 0x2bb   : > { %2016 = vst.msk [vmem:[#allocation3 + $0x10] sm:$0xff] %vm2013_vm11, %v1922_v59 }
 0x2bc   : > { %2397 = vmatmul.msk.bf16.gmra.mxu2 %vm2134_vm12, %v2087_v50 }
 0x2bd   : > { %1947 = vrot.lane.b32.xlu0 %v1868_v54, %s2463_s10 }
 0x2bf   : > { %v1924_v35 = vpop.permute.xlu0 %1923  ;;  %1931 = vrot.lane.b32.xlu1 %v1860_v45, %s2463_s10 }
 0x2c0   : > { %2017 = vst.msk [vmem:[#allocation3 + $0x18] sm:$0xff] %vm2013_vm11, %v1924_v35  ;;  %1736 = vrot.lane.b32.xlu2 %v1666_v30, %s2462_s9 }
 0x2c1   : > { %v1747_v13 = vpop.permute.xlu1 %1746 }
 0x2c2   : > { %1832 = vst.msk [vmem:[#allocation3 + $0x58] sm:$0xff] %vm1820_vm10, %v1747_v13  ;;  %v1940_v0 = vpop.permute.xlu2 %1939  ;;  %v2048_v2 = vld [vmem:[#allocation3 + $0x10] sm:$0xff] }
 0x2c3   : > { %2025 = vst.msk [vmem:[#allocation3 + $0x58] sm:$0xff] %vm2013_vm11, %v1940_v0 }
 0x2c7   : > { %v1572_v12 = vpop.permute.xlu0 %1571  ;;  %v2049_v52 = vld [vmem:[#allocation3 + $0x18] sm:$0xff] }
 0x2c8   : > { %1648 = vst.msk [vmem:[#allocation3 + $0xa0] sm:$0xff] %vm1627_vm8, %v1572_v12  ;;  %v2079_v58 = vpack.c.bf16 %v2049_v52, %v2048_v2  ;;  %1754 = vrot.lane.b32.xlu2 %v1675_v38, %s2462_s9 }
 0x2c9   : > { %v1938_v29 = vpop.permute.xlu1 %1937 }
 0x2ca   : > { %2389 = vmatmul.msk.bf16.gmra.mxu0 %vm2134_vm12, %v2079_v58  ;;  %2024 = vst.msk [vmem:[#allocation3 + $0x50] sm:$0xff] %vm2013_vm11, %v1938_v29  ;;  %v1588_v4 = vpop.permute.xlu2 %1587  ;;  %v2057_v6 = vld [vmem:[#allocation3 + $0x58] sm:$0xff] }
 0x2cb   : > { %1656 = vst.msk [vmem:[#allocation3 + $0xe0] sm:$0xff] %vm1627_vm8, %v1588_v4 }
 0x2cf   : > { %v1590_v62 = vpop.permute.xlu0 %1589 }
 0x2d0   : > { %1657 = vst.msk [vmem:[#allocation3 + $0xe8] sm:$0xff] %vm1627_vm8, %v1590_v62  ;;  %1945 = vrot.lane.b32.xlu2 %v1867_v11, %s2463_s10 }
 0x2d1   : > { %v1574_v18 = vpop.permute.xlu1 %1573  ;;  %v2056_v51 = vld [vmem:[#allocation3 + $0x50] sm:$0xff] }
 0x2d2   : > { %1649 = vst.msk [vmem:[#allocation3 + $0xa8] sm:$0xff] %vm1627_vm8, %v1574_v18  ;;  %v2083_v16 = vpack.c.bf16 %v2057_v6, %v2056_v51  ;;  %v1767_v48 = vpop.permute.xlu2 %1766 }
 0x2d3   : > { %1842 = vst.msk [vmem:[#allocation3 + $0xa8] sm:$0xff] %vm1820_vm10, %v1767_v48 }
 0x2d4   : > { %2393 = vmatmul.msk.bf16.gmra.mxu1 %vm2134_vm12, %v2083_v16 }
 0x2d7   : > { %v1781_v46 = vpop.permute.xlu0 %1780 }
 0x2d8   : > { %1849 = vst.msk [vmem:[#allocation3 + $0xe0] sm:$0xff] %vm1820_vm10, %v1781_v46 }
 0x2d9   : > { %v1765_v23 = vpop.permute.xlu1 %1764 }
 0x2da   : > { %1841 = vst.msk [vmem:[#allocation3 + $0xa0] sm:$0xff] %vm1820_vm10, %v1765_v23  ;;  %v1958_v28 = vpop.permute.xlu2 %1957 }
 0x2db   : > { %2034 = vst.msk [vmem:[#allocation3 + $0xa0] sm:$0xff] %vm2013_vm11, %v1958_v28 }
 0x2df   : > { %v1960_v1 = vpop.permute.xlu0 %1959 }
 0x2e0   : > { %2035 = vst.msk [vmem:[#allocation3 + $0xa8] sm:$0xff] %vm2013_vm11, %v1960_v1 }
 0x2e1   : > { %v1783_v32 = vpop.permute.xlu1 %1782 }
 0x2e2   : > { %1850 = vst.msk [vmem:[#allocation3 + $0xe8] sm:$0xff] %vm1820_vm10, %v1783_v32  ;;  %v1976_v14 = vpop.permute.xlu2 %1975  ;;  %v2066_v3 = vld [vmem:[#allocation3 + $0xa0] sm:$0xff] }
 0x2e3   : > { %2043 = vst.msk [vmem:[#allocation3 + $0xe8] sm:$0xff] %vm2013_vm11, %v1976_v14 }
 0x2e7   : > { %v1733_v8 = vpop.permute.xlu0 %1732  ;;  %v2067_v57 = vld [vmem:[#allocation3 + $0xa8] sm:$0xff] }
 0x2e8   : > { %1825 = vst.msk [vmem:[#allocation3 + $0x20] sm:$0xff] %vm1820_vm10, %v1733_v8  ;;  %v2088_v26 = vpack.c.bf16 %v2067_v57, %v2066_v3 }
 0x2e9   : > { %v1974_v47 = vpop.permute.xlu1 %1973 }
 0x2ea   : > { %2398 = vmatmul.msk.bf16.gmra.mxu2 %vm2134_vm12, %v2088_v26  ;;  %2042 = vst.msk [vmem:[#allocation3 + $0xe0] sm:$0xff] %vm2013_vm11, %v1974_v47  ;;  %v1749_v39 = vpop.permute.xlu2 %1748  ;;  %v2075_v17 = vld [vmem:[#allocation3 + $0xe8] sm:$0xff] }
 0x2eb   : > { %1833 = vst.msk [vmem:[#allocation3 + $0x60] sm:$0xff] %vm1820_vm10, %v1749_v39 }
 0x2ef   : > { %v1751_v24 = vpop.permute.xlu0 %1750 }
 0x2f0   : > { %1834 = vst.msk [vmem:[#allocation3 + $0x68] sm:$0xff] %vm1820_vm10, %v1751_v24 }
 0x2f1   : > { %v1735_v33 = vpop.permute.xlu1 %1734  ;;  %v2074_v43 = vld [vmem:[#allocation3 + $0xe0] sm:$0xff] }
 0x2f2   : > { %1826 = vst.msk [vmem:[#allocation3 + $0x28] sm:$0xff] %vm1820_vm10, %v1735_v33  ;;  %v2092_v44 = vpack.c.bf16 %v2075_v17, %v2074_v43  ;;  %v1928_v19 = vpop.permute.xlu2 %1927 }
 0x2f3   : > { %2019 = vst.msk [vmem:[#allocation3 + $0x28] sm:$0xff] %vm2013_vm11, %v1928_v19 }
 0x2f4   : > { %2402 = vmatmul.msk.bf16.gmra.mxu3 %vm2134_vm12, %v2092_v44 }
 0x2f7   : > { %v1942_v5 = vpop.permute.xlu0 %1941 }
 0x2f8   : > { %2026 = vst.msk [vmem:[#allocation3 + $0x60] sm:$0xff] %vm2013_vm11, %v1942_v5 }
 0x2f9   : > { %v1926_v56 = vpop.permute.xlu1 %1925 }
 0x2fa   : > { %2018 = vst.msk [vmem:[#allocation3 + $0x20] sm:$0xff] %vm2013_vm11, %v1926_v56  ;;  %v1576_v49 = vpop.permute.xlu2 %1575  ;;  %v2051_v55 = vld [vmem:[#allocation3 + $0x28] sm:$0xff] }
 0x2fb   : > { %1650 = vst.msk [vmem:[#allocation3 + $0xb0] sm:$0xff] %vm1627_vm8, %v1576_v49 }
 0x2ff   : > { %v1578_v7 = vpop.permute.xlu0 %1577  ;;  %v2058_v10 = vld [vmem:[#allocation3 + $0x60] sm:$0xff] }
 0x300   : > { %1651 = vst.msk [vmem:[#allocation3 + $0xb8] sm:$0xff] %vm1627_vm8, %v1578_v7 }
 0x301   : > { %v1944_v25 = vpop.permute.xlu1 %1943  ;;  %v2050_v60 = vld [vmem:[#allocation3 + $0x20] sm:$0xff] }
 0x302   : > { %2027 = vst.msk [vmem:[#allocation3 + $0x68] sm:$0xff] %vm2013_vm11, %v1944_v25  ;;  %v2080_v15 = vpack.c.bf16 %v2051_v55, %v2050_v60  ;;  %v1594_v41 = vpop.permute.xlu2 %1593 }
 0x303   : > { %1659 = vst.msk [vmem:[#allocation3 + $0xf8] sm:$0xff] %vm1627_vm8, %v1594_v41 }
 0x304   : > { %2390 = vmatmul.msk.bf16.gmra.mxu0 %vm2134_vm12, %v2080_v15 }
 0x307   : > { %v1769_v40 = vpop.permute.xlu0 %1768  ;;  %v2236_v21 = vpop.f32.mrf.mxu2 }
 0x308   : > { %1843 = vst.msk [vmem:[#allocation3 + $0xb0] sm:$0xff] %vm1820_vm10, %v1769_v40  ;;  %v2237_v9 = vadd.f32 %v3636_v53, %v2236_v21 }
 0x309   : > { %v1592_v27 = vpop.permute.xlu1 %1591  ;;  %v2059_v34 = vld [vmem:[#allocation3 + $0x68] sm:$0xff] }
 0x30a   : > { %1658 = vst.msk [vmem:[#allocation3 + $0xf0] sm:$0xff] %vm1627_vm8, %v1592_v27  ;;  %v2084_v61 = vpack.c.bf16 %v2059_v34, %v2058_v10  ;;  %v1785_v22 = vpop.permute.xlu2 %1784 }
 0x30b   : > { %2292 = vst [vmem:[%s3645_s28 + $0x80] sm:$0xff] %v2237_v9 }
 0x30c   : > { %2394 = vmatmul.msk.bf16.gmra.mxu1 %vm2134_vm12, %v2084_v61  ;;  %1851 = vst.msk [vmem:[#allocation3 + $0xf0] sm:$0xff] %vm1820_vm10, %v1785_v22 }
 0x30f   : > { %v1787_v31 = vpop.permute.xlu0 %1786  ;;  %v2238_v20 = vpop.f32.mrf.mxu2 }
 0x310   : > { %1852 = vst.msk [vmem:[#allocation3 + $0xf8] sm:$0xff] %vm1820_vm10, %v1787_v31  ;;  %v2256_v54 = vpop.f32.mrf.mxu3  ;;  %v2239_v42 = vadd.f32 %v3636_v53, %v2238_v20 }
 0x311   : > { %v2257_v37 = vadd.f32 %v3636_v53, %v2256_v54  ;;  %v1771_v63 = vpop.permute.xlu1 %1770 }
 0x312   : > { %1844 = vst.msk [vmem:[#allocation3 + $0xb8] sm:$0xff] %vm1820_vm10, %v1771_v63  ;;  %v1964_v50 = vpop.permute.xlu2 %1963 }
 0x313   : > { %2293 = vst [vmem:[%s3645_s28 + $0x88] sm:$0xff] %v2239_v42 }
 0x314   : > { %2300 = vst [vmem:[%s3645_s28 + $0xc0] sm:$0xff] %v2257_v37 }
 0x315   : > { %2037 = vst.msk [vmem:[#allocation3 + $0xb8] sm:$0xff] %vm2013_vm11, %v1964_v50 }
 0x317   : > { %v1978_v36 = vpop.permute.xlu0 %1977  ;;  %v2216_v45 = vpop.f32.mrf.mxu1 }
 0x318   : > { %2044 = vst.msk [vmem:[#allocation3 + $0xf0] sm:$0xff] %vm2013_vm11, %v1978_v36  ;;  %v2217_v35 = vadd.f32 %v3636_v53, %v2216_v45  ;;  %v2258_v59 = vpop.f32.mrf.mxu3 }
 0x319   : > { %v2259_v13 = vadd.f32 %v3636_v53, %v2258_v59  ;;  %v1962_v30 = vpop.permute.xlu1 %1961  ;;  %v2196_v12 = vpop.f32.mrf.mxu0 }
 0x31a   : > { %2284 = vst [vmem:[%s3645_s28 + $0x40] sm:$0xff] %v2217_v35  ;;  %v2197_v0 = vadd.f32 %v3636_v53, %v2196_v12  ;;  %v1737_v2 = vpop.permute.xlu2 %1736 }
 0x31b   : > { %2301 = vst [vmem:[%s3645_s28 + $0xc8] sm:$0xff] %v2259_v13 }
 0x31c   : > { %2036 = vst.msk [vmem:[#allocation3 + $0xb0] sm:$0xff] %vm2013_vm11, %v1962_v30  ;;  %v2069_v62 = vld [vmem:[#allocation3 + $0xb8] sm:$0xff] }
 0x31d   : > { %2276 = vst [vmem:[%s3645_s28] sm:$0xff] %v2197_v0 }
 0x31e   : > { %1827 = vst.msk [vmem:[#allocation3 + $0x30] sm:$0xff] %vm1820_vm10, %v1737_v2 }
 0x31f   : > { %v1739_v52 = vpop.permute.xlu0 %1738  ;;  %v2218_v58 = vpop.f32.mrf.mxu1  ;;  %v2076_v48 = vld [vmem:[#allocation3 + $0xf0] sm:$0xff] }
 0x320   : > { %1828 = vst.msk [vmem:[#allocation3 + $0x38] sm:$0xff] %vm1820_vm10, %v1739_v52  ;;  %v2219_v29 = vadd.f32 %v3636_v53, %v2218_v58 }
 0x321   : > { %v1980_v38 = vpop.permute.xlu1 %1979  ;;  %v2198_v4 = vpop.f32.mrf.mxu0 }
 0x322   : > { %2285 = vst [vmem:[%s3645_s28 + $0x48] sm:$0xff] %v2219_v29  ;;  %v2199_v6 = vadd.f32 %v3636_v53, %v2198_v4  ;;  %v1755_v16 = vpop.permute.xlu2 %1754 }
 0x323   : > { %2045 = vst.msk [vmem:[#allocation3 + $0xf8] sm:$0xff] %vm2013_vm11, %v1980_v38  ;;  %v2068_v18 = vld [vmem:[#allocation3 + $0xb0] sm:$0xff] }
 0x324   : > { %v2089_v11 = vpack.c.bf16 %v2069_v62, %v2068_v18  ;;  %2277 = vst [vmem:[%s3645_s28 + $0x8] sm:$0xff] %v2199_v6 }
 0x325   : > { %1836 = vst.msk [vmem:[#allocation3 + $0x78] sm:$0xff] %vm1820_vm10, %v1755_v16 }
 0x326   : > { %2399 = vmatmul.msk.bf16.gmra.mxu2 %vm2134_vm12, %v2089_v11 }
 0x327   : > { %v1930_v51 = vpop.permute.xlu0 %1929 }
 0x328   : > { %2020 = vst.msk [vmem:[#allocation3 + $0x30] sm:$0xff] %vm2013_vm11, %v1930_v51 }
 0x329   : > { %v1753_v46 = vpop.permute.xlu1 %1752 }
 0x32a   : > { %1835 = vst.msk [vmem:[#allocation3 + $0x70] sm:$0xff] %vm1820_vm10, %v1753_v46  ;;  %v2077_v23 = vld [vmem:[#allocation3 + $0xf8] sm:$0xff]  ;;  %v1946_v32 = vpop.permute.xlu2 %1945 }
 0x32b   : > { %v2093_v1 = vpack.c.bf16 %v2077_v23, %v2076_v48  ;;  %2028 = vst.msk [vmem:[#allocation3 + $0x70] sm:$0xff] %vm2013_vm11, %v1946_v32 }
 0x32d   : > { %2403 = vmatmul.msk.bf16.gmra.mxu3 %vm2134_vm12, %v2093_v1 }
 0x32f   : > { %v1948_v28 = vpop.permute.xlu0 %1947  ;;  %v2052_v26 = vld [vmem:[#allocation3 + $0x30] sm:$0xff] }
 0x330   : > { %2029 = vst.msk [vmem:[#allocation3 + $0x78] sm:$0xff] %vm2013_vm11, %v1948_v28 }
 0x331   : > { %v1932_v8 = vpop.permute.xlu1 %1931 }
 0x332   : > { %2021 = vst.msk [vmem:[#allocation3 + $0x38] sm:$0xff] %vm2013_vm11, %v1932_v8  ;;  %v2060_v57 = vld [vmem:[#allocation3 + $0x70] sm:$0xff] }
 0x337   : > { %v2061_v14 = vld [vmem:[#allocation3 + $0x78] sm:$0xff] }
 0x338   : > { %v2085_v3 = vpack.c.bf16 %v2061_v14, %v2060_v57 }
 0x339   : > { %v2053_v47 = vld [vmem:[#allocation3 + $0x38] sm:$0xff] }
 0x33a   : > { %2395 = vmatmul.msk.bf16.gmra.mxu1 %vm2134_vm12, %v2085_v3  ;;  %v2081_v24 = vpack.c.bf16 %v2053_v47, %v2052_v26 }
 0x33c   : > { %2391 = vmatmul.msk.bf16.gmra.mxu0 %vm2134_vm12, %v2081_v24 }
 0x33d   : > { %v2261_v39 = vpop.f32.mrf.mxu3 }
 0x33e   : > { %v2262_v17 = vadd.f32 %v3636_v53, %v2261_v39 }
 0x33f   : > { %v2241_v33 = vpop.f32.mrf.mxu2 }
 0x340   : > { %2302 = vst [vmem:[%s3645_s28 + $0xd0] sm:$0xff] %v2262_v17  ;;  %v2242_v43 = vadd.f32 %v3636_v53, %v2241_v33 }
 0x342   : > { %2294 = vst [vmem:[%s3645_s28 + $0x90] sm:$0xff] %v2242_v43 }
 0x345   : > { %v2263_v44 = vpop.f32.mrf.mxu3 }
 0x346   : > { %v2264_v5 = vadd.f32 %v3636_v53, %v2263_v44 }
 0x347   : > { %v2201_v19 = vpop.f32.mrf.mxu0  ;;  %v2243_v7 = vpop.f32.mrf.mxu2 }
 0x348   : > { %2303 = vst [vmem:[%s3645_s28 + $0xd8] sm:$0xff] %v2264_v5  ;;  %v2202_v56 = vadd.f32 %v3636_v53, %v2201_v19  ;;  %v2244_v49 = vadd.f32 %v3636_v53, %v2243_v7 }
 0x34a   : > { %2278 = vst [vmem:[%s3645_s28 + $0x10] sm:$0xff] %v2202_v56 }
 0x34b   : > { %2295 = vst [vmem:[%s3645_s28 + $0x98] sm:$0xff] %v2244_v49 }
 0x34f   : > { %v2203_v55 = vpop.f32.mrf.mxu0 }
 0x350   : > { %v2204_v25 = vadd.f32 %v3636_v53, %v2203_v55 }
 0x351   : > { %v2221_v60 = vpop.f32.mrf.mxu1 }
 0x352   : > { %2279 = vst [vmem:[%s3645_s28 + $0x18] sm:$0xff] %v2204_v25  ;;  %v2222_v15 = vadd.f32 %v3636_v53, %v2221_v60 }
 0x354   : > { %2286 = vst [vmem:[%s3645_s28 + $0x50] sm:$0xff] %v2222_v15 }
 0x359   : > { %v2223_v40 = vpop.f32.mrf.mxu1 }
 0x35a   : > { %v2224_v41 = vadd.f32 %v3636_v53, %v2223_v40 }
 0x35c   : > { %2287 = vst [vmem:[%s3645_s28 + $0x58] sm:$0xff] %v2224_v41 }
 0x36d   : > { %v2246_v21 = vpop.f32.mrf.mxu2 }
 0x36e   : > { %v2247_v9 = vadd.f32 %v3636_v53, %v2246_v21 }
 0x370   : > { %2296 = vst [vmem:[%s3645_s28 + $0xa0] sm:$0xff] %v2247_v9 }
 0x375   : > { %v2248_v27 = vpop.f32.mrf.mxu2 }
 0x376   : > { %v2249_v10 = vadd.f32 %v3636_v53, %v2248_v27 }
 0x377   : > { %v2266_v34 = vpop.f32.mrf.mxu3 }
 0x378   : > { %2297 = vst [vmem:[%s3645_s28 + $0xa8] sm:$0xff] %v2249_v10  ;;  %v2267_v61 = vadd.f32 %v3636_v53, %v2266_v34 }
 0x37a   : > { %2304 = vst [vmem:[%s3645_s28 + $0xe0] sm:$0xff] %v2267_v61 }
 0x37f   : > { %v2268_v31 = vpop.f32.mrf.mxu3 }
 0x380   : > { %v2269_v22 = vadd.f32 %v3636_v53, %v2268_v31 }
 0x381   : > { %v2206_v20 = vpop.f32.mrf.mxu0 }
 0x382   : > { %2305 = vst [vmem:[%s3645_s28 + $0xe8] sm:$0xff] %v2269_v22  ;;  %v2207_v54 = vadd.f32 %v3636_v53, %v2206_v20 }
 0x384   : > { %2280 = vst [vmem:[%s3645_s28 + $0x20] sm:$0xff] %v2207_v54 }
 0x389   : > { %v2208_v42 = vpop.f32.mrf.mxu0  ;;  %v2226_v37 = vpop.f32.mrf.mxu1 }
 0x38a   : > { %v2209_v63 = vadd.f32 %v3636_v53, %v2208_v42  ;;  %v2227_v36 = vadd.f32 %v3636_v53, %v2226_v37 }
 0x38c   : > { %2281 = vst [vmem:[%s3645_s28 + $0x28] sm:$0xff] %v2209_v63 }
 0x38d   : > { %2288 = vst [vmem:[%s3645_s28 + $0x60] sm:$0xff] %v2227_v36 }
 0x391   : > { %v2228_v50 = vpop.f32.mrf.mxu1 }
 0x392   : > { %v2229_v45 = vadd.f32 %v3636_v53, %v2228_v50 }
 0x394   : > { %2289 = vst [vmem:[%s3645_s28 + $0x68] sm:$0xff] %v2229_v45 }
 0x3a9   : > { %v2251_v35 = vpop.f32.mrf.mxu2 }
 0x3aa   : > { %v2252_v59 = vadd.f32 %v3636_v53, %v2251_v35 }
 0x3ac   : > { %2298 = vst [vmem:[%s3645_s28 + $0xb0] sm:$0xff] %v2252_v59 }
 0x3b0   : > { %v2271_v13 = vpop.f32.mrf.mxu3 }
 0x3b1   : > { %v2253_v30 = vpop.f32.mrf.mxu2  ;;  %v2272_v12 = vadd.f32 %v3636_v53, %v2271_v13 }
 0x3b2   : > { %v2254_v0 = vadd.f32 %v3636_v53, %v2253_v30 }
 0x3b3   : > { %2306 = vst [vmem:[%s3645_s28 + $0xf0] sm:$0xff] %v2272_v12 }
 0x3b4   : > { %2299 = vst [vmem:[%s3645_s28 + $0xb8] sm:$0xff] %v2254_v0 }
 0x3b7   : > { %v2231_v52 = vpop.f32.mrf.mxu1 }
 0x3b8   : > { %v2232_v2 = vadd.f32 %v3636_v53, %v2231_v52  ;;  %v2273_v58 = vpop.f32.mrf.mxu3 }
 0x3b9   : > { %v2274_v29 = vadd.f32 %v3636_v53, %v2273_v58  ;;  %v2211_v38 = vpop.f32.mrf.mxu0 }
 0x3ba   : > { %2290 = vst [vmem:[%s3645_s28 + $0x70] sm:$0xff] %v2232_v2  ;;  %v2212_v62 = vadd.f32 %v3636_v53, %v2211_v38 }
 0x3bb   : > { %2307 = vst [vmem:[%s3645_s28 + $0xf8] sm:$0xff] %v2274_v29 }
 0x3bc   : > { %2282 = vst [vmem:[%s3645_s28 + $0x30] sm:$0xff] %v2212_v62 }
 0x3bf   : > { %v2233_v4 = vpop.f32.mrf.mxu1 }
 0x3c0   : > { %v2234_v6 = vadd.f32 %v3636_v53, %v2233_v4 }
 0x3c1   : > { %v2213_v18 = vpop.f32.mrf.mxu0 }
 0x3c2   : > { %2291 = vst [vmem:[%s3645_s28 + $0x78] sm:$0xff] %v2234_v6  ;;  %v2214_v11 = vadd.f32 %v3636_v53, %v2213_v18 }
 0x3c4   : > { %2283 = vst [vmem:[%s3645_s28 + $0x38] sm:$0xff] %v2214_v11 }
 0x3c5 PF: > { %s15_s18 = sadd.s32 1, %s2453_s18  }
 0x3c6   : > { %p12_p4 = scmp.ge.s32.totalorder %s15_s18, 4  }
 0x3c8   :  { %14 = sbr.rel (!%p12_p4) target bundleno = 1 (0x1), region = 73 }

</bundles_post_ra>
